<compile_context>
chip_gen: v5e
topology: v5e:2x2
jax: 0.10.0
libtpu: 0.0.40
codegen_flags: <defaults>
</compile_context>

<pallas_src>
import jax
import jax.numpy as jnp
from jax.experimental import pallas as pl
from jax.experimental.pallas import tpu as pltpu


# ---------------------------------------------------------------------------
# Layer geometry (logical and lane-padded).
# ---------------------------------------------------------------------------
_LAYER_DIMS = [(784, 520), (520, 320), (320, 240), (240, 120), (120, 10)]
_N_CLASSES = 10
_N_LAYERS = len(_LAYER_DIMS)


def _round_up(n, m):
    return ((n + m - 1) // m) * m


_D_IN = 784                                                     # unpadded K
_PAD_OUT = [_round_up(d_out, 128) for _, d_out in _LAYER_DIMS]  # 640,384,256,128,128
_PAD_IN = [_D_IN] + _PAD_OUT[:-1]                               # per-layer fan_in (padded)
_BIAS_LANES = max(_PAD_OUT)                                     # 640
_MAX_TILE_B = 512                                               # fits v5e/v6e/v7x VMEM


# ---------------------------------------------------------------------------
# Fused kernel: one batch tile through all five layers.
# ---------------------------------------------------------------------------
def _mlp_kernel(x_ref,
                w1_ref, w2_ref, w3_ref, w4_ref, w5_ref,
                bias_ref,
                o_ref):
    def layer(h_bf16, w_ref, layer_idx, relu):
        out_pad = _PAD_OUT[layer_idx]
        # bf16 MXU matmul, f32 accumulation; epilogue (bias + ReLU) in f32.
        y = jnp.dot(h_bf16, w_ref[...], preferred_element_type=jnp.float32)
        y = y + bias_ref[layer_idx:layer_idx + 1, :out_pad]   # (1,out) broadcast
        if relu:
            # Carry the hidden activation as bf16: halves spill traffic at
            # large tiles, and the cast happens anyway before the next MXU op.
            return jnp.maximum(y, 0.0).astype(jnp.bfloat16)
        return y                                               # logits in f32

    h = x_ref[...]                                  # (TB, 784) bf16
    h = layer(h, w1_ref, 0, True)
    h = layer(h, w2_ref, 1, True)
    h = layer(h, w3_ref, 2, True)
    h = layer(h, w4_ref, 3, True)
    y = layer(h, w5_ref, 4, False)                  # (TB, 128) f32 logits
    o_ref[...] = y.astype(o_ref.dtype)


# ---------------------------------------------------------------------------
# Parameter construction (mimics torch.nn.Linear default init:
# U(-1/sqrt(fan_in), 1/sqrt(fan_in)) for weight and bias), plus padding/cast.
# ---------------------------------------------------------------------------
def init_params(key):
    params = []
    for (fan_in, fan_out) in _LAYER_DIMS:
        key, kw, kb = jax.random.split(key, 3)
        bound = 1.0 / jnp.sqrt(jnp.float32(fan_in))
        w = jax.random.uniform(kw, (fan_in, fan_out), jnp.float32, -bound, bound)
        b = jax.random.uniform(kb, (fan_out,), jnp.float32, -bound, bound)
        params.append((w, b))
    return params


def pack_params(params):
    """Pad feature dims to 128-lane multiples (except the true 784 input K),
    cast weights to bf16, and consolidate all biases into one (8, 640) f32."""
    weights = []
    bias_mat = jnp.zeros((8, _BIAS_LANES), jnp.float32)   # 5 real rows, pad to 8
    for idx, ((w, b), in_pad, out_pad) in enumerate(
            zip(params, _PAD_IN, _PAD_OUT)):
        w_p = jnp.zeros((in_pad, out_pad), jnp.bfloat16)
        w_p = w_p.at[:w.shape[0], :w.shape[1]].set(w.astype(jnp.bfloat16))
        weights.append(w_p)
        bias_mat = bias_mat.at[idx, :b.shape[0]].set(b)
    return tuple(weights), bias_mat


# ---------------------------------------------------------------------------
# Forward pass (equivalent of Net.forward).
# ---------------------------------------------------------------------------
def net_forward(packed_params, x):
    """packed_params: output of pack_params; x: (B, C, H, W) or (B, 784)."""
    weights, bias_mat = packed_params
    x = x.reshape(-1, _D_IN).astype(jnp.float32)     # x.view(-1, 784)
    B = x.shape[0]

    # Batch tiling: biggest lane/sublane-aligned tile that fits VMEM.
    if B <= _MAX_TILE_B:
        tile_b = _round_up(max(B, 1), 16)            # bf16 packs 16 rows/vreg
        b_pad = tile_b
    else:
        tile_b = _MAX_TILE_B
        b_pad = _round_up(B, tile_b)

    x_pad = jnp.zeros((b_pad, _D_IN), jnp.bfloat16)
    x_pad = x_pad.at[:B, :].set(x.astype(jnp.bfloat16))

    grid_steps = b_pad // tile_b
    grid = (grid_steps,)

    # Megacore-shard the batch axis only when there are enough steps to
    # amortize the per-TensorCore weight fetch (v7x has private VMEM per TC).
    semantics = ("parallel",) if grid_steps >= 16 else ("arbitrary",)

    weight_specs = [pl.BlockSpec(w.shape, lambda i: (0, 0)) for w in weights]
    bias_spec = pl.BlockSpec(bias_mat.shape, lambda i: (0, 0))

    out = pl.pallas_call(
        _mlp_kernel,
        out_shape=jax.ShapeDtypeStruct((b_pad, _PAD_OUT[-1]), jnp.float32),
        grid_spec=pltpu.PrefetchScalarGridSpec(
            num_scalar_prefetch=0,
            grid=grid,
            in_specs=[pl.BlockSpec((tile_b, _D_IN), lambda i: (i, 0))]
                     + weight_specs + [bias_spec],
            out_specs=pl.BlockSpec((tile_b, _PAD_OUT[-1]), lambda i: (i, 0)),
        ),
        compiler_params=pltpu.CompilerParams(
            dimension_semantics=semantics,
            vmem_limit_bytes=32 * 1024 * 1024),      # covers v5e's 16MiB default
    )(x_pad, *weights, bias_mat)

    return out[:B, :_N_CLASSES]


if __name__ == "__main__":
    key = jax.random.PRNGKey(0)
    key, k_in = jax.random.split(key)

    raw_params = init_params(key)
    packed = pack_params(raw_params)

    # Small MNIST-like batch: NCHW (8, 1, 28, 28).
    x = jax.random.normal(k_in, (8, 1, 28, 28), jnp.float32)

    logits = jax.jit(net_forward)(packed, x)
    logits = jax.block_until_ready(logits)

    assert logits.shape == (8, 10), logits.shape
    assert logits.dtype == jnp.float32

    # Sanity check against a plain-JAX reference using the same mixed precision
    # (bf16 operands, f32 accumulation, f32 bias+ReLU, bf16 inter-layer carry).
    h = x.reshape(-1, 784)
    for (w, b) in raw_params[:-1]:
        y = jnp.dot(h.astype(jnp.bfloat16), w.astype(jnp.bfloat16),
                    preferred_element_type=jnp.float32) + b
        h = jnp.maximum(y, 0.0)
    w, b = raw_params[-1]
    ref = jnp.dot(h.astype(jnp.bfloat16), w.astype(jnp.bfloat16),
                  preferred_element_type=jnp.float32) + b

    assert jnp.allclose(logits, ref, atol=2e-2, rtol=2e-2), (
        float(jnp.max(jnp.abs(logits - ref))))

    print("KERNEL_OK")
</pallas_src>

<mosaic_0001>
module attributes {stable_mosaic.version = 11 : i64} {
  func.func @_mlp_kernel(%arg0: i32, %arg1: memref<16x784xbf16, #tpu.memory_space<vmem>>, %arg2: memref<784x640xbf16, #tpu.memory_space<vmem>>, %arg3: memref<640x384xbf16, #tpu.memory_space<vmem>>, %arg4: memref<384x256xbf16, #tpu.memory_space<vmem>>, %arg5: memref<256x128xbf16, #tpu.memory_space<vmem>>, %arg6: memref<128x128xbf16, #tpu.memory_space<vmem>>, %arg7: memref<8x640xf32, #tpu.memory_space<vmem>>, %arg8: memref<16x128xf32, #tpu.memory_space<vmem>>) attributes {dimension_semantics = [#tpu.dimension_semantics<arbitrary>], iteration_bounds = array<i64: 1>, scalar_prefetch = 0 : i64, scratch_operands = 0 : i64, tpu.core_type = #tpu.core_type<tc>, window_params = [{transform_indices = @transform_0, window_bounds = array<i64: 16, 784>}, {pipeline_mode = #tpu.pipeline_mode<synchronous>, transform_indices = @transform_1, window_bounds = array<i64: 784, 640>}, {pipeline_mode = #tpu.pipeline_mode<synchronous>, transform_indices = @transform_2, window_bounds = array<i64: 640, 384>}, {pipeline_mode = #tpu.pipeline_mode<synchronous>, transform_indices = @transform_3, window_bounds = array<i64: 384, 256>}, {pipeline_mode = #tpu.pipeline_mode<synchronous>, transform_indices = @transform_4, window_bounds = array<i64: 256, 128>}, {pipeline_mode = #tpu.pipeline_mode<synchronous>, transform_indices = @transform_5, window_bounds = array<i64: 128, 128>}, {pipeline_mode = #tpu.pipeline_mode<synchronous>, transform_indices = @transform_6, window_bounds = array<i64: 8, 640>}, {transform_indices = @transform_7, window_bounds = array<i64: 16, 128>}]} {
    %c0 = arith.constant 0 : index
    %c0_0 = arith.constant 0 : index
    %0 = vector.load %arg1[%c0, %c0_0] : memref<16x784xbf16, #tpu.memory_space<vmem>>, vector<16x784xbf16>
    %c0_1 = arith.constant 0 : index
    %c0_2 = arith.constant 0 : index
    %1 = vector.load %arg2[%c0_1, %c0_2] : memref<784x640xbf16, #tpu.memory_space<vmem>>, vector<784x640xbf16>
    %cst = arith.constant dense<0.000000e+00> : vector<16x640xf32>
    %2 = tpu.matmul %0, %1, %cst {dimension_numbers = #tpu.dot_dimension_numbers<[1], [0], [0], [1], [0, 0, 1, 1], [], []>} : vector<16x784xbf16>, vector<784x640xbf16>, vector<16x640xf32> -> vector<16x640xf32>
    %c0_3 = arith.constant 0 : index
    %c0_4 = arith.constant 0 : index
    %3 = vector.load %arg7[%c0_3, %c0_4] : memref<8x640xf32, #tpu.memory_space<vmem>>, vector<1x640xf32>
    %4 = vector.broadcast %3 : vector<1x640xf32> to vector<16x640xf32>
    %5 = arith.addf %2, %4 : vector<16x640xf32>
    %cst_5 = arith.constant 0.000000e+00 : f32
    %6 = vector.broadcast %cst_5 : f32 to vector<16x640xf32>
    %7 = arith.maximumf %5, %6 : vector<16x640xf32>
    %8 = arith.truncf %7 : vector<16x640xf32> to vector<16x640xbf16>
    %c0_6 = arith.constant 0 : index
    %c0_7 = arith.constant 0 : index
    %9 = vector.load %arg3[%c0_6, %c0_7] : memref<640x384xbf16, #tpu.memory_space<vmem>>, vector<640x384xbf16>
    %cst_8 = arith.constant dense<0.000000e+00> : vector<16x384xf32>
    %10 = tpu.matmul %8, %9, %cst_8 {dimension_numbers = #tpu.dot_dimension_numbers<[1], [0], [0], [1], [0, 0, 1, 1], [], []>} : vector<16x640xbf16>, vector<640x384xbf16>, vector<16x384xf32> -> vector<16x384xf32>
    %c1 = arith.constant 1 : index
    %c0_9 = arith.constant 0 : index
    %11 = vector.load %arg7[%c1, %c0_9] : memref<8x640xf32, #tpu.memory_space<vmem>>, vector<1x384xf32>
    %12 = vector.broadcast %11 : vector<1x384xf32> to vector<16x384xf32>
    %13 = arith.addf %10, %12 : vector<16x384xf32>
    %cst_10 = arith.constant 0.000000e+00 : f32
    %14 = vector.broadcast %cst_10 : f32 to vector<16x384xf32>
    %15 = arith.maximumf %13, %14 : vector<16x384xf32>
    %16 = arith.truncf %15 : vector<16x384xf32> to vector<16x384xbf16>
    %c0_11 = arith.constant 0 : index
    %c0_12 = arith.constant 0 : index
    %17 = vector.load %arg4[%c0_11, %c0_12] : memref<384x256xbf16, #tpu.memory_space<vmem>>, vector<384x256xbf16>
    %cst_13 = arith.constant dense<0.000000e+00> : vector<16x256xf32>
    %18 = tpu.matmul %16, %17, %cst_13 {dimension_numbers = #tpu.dot_dimension_numbers<[1], [0], [0], [1], [0, 0, 1, 1], [], []>} : vector<16x384xbf16>, vector<384x256xbf16>, vector<16x256xf32> -> vector<16x256xf32>
    %c2 = arith.constant 2 : index
    %c0_14 = arith.constant 0 : index
    %19 = vector.load %arg7[%c2, %c0_14] : memref<8x640xf32, #tpu.memory_space<vmem>>, vector<1x256xf32>
    %20 = vector.broadcast %19 : vector<1x256xf32> to vector<16x256xf32>
    %21 = arith.addf %18, %20 : vector<16x256xf32>
    %cst_15 = arith.constant 0.000000e+00 : f32
    %22 = vector.broadcast %cst_15 : f32 to vector<16x256xf32>
    %23 = arith.maximumf %21, %22 : vector<16x256xf32>
    %24 = arith.truncf %23 : vector<16x256xf32> to vector<16x256xbf16>
    %c0_16 = arith.constant 0 : index
    %c0_17 = arith.constant 0 : index
    %25 = vector.load %arg5[%c0_16, %c0_17] : memref<256x128xbf16, #tpu.memory_space<vmem>>, vector<256x128xbf16>
    %cst_18 = arith.constant dense<0.000000e+00> : vector<16x128xf32>
    %26 = tpu.matmul %24, %25, %cst_18 {dimension_numbers = #tpu.dot_dimension_numbers<[1], [0], [0], [1], [0, 0, 1, 1], [], []>} : vector<16x256xbf16>, vector<256x128xbf16>, vector<16x128xf32> -> vector<16x128xf32>
    %c3 = arith.constant 3 : index
    %c0_19 = arith.constant 0 : index
    %27 = vector.load %arg7[%c3, %c0_19] : memref<8x640xf32, #tpu.memory_space<vmem>>, vector<1x128xf32>
    %28 = vector.broadcast %27 : vector<1x128xf32> to vector<16x128xf32>
    %29 = arith.addf %26, %28 : vector<16x128xf32>
    %cst_20 = arith.constant 0.000000e+00 : f32
    %30 = vector.broadcast %cst_20 : f32 to vector<16x128xf32>
    %31 = arith.maximumf %29, %30 : vector<16x128xf32>
    %32 = arith.truncf %31 : vector<16x128xf32> to vector<16x128xbf16>
    %c0_21 = arith.constant 0 : index
    %c0_22 = arith.constant 0 : index
    %33 = vector.load %arg6[%c0_21, %c0_22] : memref<128x128xbf16, #tpu.memory_space<vmem>>, vector<128x128xbf16>
    %cst_23 = arith.constant dense<0.000000e+00> : vector<16x128xf32>
    %34 = tpu.matmul %32, %33, %cst_23 {dimension_numbers = #tpu.dot_dimension_numbers<[1], [0], [0], [1], [0, 0, 1, 1], [], []>} : vector<16x128xbf16>, vector<128x128xbf16>, vector<16x128xf32> -> vector<16x128xf32>
    %c4 = arith.constant 4 : index
    %c0_24 = arith.constant 0 : index
    %35 = vector.load %arg7[%c4, %c0_24] : memref<8x640xf32, #tpu.memory_space<vmem>>, vector<1x128xf32>
    %36 = vector.broadcast %35 : vector<1x128xf32> to vector<16x128xf32>
    %37 = arith.addf %34, %36 : vector<16x128xf32>
    %c0_25 = arith.constant 0 : index
    %c0_26 = arith.constant 0 : index
    %38 = vector.load %arg8[%c0_25, %c0_26] : memref<16x128xf32, #tpu.memory_space<vmem>>, vector<16x128xf32>
    tpu.vector_store %arg8[%c0_25, %c0_26], %37 {strides = array<i32>} : memref<16x128xf32, #tpu.memory_space<vmem>>, vector<16x128xf32>,
    return
  }
  func.func @transform_0(%arg0: i32) -> (i32, i32) {
    %c0_i32 = arith.constant 0 : i32
    %c0_i32_0 = arith.constant 0 : i32
    return %arg0, %c0_i32 : i32, i32
  }
  func.func @transform_1(%arg0: i32) -> (i32, i32) {
    %c0_i32 = arith.constant 0 : i32
    %c0_i32_0 = arith.constant 0 : i32
    %c0_i32_1 = arith.constant 0 : i32
    return %c0_i32, %c0_i32_0 : i32, i32
  }
  func.func @transform_2(%arg0: i32) -> (i32, i32) {
    %c0_i32 = arith.constant 0 : i32
    %c0_i32_0 = arith.constant 0 : i32
    %c0_i32_1 = arith.constant 0 : i32
    return %c0_i32, %c0_i32_0 : i32, i32
  }
  func.func @transform_3(%arg0: i32) -> (i32, i32) {
    %c0_i32 = arith.constant 0 : i32
    %c0_i32_0 = arith.constant 0 : i32
    %c0_i32_1 = arith.constant 0 : i32
    return %c0_i32, %c0_i32_0 : i32, i32
  }
  func.func @transform_4(%arg0: i32) -> (i32, i32) {
    %c0_i32 = arith.constant 0 : i32
    %c0_i32_0 = arith.constant 0 : i32
    %c0_i32_1 = arith.constant 0 : i32
    return %c0_i32, %c0_i32_0 : i32, i32
  }
  func.func @transform_5(%arg0: i32) -> (i32, i32) {
    %c0_i32 = arith.constant 0 : i32
    %c0_i32_0 = arith.constant 0 : i32
    %c0_i32_1 = arith.constant 0 : i32
    return %c0_i32, %c0_i32_0 : i32, i32
  }
  func.func @transform_6(%arg0: i32) -> (i32, i32) {
    %c0_i32 = arith.constant 0 : i32
    %c0_i32_0 = arith.constant 0 : i32
    %c0_i32_1 = arith.constant 0 : i32
    return %c0_i32, %c0_i32_0 : i32, i32
  }
  func.func @transform_7(%arg0: i32) -> (i32, i32) {
    %c0_i32 = arith.constant 0 : i32
    %c0_i32_0 = arith.constant 0 : i32
    return %arg0, %c0_i32 : i32, i32
  }
}

</mosaic_0001>

<bundles_post_ra>
// kernel: net_forward.1
= control target key start
LH: loop header
LB: loop body
LE: loop exit
PB: predicated region body
PF: predicated region fallthrough
CT: control target
= control target key end

     0   :  { %12 = vsyncpa [#allocation3], 0  ;;  %s6793_s0 = inlined_call_operand.vmem [shape: bf16[16,784], index: 0, kind: input, shape index: {}]   ;;  %s6794_s1 = inlined_call_operand.hbm [shape: bf16[784,640], index: 1, kind: input, shape index: {}]   ;;  %s6795_s2 = inlined_call_operand.hbm [shape: bf16[640,384], index: 2, kind: input, shape index: {}]   ;;  %s6796_s3 = inlined_call_operand.vmem [shape: bf16[384,256], index: 3, kind: input, shape index: {}]   ;;  %s6797_s4 = inlined_call_operand.vmem [shape: bf16[256,128], index: 4, kind: input, shape index: {}]   ;;  %s6798_s5 = inlined_call_operand.vmem [shape: bf16[128,128], index: 5, kind: input, shape index: {}]   ;;  %s6799_s6 = inlined_call_operand.hbm [shape: f32[8,640], index: 6, kind: input, shape index: {}]   ;;  %s6800_s7 = inlined_call_operand.vmem [shape: f32[16,128], index: 7, kind: output, shape index: {}]  }
   0x1   :  { %13 = vsyncpa [#allocation5], 0  ;;  %s33_s26 = sshll.u32 %s6795_s2, 4  ;;  %s6174_s27 = smov [#allocation4]   ;;  %s34_s26 = int_to_ptr.hbm [resolvable:$true] %s33_s26 }
   0x2   :  { %s35_s28 = sshll.u32 %s6174_s27, 4  ;;  %s20_s8 = sshll.u32 %s6794_s1, 4  ;;  %s36_s28 = int_to_ptr.vmem [resolvable:$true] %s35_s28  ;;  %s21_s8 = int_to_ptr.hbm [resolvable:$true] %s20_s8 }
   0x3   :  { %s6175_s9 = smov 192   ;;  %s6176_s10 = smov 12  }
   0x4   :  { %41 = dma.hbm_to_vmem [thread:$0]  %s34_s26, 15360, %s36_s28, [#allocation5], %s6175_s9, %s6175_s9, %s6176_s10  }
   0x5   :  { %s6177_s11 = smov [#allocation2]   ;;  %s6178_s13 = smov 320  }
   0x6   :  { %s22_s12 = sshll.u32 %s6177_s11, 4  ;;  %s6179_s14 = smov 20   ;;  %s23_s12 = int_to_ptr.vmem [resolvable:$true] %s22_s12 }
   0x7   :  { %28 = dma.hbm_to_vmem [thread:$0]  %s21_s8, 31360, %s23_s12, [#allocation3], %s6178_s13, %s6178_s13, %s6179_s14  }
   0x8   :  { %s53_s16 = sshll.u32 %s6799_s6, 4  ;;  %s6180_s17 = smov [#allocation6]   ;;  %s54_s16 = int_to_ptr.hbm [resolvable:$true] %s53_s16 }
   0x9   :  { %s55_s18 = sshll.u32 %s6180_s17, 4  ;;  %s56_s18 = int_to_ptr.vmem [resolvable:$true] %s55_s18 }
   0xa   :  { %58 = dma.hbm_to_vmem [thread:$0]  %s54_s16, 640, %s56_s18, [#allocation5]  }
   0xb   :  { %6170 = dma.done.wait [#allocation3], 31360  }
   0xc   :  { %6171 = vsyncadd [#allocation3], 4294935936 }
   0xd   :  { %6172 = dma.done.wait [#allocation5], 16000  }
   0xe   :  { %6173 = vsyncadd [#allocation5], 4294951296  ;;  %v4036_v0 = vld [vmem:[#allocation2 + $0x118] sm:$0xf]  ;;  %v5691_v1 = vld [vmem:[#allocation2 + $0x128] sm:$0xf0] }
   0xf   :  { %v4196_v2 = vld [vmem:[#allocation2 + $0x258] sm:$0xf]  ;;  %v4037_v3 = vor.u32 %v5691_v1, %v4036_v0  ;;  %v5731_v4 = vld [vmem:[#allocation2 + $0x268] sm:$0xf0]  ;;  %v4016_v11 = vld [vmem:[#allocation2 + $0xf0] sm:$0xf] }
  0x10   :  { %v4356_v5 = vld [vmem:[#allocation2 + $0x398] sm:$0xf]  ;;  %v5771_v6 = vld [vmem:[#allocation2 + $0x3a8] sm:$0xf0]  ;;  %v4197_v7 = vor.u32 %v5731_v4, %v4196_v2  ;;  %v5686_v13 = vld [vmem:[#allocation2 + $0x100] sm:$0xf0] }
  0x11   :  { %v4357_v8 = vor.u32 %v5771_v6, %v4356_v5  ;;  %v4516_v9 = vld [vmem:[#allocation2 + $0x4d8] sm:$0xf]  ;;  %v5811_v10 = vld [vmem:[#allocation2 + $0x4e8] sm:$0xf0]  ;;  %1701 = vmatpush.bf16.msra.mxu0 %v4037_v3  ;;  %v4176_v14 = vld [vmem:[#allocation2 + $0x230] sm:$0xf]  ;;  %v4017_v16 = vor.u32 %v5686_v13, %v4016_v11 }
  0x12   :  { %v4517_v12 = vor.u32 %v5811_v10, %v4516_v9  ;;  %v5726_v15 = vld [vmem:[#allocation2 + $0x240] sm:$0xf0]  ;;  %1715 = vmatpush.bf16.msra.mxu1 %v4197_v7  ;;  %v4336_v18 = vld [vmem:[#allocation2 + $0x370] sm:$0xf]  ;;  %v3996_v23 = vld [vmem:[#allocation2 + $0xc8] sm:$0xf] }
  0x13   :  { %1729 = vmatpush.bf16.msra.mxu2 %v4357_v8  ;;  %v4177_v17 = vor.u32 %v5726_v15, %v4176_v14  ;;  %v5766_v19 = vld [vmem:[#allocation2 + $0x380] sm:$0xf0]  ;;  %v4496_v20 = vld [vmem:[#allocation2 + $0x4b0] sm:$0xf]  ;;  %v5681_v24 = vld [vmem:[#allocation2 + $0xd8] sm:$0xf0] }
  0x14   :  { %1743 = vmatpush.bf16.msra.mxu3 %v4517_v12  ;;  %v4337_v21 = vor.u32 %v5766_v19, %v4336_v18  ;;  %v5806_v22 = vld [vmem:[#allocation2 + $0x4c0] sm:$0xf0]  ;;  %v4156_v26 = vld [vmem:[#allocation2 + $0x208] sm:$0xf]  ;;  %v5721_v27 = vld [vmem:[#allocation2 + $0x218] sm:$0xf0]  ;;  %v3997_v29 = vor.u32 %v5681_v24, %v3996_v23 }
  0x15   :  { %v4497_v25 = vor.u32 %v5806_v22, %v4496_v20  ;;  %v4316_v28 = vld [vmem:[#allocation2 + $0x348] sm:$0xf]  ;;  %1702 = vmatpush.bf16.msra.mxu0 %v4017_v16  ;;  %v5761_v30 = vld [vmem:[#allocation2 + $0x358] sm:$0xf0]  ;;  %v4157_v33 = vor.u32 %v5721_v27, %v4156_v26  ;;  %v3976_v35 = vld [vmem:[#allocation2 + $0xa0] sm:$0xf] }
  0x16   :  { %v4476_v31 = vld [vmem:[#allocation2 + $0x488] sm:$0xf]  ;;  %v5801_v32 = vld [vmem:[#allocation2 + $0x498] sm:$0xf0]  ;;  %1716 = vmatpush.bf16.msra.mxu1 %v4177_v17  ;;  %v4317_v34 = vor.u32 %v5761_v30, %v4316_v28  ;;  %v5676_v36 = vld [vmem:[#allocation2 + $0xb0] sm:$0xf0] }
  0x17   :  { %1730 = vmatpush.bf16.msra.mxu2 %v4337_v21  ;;  %v4136_v37 = vld [vmem:[#allocation2 + $0x1e0] sm:$0xf]  ;;  %v4477_v38 = vor.u32 %v5801_v32, %v4476_v31  ;;  %v5716_v39 = vld [vmem:[#allocation2 + $0x1f0] sm:$0xf0]  ;;  %v3977_v44 = vor.u32 %v5676_v36, %v3976_v35  ;;  %v3956_v47 = vld [vmem:[#allocation2 + $0x78] sm:$0xf] }
  0x18   :  { %1744 = vmatpush.bf16.msra.mxu3 %v4497_v25  ;;  %v4296_v40 = vld [vmem:[#allocation2 + $0x320] sm:$0xf]  ;;  %v5756_v41 = vld [vmem:[#allocation2 + $0x330] sm:$0xf0]  ;;  %v4137_v45 = vor.u32 %v5716_v39, %v4136_v37  ;;  %v5671_v48 = vld [vmem:[#allocation2 + $0x88] sm:$0xf0] }
  0x19   :  { %v4456_v42 = vld [vmem:[#allocation2 + $0x460] sm:$0xf]  ;;  %v5796_v43 = vld [vmem:[#allocation2 + $0x470] sm:$0xf0]  ;;  %1703 = vmatpush.bf16.msra.mxu0 %v3997_v29  ;;  %v4297_v46 = vor.u32 %v5756_v41, %v4296_v40  ;;  %v4116_v49 = vld [vmem:[#allocation2 + $0x1b8] sm:$0xf]  ;;  %v3957_v56 = vor.u32 %v5671_v48, %v3956_v47 }
  0x1a   :  { %1717 = vmatpush.bf16.msra.mxu1 %v4157_v33  ;;  %v4457_v50 = vor.u32 %v5796_v43, %v4456_v42  ;;  %v5711_v51 = vld [vmem:[#allocation2 + $0x1c8] sm:$0xf0]  ;;  %v4276_v52 = vld [vmem:[#allocation2 + $0x2f8] sm:$0xf]  ;;  %v3936_v59 = vld [vmem:[#allocation2 + $0x50] sm:$0xf] }
  0x1b   :  { %1731 = vmatpush.bf16.msra.mxu2 %v4317_v34  ;;  %v5751_v53 = vld [vmem:[#allocation2 + $0x308] sm:$0xf0]  ;;  %v4436_v54 = vld [vmem:[#allocation2 + $0x438] sm:$0xf]  ;;  %v4117_v57 = vor.u32 %v5711_v51, %v4116_v49  ;;  %v5666_v60 = vld [vmem:[#allocation2 + $0x60] sm:$0xf0] }
  0x1c   :  { %1745 = vmatpush.bf16.msra.mxu3 %v4477_v38  ;;  %v5791_v55 = vld [vmem:[#allocation2 + $0x448] sm:$0xf0]  ;;  %v4277_v58 = vor.u32 %v5751_v53, %v4276_v52  ;;  %v4096_v61 = vld [vmem:[#allocation2 + $0x190] sm:$0xf]  ;;  %v5706_v63 = vld [vmem:[#allocation2 + $0x1a0] sm:$0xf0]  ;;  %v3937_v4 = vor.u32 %v5666_v60, %v3936_v59 }
  0x1d   :  { %1704 = vmatpush.bf16.msra.mxu0 %v3977_v44  ;;  %v4437_v62 = vor.u32 %v5791_v55, %v4436_v54  ;;  %v4256_v0 = vld [vmem:[#allocation2 + $0x2d0] sm:$0xf]  ;;  %v5746_v1 = vld [vmem:[#allocation2 + $0x2e0] sm:$0xf0]  ;;  %v3916_v5 = vld [vmem:[#allocation2 + $0x28] sm:$0xf]  ;;  %v4097_v6 = vor.u32 %v5706_v63, %v4096_v61 }
  0x1e   :  { %1718 = vmatpush.bf16.msra.mxu1 %v4137_v45  ;;  %v4416_v2 = vld [vmem:[#allocation2 + $0x410] sm:$0xf]  ;;  %v5786_v3 = vld [vmem:[#allocation2 + $0x420] sm:$0xf0]  ;;  %v4257_v7 = vor.u32 %v5746_v1, %v4256_v0  ;;  %v5661_v8 = vld [vmem:[#allocation2 + $0x38] sm:$0xf0] }
  0x1f   :  { %1732 = vmatpush.bf16.msra.mxu2 %v4297_v46  ;;  %v4076_v9 = vld [vmem:[#allocation2 + $0x168] sm:$0xf]  ;;  %v5701_v10 = vld [vmem:[#allocation2 + $0x178] sm:$0xf0]  ;;  %v4417_v11 = vor.u32 %v5786_v3, %v4416_v2  ;;  %v3896_v16 = vld [vmem:[#allocation2] sm:$0xf]  ;;  %v3917_v18 = vor.u32 %v5661_v8, %v3916_v5 }
  0x20   :  { %1746 = vmatpush.bf16.msra.mxu3 %v4457_v50  ;;  %v4236_v12 = vld [vmem:[#allocation2 + $0x2a8] sm:$0xf]  ;;  %v5741_v13 = vld [vmem:[#allocation2 + $0x2b8] sm:$0xf0]  ;;  %v5656_v17 = vld [vmem:[#allocation2 + $0x10] sm:$0xf0]  ;;  %v4077_v23 = vor.u32 %v5701_v10, %v4076_v9 }
  0x21   :  { %1705 = vmatpush.bf16.msra.mxu0 %v3957_v56  ;;  %v4396_v14 = vld [vmem:[#allocation2 + $0x3e8] sm:$0xf]  ;;  %v5781_v15 = vld [vmem:[#allocation2 + $0x3f8] sm:$0xf0]  ;;  %v4056_v19 = vld [vmem:[#allocation2 + $0x140] sm:$0xf]  ;;  %v4237_v24 = vor.u32 %v5741_v13, %v4236_v12  ;;  %v3897_v35 = vor.u32 %v5656_v17, %v3896_v16 }
  0x22   :  { %1719 = vmatpush.bf16.msra.mxu1 %v4117_v57  ;;  %v5696_v20 = vld [vmem:[#allocation2 + $0x150] sm:$0xf0]  ;;  %v4216_v21 = vld [vmem:[#allocation2 + $0x280] sm:$0xf]  ;;  %v4676_v27 = vld [vmem:[#allocation2 + $0x618] sm:$0xf]  ;;  %v4397_v28 = vor.u32 %v5781_v15, %v4396_v14 }
  0x23   :  { %1733 = vmatpush.bf16.msra.mxu2 %v4277_v58  ;;  %v5736_v22 = vld [vmem:[#allocation2 + $0x290] sm:$0xf0]  ;;  %v4376_v25 = vld [vmem:[#allocation2 + $0x3c0] sm:$0xf]  ;;  %v5851_v29 = vld [vmem:[#allocation2 + $0x628] sm:$0xf0]  ;;  %v4057_v39 = vor.u32 %v5696_v20, %v4056_v19 }
  0x24   :  { %1747 = vmatpush.bf16.msra.mxu3 %v4437_v62  ;;  %v5776_v26 = vld [vmem:[#allocation2 + $0x3d0] sm:$0xf0]  ;;  %v4836_v30 = vld [vmem:[#allocation2 + $0x758] sm:$0xf]  ;;  %v5891_v31 = vld [vmem:[#allocation2 + $0x768] sm:$0xf0]  ;;  %v4217_v40 = vor.u32 %v5736_v22, %v4216_v21  ;;  %v4677_v45 = vor.u32 %v5851_v29, %v4676_v27 }
  0x25   :  { %1706 = vmatpush.bf16.msra.mxu0 %v3937_v4  ;;  %v5689_v32 = vld [vmem:[#allocation2 + $0x11c] sm:$0xf]  ;;  %v4038_v33 = vld [vmem:[#allocation2 + $0x12c] sm:$0xf0]  ;;  %v4856_v34 = vld [vmem:[#allocation2 + $0x780] sm:$0xf]  ;;  %v4377_v44 = vor.u32 %v5776_v26, %v4376_v25  ;;  %v4837_v49 = vor.u32 %v5891_v31, %v4836_v30 }
  0x26   :  { %1720 = vmatpush.bf16.msra.mxu1 %v4097_v6  ;;  %v5896_v36 = vld [vmem:[#allocation2 + $0x790] sm:$0xf0]  ;;  %v3876_v37 = vld [vmem:[%s6793_s0 + $0x8] sm:$0xf]  ;;  %v5651_v38 = vld [vmem:[%s6793_s0 + $0x20] sm:$0xf0]  ;;  %v4041_v50 = vor.u32 %v5689_v32, %v4038_v33 }
  0x27   :  { %1734 = vmatpush.bf16.msra.mxu2 %v4257_v7  ;;  %v5729_v41 = vld [vmem:[#allocation2 + $0x25c] sm:$0xf]  ;;  %v4198_v42 = vld [vmem:[#allocation2 + $0x26c] sm:$0xf0]  ;;  %v5846_v46 = vld [vmem:[#allocation2 + $0x600] sm:$0xf0]  ;;  %v4857_v54 = vor.u32 %v5896_v36, %v4856_v34  ;;  %v6250_v59 = vor.u32 %v5651_v38, %v3876_v37 }
  0x28   :  { %1748 = vmatpush.bf16.msra.mxu3 %v4417_v11  ;;  %v4656_v43 = vld [vmem:[#allocation2 + $0x5f0] sm:$0xf]  ;;  %v5886_v48 = vld [vmem:[#allocation2 + $0x740] sm:$0xf0]  ;;  %v3868_v51 = vld [vmem:[%s6793_s0] sm:$0xf]  ;;  %v4201_v62 = vor.u32 %v5729_v41, %v4198_v42 }
  0x29   :  { %1707 = vmatpush.bf16.msra.mxu0 %v3917_v18  ;;  %v4816_v47 = vld [vmem:[#allocation2 + $0x730] sm:$0xf]  ;;  %v5650_v52 = vld [vmem:[%s6793_s0 + $0x18] sm:$0xf0]  ;;  %v5648_v53 = vld [vmem:[%s6793_s0 + $0xc] sm:$0xf]  ;;  %v4657_v63 = vor.u32 %v5846_v46, %v4656_v43 }
  0x2a   :  { %1721 = vmatpush.bf16.msra.mxu1 %v4077_v23  ;;  %v5684_v55 = vld [vmem:[#allocation2 + $0xf4] sm:$0xf]  ;;  %v4018_v56 = vld [vmem:[#allocation2 + $0x104] sm:$0xf0]  ;;  %v6245_v57 = vor.u32 %v5650_v52, %v3868_v51  ;;  %v5841_v2 = vld [vmem:[#allocation2 + $0x5d8] sm:$0xf0]  ;;  %v4817_v3 = vor.u32 %v5886_v48, %v4816_v47 }
  0x2b   :  { %1735 = vmatpush.bf16.msra.mxu2 %v4237_v24  ;;  %v3878_v58 = vld [vmem:[%s6793_s0 + $0x24] sm:$0xf0]  ;;  %v5724_v60 = vld [vmem:[#allocation2 + $0x234] sm:$0xf]  ;;  %v4021_v4 = vor.u32 %v5684_v55, %v4018_v56  ;;  %v5647_v6 = vld [vmem:[%s6793_s0 + $0x4] sm:$0xf] }
  0x2c   :  { %1749 = vmatpush.bf16.msra.mxu3 %v4397_v28  ;;  %v6252_v61 = vor.u32 %v5648_v53, %v3878_v58  ;;  %v4178_v0 = vld [vmem:[#allocation2 + $0x244] sm:$0xf0]  ;;  %v3870_v7 = vld [vmem:[%s6793_s0 + $0x1c] sm:$0xf0]  ;;  %v5881_v8 = vld [vmem:[#allocation2 + $0x718] sm:$0xf0] }
  0x2d   :  { %1708 = vmatpush.bf16.msra.mxu0 %v3897_v35  ;;  %v4636_v1 = vld [vmem:[#allocation2 + $0x5c8] sm:$0xf]  ;;  %v5679_v9 = vld [vmem:[#allocation2 + $0xcc] sm:$0xf]  ;;  %v3998_v10 = vld [vmem:[#allocation2 + $0xdc] sm:$0xf0]  ;;  %v6261_v11 = vor.u32 %v5647_v6, %v3870_v7  ;;  %v4181_v12 = vor.u32 %v5724_v60, %v4178_v0 }
  0x2e   :  { %1722 = vmatpush.bf16.msra.mxu1 %v4057_v39  ;;  %v4796_v5 = vld [vmem:[#allocation2 + $0x708] sm:$0xf]  ;;  %v4637_v13 = vor.u32 %v5841_v2, %v4636_v1  ;;  %v5719_v14 = vld [vmem:[#allocation2 + $0x20c] sm:$0xf]  ;;  %v4158_v15 = vld [vmem:[#allocation2 + $0x21c] sm:$0xf0]  ;;  %v4001_v17 = vor.u32 %v5679_v9, %v3998_v10 }
  0x2f   :  { %1736 = vmatpush.bf16.msra.mxu2 %v4217_v40  ;;  %v4797_v16 = vor.u32 %v5881_v8, %v4796_v5  ;;  %v4616_v18 = vld [vmem:[#allocation2 + $0x5a0] sm:$0xf]  ;;  %v5836_v19 = vld [vmem:[#allocation2 + $0x5b0] sm:$0xf0]  ;;  %v5674_v22 = vld [vmem:[#allocation2 + $0xa4] sm:$0xf]  ;;  %v4161_v24 = vor.u32 %v5719_v14, %v4158_v15 }
  0x30   :  { %1750 = vmatpush.bf16.msra.mxu3 %v4377_v44  ;;  %1709 = vmatmul.bf16.vlgmr.msra.gmra.mxu0 %v6245_v57  ;;  %v4776_v20 = vld [vmem:[#allocation2 + $0x6e0] sm:$0xf]  ;;  %v5876_v21 = vld [vmem:[#allocation2 + $0x6f0] sm:$0xf0]  ;;  %v3978_v23 = vld [vmem:[#allocation2 + $0xb4] sm:$0xf0]  ;;  %v4617_v25 = vor.u32 %v5836_v19, %v4616_v18 }
  0x31   :  { %1757 = vmatpush.bf16.msrb.mxu0 %v4677_v45  ;;  %1723 = vmatmul.bf16.vlgmr.msra.gmra.mxu1 %v6261_v11  ;;  %v5714_v26 = vld [vmem:[#allocation2 + $0x1e4] sm:$0xf]  ;;  %v4138_v27 = vld [vmem:[#allocation2 + $0x1f4] sm:$0xf0]  ;;  %v4777_v28 = vor.u32 %v5876_v21, %v4776_v20  ;;  %v3981_v29 = vor.u32 %v5674_v22, %v3978_v23  ;;  %v5831_v31 = vld [vmem:[#allocation2 + $0x588] sm:$0xf0] }
  0x32   :  { %1771 = vmatpush.bf16.msrb.mxu1 %v4837_v49  ;;  %1737 = vmatmul.bf16.vlgmr.msra.gmra.mxu2 %v6250_v59  ;;  %v4596_v30 = vld [vmem:[#allocation2 + $0x578] sm:$0xf]  ;;  %v5871_v33 = vld [vmem:[#allocation2 + $0x6c8] sm:$0xf0]  ;;  %v5669_v34 = vld [vmem:[#allocation2 + $0x7c] sm:$0xf]  ;;  %v4141_v37 = vor.u32 %v5714_v26, %v4138_v27 }
  0x33   :  { %1792 = vmatpush.bf16.msrb.mxu2 %v4857_v54  ;;  %1751 = vmatmul.bf16.vlgmr.msra.gmra.mxu3 %v6252_v61  ;;  %v4756_v32 = vld [vmem:[#allocation2 + $0x6b8] sm:$0xf]  ;;  %v3958_v35 = vld [vmem:[#allocation2 + $0x8c] sm:$0xf0]  ;;  %v5709_v36 = vld [vmem:[#allocation2 + $0x1bc] sm:$0xf]  ;;  %v4597_v38 = vor.u32 %v5831_v31, %v4596_v30 }
  0x34   :  { %1799 = vmatpush.bf16.msrb.mxu3 %v4041_v50  ;;  %v4118_v39 = vld [vmem:[#allocation2 + $0x1cc] sm:$0xf0]  ;;  %v3892_v40 = vld [vmem:[%s6793_s0 + $0x18] sm:$0xf]  ;;  %v5653_v41 = vld [vmem:[%s6793_s0 + $0x30] sm:$0xf0]  ;;  %v4757_v42 = vor.u32 %v5871_v33, %v4756_v32  ;;  %v3961_v43 = vor.u32 %v5669_v34, %v3958_v35 }
  0x35   :  { %1758 = vmatpush.bf16.msrb.mxu0 %v4657_v63  ;;  %v4576_v44 = vld [vmem:[#allocation2 + $0x550] sm:$0xf]  ;;  %v5826_v45 = vld [vmem:[#allocation2 + $0x560] sm:$0xf0]  ;;  %v5664_v48 = vld [vmem:[#allocation2 + $0x54] sm:$0xf]  ;;  %v6272_v50 = vor.u32 %v5653_v41, %v3892_v40  ;;  %v4121_v51 = vor.u32 %v5709_v36, %v4118_v39 }
  0x36   :  { %1772 = vmatpush.bf16.msrb.mxu1 %v4817_v3  ;;  %v4736_v46 = vld [vmem:[#allocation2 + $0x690] sm:$0xf]  ;;  %v5866_v47 = vld [vmem:[#allocation2 + $0x6a0] sm:$0xf0]  ;;  %v3938_v49 = vld [vmem:[#allocation2 + $0x64] sm:$0xf0]  ;;  %v4577_v52 = vor.u32 %v5826_v45, %v4576_v44 }
  0x37   :  { %1813 = vmatpush.bf16.msra.mxu2 %v4201_v62  ;;  %v5704_v53 = vld [vmem:[#allocation2 + $0x194] sm:$0xf]  ;;  %v4098_v54 = vld [vmem:[#allocation2 + $0x1a4] sm:$0xf0]  ;;  %vm1697_vm0 = vcmask 130048   ;;  %v4737_v55 = vor.u32 %v5866_v47, %v4736_v46  ;;  %v3941_v56 = vor.u32 %v5664_v48, %v3938_v49 }
  0x38   :  { %1800 = vmatpush.bf16.msrb.mxu3 %v4021_v4  ;;  %v4556_v58 = vld [vmem:[#allocation2 + $0x528] sm:$0xf]  ;;  %v5821_v60 = vld [vmem:[#allocation2 + $0x538] sm:$0xf0]  ;;  %v5659_v0 = vld [vmem:[#allocation2 + $0x2c] sm:$0xf]  ;;  %v4101_v4 = vor.u32 %v5704_v53, %v4098_v54 }
  0x39   :  { %1759 = vmatpush.bf16.msrb.mxu0 %v4637_v13  ;;  %v4716_v62 = vld [vmem:[#allocation2 + $0x668] sm:$0xf]  ;;  %v5861_v63 = vld [vmem:[#allocation2 + $0x678] sm:$0xf0]  ;;  %v3918_v1 = vld [vmem:[#allocation2 + $0x3c] sm:$0xf0]  ;;  %v4557_v5 = vor.u32 %v5821_v60, %v4556_v58 }
  0x3a   :  { %1773 = vmatpush.bf16.msrb.mxu1 %v4797_v16  ;;  %v5699_v2 = vld [vmem:[#allocation2 + $0x16c] sm:$0xf]  ;;  %v4078_v3 = vld [vmem:[#allocation2 + $0x17c] sm:$0xf0]  ;;  %v5816_v7 = vld [vmem:[#allocation2 + $0x510] sm:$0xf0]  ;;  %v4717_v9 = vor.u32 %v5861_v63, %v4716_v62  ;;  %v3921_v10 = vor.u32 %v5659_v0, %v3918_v1 }
  0x3b   :  { %1814 = vmatpush.bf16.msra.mxu2 %v4181_v12  ;;  %v4536_v6 = vld [vmem:[#allocation2 + $0x500] sm:$0xf]  ;;  %v5856_v12 = vld [vmem:[#allocation2 + $0x650] sm:$0xf0]  ;;  %v5654_v13 = vld [vmem:[#allocation2 + $0x4] sm:$0xf]  ;;  %v4081_v21 = vor.u32 %v5699_v2, %v4078_v3 }
  0x3c   :  { %1801 = vmatpush.bf16.msrb.mxu3 %v4001_v17  ;;  %v4696_v8 = vld [vmem:[#allocation2 + $0x640] sm:$0xf]  ;;  %v3898_v14 = vld [vmem:[#allocation2 + $0x14] sm:$0xf0]  ;;  %v5769_v15 = vld [vmem:[#allocation2 + $0x39c] sm:$0xf]  ;;  %v4537_v22 = vor.u32 %v5816_v7, %v4536_v6 }
  0x3d   :  { %1760 = vmatpush.bf16.msrb.mxu0 %v4617_v25  ;;  %v4358_v16 = vld [vmem:[#allocation2 + $0x3ac] sm:$0xf0]  ;;  %v5809_v17 = vld [vmem:[#allocation2 + $0x4dc] sm:$0xf]  ;;  %v5694_v25 = vld [vmem:[#allocation2 + $0x144] sm:$0xf]  ;;  %v4697_v26 = vor.u32 %v5856_v12, %v4696_v8  ;;  %v3901_v27 = vor.u32 %v5654_v13, %v3898_v14 }
  0x3e   :  { %1774 = vmatpush.bf16.msrb.mxu1 %v4777_v28  ;;  %v4518_v18 = vld [vmem:[#allocation2 + $0x4ec] sm:$0xf0]  ;;  %v5849_v19 = vld [vmem:[#allocation2 + $0x61c] sm:$0xf]  ;;  %v4058_v28 = vld [vmem:[#allocation2 + $0x154] sm:$0xf0]  ;;  %v4361_v31 = vor.u32 %v5769_v15, %v4358_v16 }
  0x3f   :  { %1815 = vmatpush.bf16.msra.mxu2 %v4161_v24  ;;  %v4678_v20 = vld [vmem:[#allocation2 + $0x62c] sm:$0xf0]  ;;  %v5652_v24 = vld [vmem:[%s6793_s0 + $0x28] sm:$0xf0]  ;;  %v4521_v32 = vor.u32 %v5809_v17, %v4518_v18  ;;  %v5889_v33 = vld [vmem:[#allocation2 + $0x75c] sm:$0xf]  ;;  %v4061_v41 = vor.u32 %v5694_v25, %v4058_v28 }
  0x40   :  { %1802 = vmatpush.bf16.msrb.mxu3 %v3981_v29  ;;  %v3884_v23 = vld [vmem:[%s6793_s0 + $0x10] sm:$0xf]  ;;  %v5649_v29 = vld [vmem:[%s6793_s0 + $0x14] sm:$0xf]  ;;  %v4681_v36 = vor.u32 %v5849_v19, %v4678_v20  ;;  %v4498_v40 = vld [vmem:[#allocation2 + $0x4c4] sm:$0xf0] }
  0x41   :  { %1761 = vmatpush.bf16.msrb.mxu0 %v4597_v38  ;;  %v3886_v30 = vld [vmem:[%s6793_s0 + $0x2c] sm:$0xf0]  ;;  %v5764_v35 = vld [vmem:[#allocation2 + $0x374] sm:$0xf]  ;;  %v4338_v38 = vld [vmem:[#allocation2 + $0x384] sm:$0xf0] }
  0x42   :  { %1775 = vmatpush.bf16.msrb.mxu1 %v4757_v42  ;;  %4874 = vmatmul.msk.bf16.vlgmr.msrb.gmra.mxu2 %vm1697_vm0, %v6272_v50  ;;  %v4838_v34 = vld [vmem:[#allocation2 + $0x76c] sm:$0xf0]  ;;  %v5804_v39 = vld [vmem:[#allocation2 + $0x4b4] sm:$0xf]  ;;  %v6290_v42 = vor.u32 %v5649_v29, %v3886_v30  ;;  %v4658_v44 = vld [vmem:[#allocation2 + $0x604] sm:$0xf0]  ;;  %v4341_v46 = vor.u32 %v5764_v35, %v4338_v38 }
  0x43   :  { %1816 = vmatpush.bf16.msra.mxu2 %v4141_v37  ;;  %v6288_v37 = vor.u32 %v5652_v24, %v3884_v23  ;;  %v4841_v45 = vor.u32 %v5889_v33, %v4838_v34  ;;  %v4501_v47 = vor.u32 %v5804_v39, %v4498_v40  ;;  %v5884_v48 = vld [vmem:[#allocation2 + $0x734] sm:$0xf]  ;;  %v4818_v49 = vld [vmem:[#allocation2 + $0x744] sm:$0xf0]  ;;  %v4318_v53 = vld [vmem:[#allocation2 + $0x35c] sm:$0xf0] }
  0x44   :  { %1803 = vmatpush.bf16.msrb.mxu3 %v3961_v43  ;;  %v5844_v43 = vld [vmem:[#allocation2 + $0x5f4] sm:$0xf]  ;;  %v5799_v54 = vld [vmem:[#allocation2 + $0x48c] sm:$0xf]  ;;  %v4638_v58 = vld [vmem:[#allocation2 + $0x5dc] sm:$0xf0]  ;;  %v4821_v60 = vor.u32 %v5884_v48, %v4818_v49 }
  0x45   :  { %1762 = vmatpush.bf16.msrb.mxu0 %v4577_v52  ;;  %v4661_v52 = vor.u32 %v5844_v43, %v4658_v44  ;;  %v5879_v0 = vld [vmem:[#allocation2 + $0x70c] sm:$0xf]  ;;  %v4798_v1 = vld [vmem:[#allocation2 + $0x71c] sm:$0xf0]  ;;  %v5754_v2 = vld [vmem:[#allocation2 + $0x324] sm:$0xf] }
  0x46   :  { %1776 = vmatpush.bf16.msrb.mxu1 %v4737_v55  ;;  %v4478_v55 = vld [vmem:[#allocation2 + $0x49c] sm:$0xf0]  ;;  %v4458_v6 = vld [vmem:[#allocation2 + $0x474] sm:$0xf0]  ;;  %v5834_v7 = vld [vmem:[#allocation2 + $0x5a4] sm:$0xf] }
  0x47   :  { %1817 = vmatpush.bf16.msra.mxu2 %v4121_v51  ;;  %v5759_v51 = vld [vmem:[#allocation2 + $0x34c] sm:$0xf]  ;;  %v4481_v63 = vor.u32 %v5799_v54, %v4478_v55  ;;  %v4618_v8 = vld [vmem:[#allocation2 + $0x5b4] sm:$0xf0]  ;;  %v5874_v13 = vld [vmem:[#allocation2 + $0x6e4] sm:$0xf] }
  0x48   :  { %1804 = vmatpush.bf16.msrb.mxu3 %v3941_v56  ;;  %v5839_v56 = vld [vmem:[#allocation2 + $0x5cc] sm:$0xf]  ;;  %v4321_v62 = vor.u32 %v5759_v51, %v4318_v53  ;;  %v4778_v14 = vld [vmem:[#allocation2 + $0x6f4] sm:$0xf0]  ;;  %v5749_v15 = vld [vmem:[#allocation2 + $0x2fc] sm:$0xf]  ;;  %v4621_v16 = vor.u32 %v5834_v7, %v4618_v8 }
  0x49   :  { %1763 = vmatpush.bf16.msrb.mxu0 %v4557_v5  ;;  %v4641_v3 = vor.u32 %v5839_v56, %v4638_v58  ;;  %v5794_v5 = vld [vmem:[#allocation2 + $0x464] sm:$0xf]  ;;  %v4278_v17 = vld [vmem:[#allocation2 + $0x30c] sm:$0xf0]  ;;  %v5789_v18 = vld [vmem:[#allocation2 + $0x43c] sm:$0xf] }
  0x4a   :  { %1777 = vmatpush.bf16.msrb.mxu1 %v4717_v9  ;;  %v4801_v9 = vor.u32 %v5879_v0, %v4798_v1  ;;  %v4461_v12 = vor.u32 %v5794_v5, %v4458_v6  ;;  %v4438_v19 = vld [vmem:[#allocation2 + $0x44c] sm:$0xf0]  ;;  %v5829_v20 = vld [vmem:[#allocation2 + $0x57c] sm:$0xf]  ;;  %v4281_v23 = vor.u32 %v5749_v15, %v4278_v17  ;;  %v4258_v29 = vld [vmem:[#allocation2 + $0x2e4] sm:$0xf0] }
  0x4b   :  { %1818 = vmatpush.bf16.msra.mxu2 %v4101_v4  ;;  %v4298_v4 = vld [vmem:[#allocation2 + $0x334] sm:$0xf0]  ;;  %v4441_v24 = vor.u32 %v5789_v18, %v4438_v19  ;;  %v5869_v25 = vld [vmem:[#allocation2 + $0x6bc] sm:$0xf]  ;;  %v5784_v30 = vld [vmem:[#allocation2 + $0x414] sm:$0xf] }
  0x4c   :  { %1805 = vmatpush.bf16.msrb.mxu3 %v3921_v10  ;;  %v4301_v10 = vor.u32 %v5754_v2, %v4298_v4  ;;  %v4578_v33 = vld [vmem:[#allocation2 + $0x564] sm:$0xf0]  ;;  %v5864_v38 = vld [vmem:[#allocation2 + $0x694] sm:$0xf]  ;;  %v5739_v40 = vld [vmem:[#allocation2 + $0x2ac] sm:$0xf] }
  0x4d   :  { %1764 = vmatpush.bf16.msrb.mxu0 %v4537_v22  ;;  %v4781_v22 = vor.u32 %v5874_v13, %v4778_v14  ;;  %v4738_v39 = vld [vmem:[#allocation2 + $0x6a4] sm:$0xf0]  ;;  %v4238_v43 = vld [vmem:[#allocation2 + $0x2bc] sm:$0xf0]  ;;  %v5779_v44 = vld [vmem:[#allocation2 + $0x3ec] sm:$0xf] }
  0x4e   :  { %1778 = vmatpush.bf16.msrb.mxu1 %v4697_v26  ;;  %v4758_v26 = vld [vmem:[#allocation2 + $0x6cc] sm:$0xf0]  ;;  %v4741_v48 = vor.u32 %v5864_v38, %v4738_v39  ;;  %v5859_v49 = vld [vmem:[#allocation2 + $0x66c] sm:$0xf]  ;;  %v4718_v51 = vld [vmem:[#allocation2 + $0x67c] sm:$0xf0] }
  0x4f   :  { %1819 = vmatpush.bf16.msra.mxu2 %v4081_v21  ;;  %v4598_v21 = vld [vmem:[#allocation2 + $0x58c] sm:$0xf0]  ;;  %v4761_v34 = vor.u32 %v5869_v25, %v4758_v26  ;;  %v5734_v54 = vld [vmem:[#allocation2 + $0x284] sm:$0xf]  ;;  %v4218_v55 = vld [vmem:[#allocation2 + $0x294] sm:$0xf0] }
  0x50   :  { %1806 = vmatpush.bf16.msrb.mxu3 %v3901_v27  ;;  %1765 = vmatmul.bf16.vlgmr.msrb.gmra.mxu0 %v6288_v37  ;;  %v5744_v27 = vld [vmem:[#allocation2 + $0x2d4] sm:$0xf]  ;;  %v4601_v28 = vor.u32 %v5829_v20, %v4598_v21  ;;  %v5774_v56 = vld [vmem:[#allocation2 + $0x3c4] sm:$0xf]  ;;  %v4044_v0 = vld [vmem:[#allocation2 + $0x120] sm:$0xf]  ;;  %v4221_v7 = vor.u32 %v5734_v54, %v4218_v55 }
  0x51   :  { %1827 = vmatpush.bf16.msra.mxu0 %v4361_v31  ;;  %1779 = vmatmul.bf16.vlgmr.msrb.gmra.mxu1 %v6290_v42  ;;  %v4418_v31 = vld [vmem:[#allocation2 + $0x424] sm:$0xf0]  ;;  %v4261_v35 = vor.u32 %v5744_v27, %v4258_v29  ;;  %v5692_v1 = vld [vmem:[#allocation2 + $0x130] sm:$0xf0]  ;;  %v4204_v2 = vld [vmem:[#allocation2 + $0x260] sm:$0xf] }
  0x52   :  { %1841 = vmatpush.bf16.msra.mxu1 %v4521_v32  ;;  %v5824_v32 = vld [vmem:[#allocation2 + $0x554] sm:$0xf]  ;;  %v5894_v5 = vld [vmem:[#allocation2 + $0x784] sm:$0xf]  ;;  %v4858_v6 = vld [vmem:[#allocation2 + $0x794] sm:$0xf0]  ;;  %v4045_v13 = vor.u32 %v5692_v1, %v4044_v0 }
  0x53   :  { %1820 = vmatpush.bf16.msra.mxu2 %v4061_v41  ;;  %1807 = vmatmul.bf16.vlgmr.msrb.gmra.mxu3 %v6245_v57  ;;  %v4581_v41 = vor.u32 %v5824_v32, %v4578_v33  ;;  %v5732_v4 = vld [vmem:[#allocation2 + $0x270] sm:$0xf0]  ;;  %v4364_v14 = vld [vmem:[#allocation2 + $0x3a0] sm:$0xf]  ;;  %v4861_v17 = vor.u32 %v5894_v5, %v4858_v6  ;;  %v4024_v20 = vld [vmem:[#allocation2 + $0xf8] sm:$0xf] }
  0x54   :  { %1855 = vmatpush.bf16.msra.mxu3 %v4681_v36  ;;  %v4421_v36 = vor.u32 %v5784_v30, %v4418_v31  ;;  %v5772_v15 = vld [vmem:[#allocation2 + $0x3b0] sm:$0xf0]  ;;  %v4524_v18 = vld [vmem:[#allocation2 + $0x4e0] sm:$0xf]  ;;  %v4344_v27 = vld [vmem:[#allocation2 + $0x378] sm:$0xf] }
  0x55   :  { %1828 = vmatpush.bf16.msra.mxu0 %v4341_v46  ;;  %v5819_v46 = vld [vmem:[#allocation2 + $0x52c] sm:$0xf]  ;;  %v5812_v19 = vld [vmem:[#allocation2 + $0x4f0] sm:$0xf0]  ;;  %v4365_v25 = vor.u32 %v5772_v15, %v4364_v14  ;;  %v4504_v31 = vld [vmem:[#allocation2 + $0x4b8] sm:$0xf] }
  0x56   :  { %1842 = vmatpush.bf16.msra.mxu1 %v4501_v47  ;;  %1821 = vmatmul.bf16.vlgmr.msra.gmra.mxu2 %v6261_v11  ;;  %v4558_v47 = vld [vmem:[#allocation2 + $0x53c] sm:$0xf0]  ;;  %v4525_v26 = vor.u32 %v5812_v19, %v4524_v18  ;;  %v5807_v32 = vld [vmem:[#allocation2 + $0x4c8] sm:$0xf0]  ;;  %v4004_v33 = vld [vmem:[#allocation2 + $0xd0] sm:$0xf] }
  0x57   :  { %1869 = vmatpush.bf16.msrb.mxu2 %v4841_v45  ;;  %v4398_v45 = vld [vmem:[#allocation2 + $0x3fc] sm:$0xf0]  ;;  %v4561_v58 = vor.u32 %v5819_v46, %v4558_v47  ;;  %v4505_v39 = vor.u32 %v5807_v32, %v4504_v31  ;;  %v5802_v46 = vld [vmem:[#allocation2 + $0x4a0] sm:$0xf0]  ;;  %v3984_v47 = vld [vmem:[#allocation2 + $0xa8] sm:$0xf] }
  0x58   :  { %1856 = vmatpush.bf16.msra.mxu3 %v4661_v52  ;;  %v4241_v52 = vor.u32 %v5739_v40, %v4238_v43  ;;  %v4401_v53 = vor.u32 %v5779_v44, %v4398_v45  ;;  %v4324_v40 = vld [vmem:[#allocation2 + $0x350] sm:$0xf]  ;;  %v4304_v54 = vld [vmem:[#allocation2 + $0x328] sm:$0xf]  ;;  %v5757_v55 = vld [vmem:[#allocation2 + $0x338] sm:$0xf0] }
  0x59   :  { %1829 = vmatpush.bf16.msra.mxu0 %v4321_v62  ;;  %v5814_v62 = vld [vmem:[#allocation2 + $0x504] sm:$0xf]  ;;  %v4484_v45 = vld [vmem:[#allocation2 + $0x490] sm:$0xf]  ;;  %v5672_v0 = vld [vmem:[#allocation2 + $0x90] sm:$0xf0] }
  0x5a   :  { %1843 = vmatpush.bf16.msra.mxu1 %v4481_v63  ;;  %v4538_v63 = vld [vmem:[#allocation2 + $0x514] sm:$0xf0]  ;;  %v4124_v1 = vld [vmem:[#allocation2 + $0x1c0] sm:$0xf]  ;;  %v5752_v6 = vld [vmem:[#allocation2 + $0x310] sm:$0xf0] }
  0x5b   :  { %1870 = vmatpush.bf16.msrb.mxu2 %v4821_v60  ;;  %v4378_v60 = vld [vmem:[#allocation2 + $0x3d4] sm:$0xf0]  ;;  %v4284_v5 = vld [vmem:[#allocation2 + $0x300] sm:$0xf]  ;;  %v5707_v15 = vld [vmem:[#allocation2 + $0x1a8] sm:$0xf0] }
  0x5c   :  { %1857 = vmatpush.bf16.msra.mxu3 %v4641_v3  ;;  %v4721_v3 = vor.u32 %v5859_v49, %v4718_v51  ;;  %v4381_v8 = vor.u32 %v5774_v56, %v4378_v60  ;;  %v4144_v49 = vld [vmem:[#allocation2 + $0x1e8] sm:$0xf]  ;;  %v5717_v51 = vld [vmem:[#allocation2 + $0x1f8] sm:$0xf0]  ;;  %v4104_v14 = vld [vmem:[#allocation2 + $0x198] sm:$0xf] }
  0x5d   :  { %1830 = vmatpush.bf16.msra.mxu0 %v4301_v10  ;;  %v4698_v10 = vld [vmem:[#allocation2 + $0x654] sm:$0xf0]  ;;  %v4464_v60 = vld [vmem:[#allocation2 + $0x468] sm:$0xf]  ;;  %v5747_v19 = vld [vmem:[#allocation2 + $0x2e8] sm:$0xf0] }
  0x5e   :  { %1844 = vmatpush.bf16.msra.mxu1 %v4461_v12  ;;  %v4541_v12 = vor.u32 %v5814_v62, %v4538_v63  ;;  %v5797_v62 = vld [vmem:[#allocation2 + $0x478] sm:$0xf0]  ;;  %v3964_v63 = vld [vmem:[#allocation2 + $0x80] sm:$0xf]  ;;  %v4264_v18 = vld [vmem:[#allocation2 + $0x2d8] sm:$0xf] }
  0x5f   :  { %1871 = vmatpush.bf16.msrb.mxu2 %v4801_v9  ;;  %v5854_v9 = vld [vmem:[#allocation2 + $0x644] sm:$0xf]  ;;  %v4404_v32 = vld [vmem:[#allocation2 + $0x3f0] sm:$0xf] }
  0x60   :  { %1858 = vmatpush.bf16.msra.mxu3 %v4621_v16  ;;  %v4205_v16 = vor.u32 %v5732_v4, %v4204_v2  ;;  %v4701_v21 = vor.u32 %v5854_v9, %v4698_v10  ;;  %v5712_v2 = vld [vmem:[#allocation2 + $0x1d0] sm:$0xf0]  ;;  %v4465_v4 = vor.u32 %v5797_v62, %v4464_v60  ;;  %v4444_v9 = vld [vmem:[#allocation2 + $0x440] sm:$0xf]  ;;  %v5742_v31 = vld [vmem:[#allocation2 + $0x2c0] sm:$0xf0] }
  0x61   :  { %1831 = vmatpush.bf16.msra.mxu0 %v4281_v23  ;;  %v4184_v23 = vld [vmem:[#allocation2 + $0x238] sm:$0xf]  ;;  %v5792_v10 = vld [vmem:[#allocation2 + $0x450] sm:$0xf0]  ;;  %v5690_v62 = vld [vmem:[#allocation2 + $0x124] sm:$0xf] }
  0x62   :  { %1845 = vmatpush.bf16.msra.mxu1 %v4441_v24  ;;  %v5727_v24 = vld [vmem:[#allocation2 + $0x248] sm:$0xf0] }
  0x63   :  { %1872 = vmatpush.bf16.msrb.mxu2 %v4781_v22  ;;  %v5687_v22 = vld [vmem:[#allocation2 + $0x108] sm:$0xf0]  ;;  %v4185_v30 = vor.u32 %v5727_v24, %v4184_v23  ;;  %v3924_v24 = vld [vmem:[#allocation2 + $0x30] sm:$0xf] }
  0x64   :  { %1859 = vmatpush.bf16.msra.mxu3 %v4601_v28  ;;  %v5767_v28 = vld [vmem:[#allocation2 + $0x388] sm:$0xf0]  ;;  %v4025_v29 = vor.u32 %v5687_v22, %v4024_v20  ;;  %v4424_v22 = vld [vmem:[#allocation2 + $0x418] sm:$0xf] }
  0x65   :  { %1832 = vmatpush.bf16.msra.mxu0 %v4261_v35  ;;  %v4164_v35 = vld [vmem:[#allocation2 + $0x210] sm:$0xf]  ;;  %v4345_v38 = vor.u32 %v5767_v28, %v4344_v27  ;;  %v5787_v23 = vld [vmem:[#allocation2 + $0x428] sm:$0xf0]  ;;  %v5702_v27 = vld [vmem:[#allocation2 + $0x180] sm:$0xf0]  ;;  %v4265_v28 = vor.u32 %v5747_v19, %v4264_v18 }
  0x66   :  { %1846 = vmatpush.bf16.msra.mxu1 %v4421_v36  ;;  %v5722_v36 = vld [vmem:[#allocation2 + $0x220] sm:$0xf0] }
  0x67   :  { %1873 = vmatpush.bf16.msrb.mxu2 %v4761_v34  ;;  %v5682_v34 = vld [vmem:[#allocation2 + $0xe0] sm:$0xf0]  ;;  %v4165_v44 = vor.u32 %v5722_v36, %v4164_v35  ;;  %v3904_v36 = vld [vmem:[#allocation2 + $0x8] sm:$0xf] }
  0x68   :  { %1860 = vmatpush.bf16.msra.mxu3 %v4581_v41  ;;  %v5762_v41 = vld [vmem:[#allocation2 + $0x360] sm:$0xf0]  ;;  %v4005_v43 = vor.u32 %v5682_v34, %v4004_v33 }
  0x69   :  { %1833 = vmatpush.bf16.msra.mxu0 %v4241_v52  ;;  %v4325_v52 = vor.u32 %v5762_v41, %v4324_v40  ;;  %v5782_v35 = vld [vmem:[#allocation2 + $0x400] sm:$0xf0]  ;;  %v5697_v40 = vld [vmem:[#allocation2 + $0x158] sm:$0xf0]  ;;  %v4684_v41 = vld [vmem:[#allocation2 + $0x620] sm:$0xf] }
  0x6a   :  { %1847 = vmatpush.bf16.msra.mxu1 %v4401_v53  ;;  %v4485_v53 = vor.u32 %v5802_v46, %v4484_v45  ;;  %v4844_v45 = vld [vmem:[#allocation2 + $0x760] sm:$0xf]  ;;  %v5892_v46 = vld [vmem:[#allocation2 + $0x770] sm:$0xf0]  ;;  %v5882_v18 = vld [vmem:[#allocation2 + $0x720] sm:$0xf0] }
  0x6b   :  { %1874 = vmatpush.bf16.msrb.mxu2 %v4741_v48  ;;  %v5677_v48 = vld [vmem:[#allocation2 + $0xb8] sm:$0xf0]  ;;  %v4845_v60 = vor.u32 %v5892_v46, %v4844_v45 }
  0x6c   :  { %1861 = vmatpush.bf16.msra.mxu3 %v4561_v58  ;;  %v3985_v56 = vor.u32 %v5677_v48, %v3984_v47  ;;  %v4145_v58 = vor.u32 %v5717_v51, %v4144_v49  ;;  %v4405_v47 = vor.u32 %v5782_v35, %v4404_v32  ;;  %v4224_v48 = vld [vmem:[#allocation2 + $0x288] sm:$0xf]  ;;  %v5737_v49 = vld [vmem:[#allocation2 + $0x298] sm:$0xf0] }
  0x6d   :  { %1834 = vmatpush.bf16.msra.mxu0 %v4221_v7  ;;  %v3965_v7 = vor.u32 %v5672_v0, %v3964_v63  ;;  %v4384_v51 = vld [vmem:[#allocation2 + $0x3c8] sm:$0xf]  ;;  %v4046_v63 = vld [vmem:[#allocation2 + $0x134] sm:$0xf0] }
  0x6e   :  { %1848 = vmatpush.bf16.msra.mxu1 %v4381_v8  ;;  %v4125_v8 = vor.u32 %v5712_v2, %v4124_v1  ;;  %v4664_v0 = vld [vmem:[#allocation2 + $0x5f8] sm:$0xf]  ;;  %v4225_v1 = vor.u32 %v5737_v49, %v4224_v48  ;;  %v5847_v2 = vld [vmem:[#allocation2 + $0x608] sm:$0xf0]  ;;  %v4146_v48 = vld [vmem:[#allocation2 + $0x1fc] sm:$0xf0] }
  0x6f   :  { %1875 = vmatpush.bf16.msrb.mxu2 %v4721_v3  ;;  %v4305_v3 = vor.u32 %v5757_v55, %v4304_v54  ;;  %v5777_v54 = vld [vmem:[#allocation2 + $0x3d8] sm:$0xf0]  ;;  %v4864_v55 = vld [vmem:[#allocation2 + $0x788] sm:$0xf] }
  0x70   :  { %1862 = vmatpush.bf16.msra.mxu3 %v4541_v12  ;;  %1835 = vmatmul.bf16.vlgmr.msra.gmra.mxu0 %v6250_v59  ;;  %v3944_v12 = vld [vmem:[#allocation2 + $0x58] sm:$0xf] }
  0x71   :  { %1890 = vmatpush.bf16.msrb.mxu0 %v4861_v17  ;;  %1849 = vmatmul.bf16.vlgmr.msra.gmra.mxu1 %v6252_v61  ;;  %v4445_v17 = vor.u32 %v5792_v10, %v4444_v9  ;;  %v4206_v9 = vld [vmem:[#allocation2 + $0x274] sm:$0xf0]  ;;  %v4665_v10 = vor.u32 %v5847_v2, %v4664_v0 }
  0x72   :  { %1897 = vmatpush.bf16.msrb.mxu1 %v4045_v13  ;;  %v5667_v13 = vld [vmem:[#allocation2 + $0x68] sm:$0xf0]  ;;  %v4126_v0 = vld [vmem:[#allocation2 + $0x1d4] sm:$0xf0] }
  0x73   :  { %1876 = vmatpush.bf16.msrb.mxu2 %v4701_v21  ;;  %1863 = vmatmul.bf16.vlgmr.msra.gmra.mxu3 %v6288_v37  ;;  %v3945_v20 = vor.u32 %v5667_v13, %v3944_v12  ;;  %v4105_v21 = vor.u32 %v5707_v15, %v4104_v14  ;;  %v5685_v13 = vld [vmem:[#allocation2 + $0xfc] sm:$0xf]  ;;  %v4026_v14 = vld [vmem:[#allocation2 + $0x10c] sm:$0xf0] }
  0x74   :  { %1911 = vmatpush.bf16.msrb.mxu3 %v4205_v16  ;;  %v4285_v16 = vor.u32 %v5752_v6, %v4284_v5  ;;  %v4385_v5 = vor.u32 %v5777_v54, %v4384_v51  ;;  %v4644_v15 = vld [vmem:[#allocation2 + $0x5d0] sm:$0xf]  ;;  %v4584_v54 = vld [vmem:[#allocation2 + $0x558] sm:$0xf] }
  0x75   :  { %1925 = vmatpush.bf16.msra.mxu0 %v4365_v25  ;;  %v5662_v25 = vld [vmem:[#allocation2 + $0x40] sm:$0xf0] }
  0x76   :  { %1898 = vmatpush.bf16.msrb.mxu1 %v4025_v29  ;;  %1877 = vmatmul.bf16.vlgmr.msrb.gmra.mxu2 %v6290_v42  ;;  %v4425_v29 = vor.u32 %v5787_v23, %v4424_v22  ;;  %v3925_v33 = vor.u32 %v5662_v25, %v3924_v24  ;;  %v4186_v22 = vld [vmem:[#allocation2 + $0x24c] sm:$0xf0]  ;;  %v5680_v25 = vld [vmem:[#allocation2 + $0xd4] sm:$0xf] }
  0x77   :  { %1939 = vmatpush.bf16.msra.mxu2 %v4525_v26  ;;  %v4084_v26 = vld [vmem:[#allocation2 + $0x170] sm:$0xf] }
  0x78   :  { %1912 = vmatpush.bf16.msrb.mxu3 %v4185_v30  ;;  %v4244_v30 = vld [vmem:[#allocation2 + $0x2b0] sm:$0xf]  ;;  %v4085_v34 = vor.u32 %v5702_v27, %v4084_v26  ;;  %v4006_v26 = vld [vmem:[#allocation2 + $0xe4] sm:$0xf0] }
  0x79   :  { %1926 = vmatpush.bf16.msra.mxu0 %v4345_v38  ;;  %v5657_v38 = vld [vmem:[#allocation2 + $0x18] sm:$0xf0]  ;;  %v4624_v27 = vld [vmem:[#allocation2 + $0x5a8] sm:$0xf]  ;;  %v4009_v32 = vor.u32 %v5680_v25, %v4006_v26  ;;  %v5810_v25 = vld [vmem:[#allocation2 + $0x4e4] sm:$0xf] }
  0x7a   :  { %1899 = vmatpush.bf16.msrb.mxu1 %v4005_v43  ;;  %v4245_v43 = vor.u32 %v5742_v31, %v4244_v30  ;;  %v5877_v30 = vld [vmem:[#allocation2 + $0x6f8] sm:$0xf0]  ;;  %v4526_v26 = vld [vmem:[#allocation2 + $0x4f4] sm:$0xf0] }
  0x7b   :  { %1940 = vmatpush.bf16.msra.mxu2 %v4505_v39  ;;  %v4064_v39 = vld [vmem:[#allocation2 + $0x148] sm:$0xf] }
  0x7c   :  { %1913 = vmatpush.bf16.msrb.mxu3 %v4165_v44  ;;  %v5852_v44 = vld [vmem:[#allocation2 + $0x630] sm:$0xf0] }
  0x7d   :  { %1927 = vmatpush.bf16.msra.mxu0 %v4325_v52  ;;  %v3905_v52 = vor.u32 %v5657_v38, %v3904_v36  ;;  %v5675_v38 = vld [vmem:[#allocation2 + $0xac] sm:$0xf] }
  0x7e   :  { %1900 = vmatpush.bf16.msrb.mxu1 %v3985_v56  ;;  %v5897_v56 = vld [vmem:[#allocation2 + $0x798] sm:$0xf0] }
  0x7f   :  { %1941 = vmatpush.bf16.msra.mxu2 %v4485_v53  ;;  %v4065_v53 = vor.u32 %v5697_v40, %v4064_v39  ;;  %v4865_v6 = vor.u32 %v5897_v56, %v4864_v55  ;;  %v3986_v39 = vld [vmem:[#allocation2 + $0xbc] sm:$0xf0]  ;;  %v5827_v55 = vld [vmem:[#allocation2 + $0x568] sm:$0xf0]  ;;  %v4744_v56 = vld [vmem:[#allocation2 + $0x698] sm:$0xf] }
  0x80   :  { %1914 = vmatpush.bf16.msrb.mxu3 %v4145_v58  ;;  %4875 = vmatmul.msk.bf16.vlgmr.msrb.gmra.mxu0 %vm1697_vm0, %v6272_v50  ;;  %v4685_v58 = vor.u32 %v5852_v44, %v4684_v41  ;;  %v4604_v40 = vld [vmem:[#allocation2 + $0x580] sm:$0xf]  ;;  %v5832_v41 = vld [vmem:[#allocation2 + $0x590] sm:$0xf0]  ;;  %v3989_v46 = vor.u32 %v5675_v38, %v3986_v39  ;;  %v4686_v38 = vld [vmem:[#allocation2 + $0x634] sm:$0xf0] }
  0x81   :  { %1928 = vmatpush.bf16.msra.mxu0 %v4305_v3  ;;  %v4824_v3 = vld [vmem:[#allocation2 + $0x738] sm:$0xf]  ;;  %v5872_v44 = vld [vmem:[#allocation2 + $0x6d0] sm:$0xf0]  ;;  %v4605_v49 = vor.u32 %v5832_v41, %v4604_v40  ;;  %v5765_v40 = vld [vmem:[#allocation2 + $0x37c] sm:$0xf] }
  0x82   :  { %1901 = vmatpush.bf16.msrb.mxu1 %v3965_v7  ;;  %v4049_v7 = vor.u32 %v5690_v62, %v4046_v63  ;;  %v5710_v63 = vld [vmem:[#allocation2 + $0x1c4] sm:$0xf]  ;;  %v4346_v41 = vld [vmem:[#allocation2 + $0x38c] sm:$0xf0] }
  0x83   :  { %1942 = vmatpush.bf16.msra.mxu2 %v4465_v4  ;;  %v5887_v4 = vld [vmem:[#allocation2 + $0x748] sm:$0xf0] }
  0x84   :  { %1915 = vmatpush.bf16.msrb.mxu3 %v4125_v8  ;;  %v5730_v8 = vld [vmem:[#allocation2 + $0x264] sm:$0xf]  ;;  %v4825_v12 = vor.u32 %v5887_v4, %v4824_v3  ;;  %v5665_v3 = vld [vmem:[#allocation2 + $0x5c] sm:$0xf]  ;;  %v3946_v4 = vld [vmem:[#allocation2 + $0x6c] sm:$0xf0] }
  0x85   :  { %1929 = vmatpush.bf16.msra.mxu0 %v4285_v16  ;;  %v5842_v16 = vld [vmem:[#allocation2 + $0x5e0] sm:$0xf0]  ;;  %v4209_v19 = vor.u32 %v5730_v8, %v4206_v9  ;;  %v4129_v9 = vor.u32 %v5710_v63, %v4126_v0  ;;  %v5800_v63 = vld [vmem:[#allocation2 + $0x494] sm:$0xf]  ;;  %v4486_v0 = vld [vmem:[#allocation2 + $0x4a4] sm:$0xf0] }
  0x86   :  { %1902 = vmatpush.bf16.msrb.mxu1 %v3945_v20  ;;  %v4029_v20 = vor.u32 %v5685_v13, %v4026_v14  ;;  %v4645_v23 = vor.u32 %v5842_v16, %v4644_v15  ;;  %v5862_v8 = vld [vmem:[#allocation2 + $0x680] sm:$0xf0]  ;;  %v4106_v13 = vld [vmem:[#allocation2 + $0x1ac] sm:$0xf0]  ;;  %v5660_v14 = vld [vmem:[#allocation2 + $0x34] sm:$0xf] }
  0x87   :  { %1943 = vmatpush.bf16.msra.mxu2 %v4445_v17  ;;  %v4804_v17 = vld [vmem:[#allocation2 + $0x710] sm:$0xf] }
  0x88   :  { %1916 = vmatpush.bf16.msrb.mxu3 %v4105_v21  ;;  %v5725_v21 = vld [vmem:[#allocation2 + $0x23c] sm:$0xf]  ;;  %v4805_v24 = vor.u32 %v5882_v18, %v4804_v17  ;;  %v3926_v17 = vld [vmem:[#allocation2 + $0x44] sm:$0xf0] }
  0x89   :  { %1930 = vmatpush.bf16.msra.mxu0 %v4265_v28  ;;  %v5837_v28 = vld [vmem:[#allocation2 + $0x5b8] sm:$0xf0]  ;;  %v4189_v31 = vor.u32 %v5725_v21, %v4186_v22  ;;  %v4544_v18 = vld [vmem:[#allocation2 + $0x508] sm:$0xf]  ;;  %v5770_v22 = vld [vmem:[#allocation2 + $0x3a4] sm:$0xf] }
  0x8a   :  { %1903 = vmatpush.bf16.msrb.mxu1 %v3925_v33  ;;  %v5720_v33 = vld [vmem:[#allocation2 + $0x214] sm:$0xf]  ;;  %v4625_v35 = vor.u32 %v5837_v28, %v4624_v27  ;;  %v5857_v21 = vld [vmem:[#allocation2 + $0x658] sm:$0xf0]  ;;  %v3929_v27 = vor.u32 %v5660_v14, %v3926_v17 }
  0x8b   :  { %1944 = vmatpush.bf16.msra.mxu2 %v4425_v29  ;;  %v4784_v29 = vld [vmem:[#allocation2 + $0x6e8] sm:$0xf]  ;;  %v5700_v28 = vld [vmem:[#allocation2 + $0x174] sm:$0xf] }
  0x8c   :  { %1917 = vmatpush.bf16.msrb.mxu3 %v4085_v34  ;;  %v4166_v34 = vld [vmem:[#allocation2 + $0x224] sm:$0xf0]  ;;  %v4785_v36 = vor.u32 %v5877_v30, %v4784_v29  ;;  %v5880_v14 = vld [vmem:[#allocation2 + $0x714] sm:$0xf] }
  0x8d   :  { %1931 = vmatpush.bf16.msra.mxu0 %v4245_v43  ;;  %v4764_v43 = vld [vmem:[#allocation2 + $0x6c0] sm:$0xf]  ;;  %v4169_v45 = vor.u32 %v5720_v33, %v4166_v34  ;;  %v4086_v29 = vld [vmem:[#allocation2 + $0x184] sm:$0xf0]  ;;  %v4529_v34 = vor.u32 %v5810_v25, %v4526_v26  ;;  %v4446_v25 = vld [vmem:[#allocation2 + $0x454] sm:$0xf0] }
  0x8e   :  { %1904 = vmatpush.bf16.msrb.mxu1 %v3905_v52  ;;  %v4765_v51 = vor.u32 %v5872_v44, %v4764_v43  ;;  %v5670_v52 = vld [vmem:[#allocation2 + $0x84] sm:$0xf]  ;;  %v4089_v39 = vor.u32 %v5700_v28, %v4086_v29  ;;  %v5805_v43 = vld [vmem:[#allocation2 + $0x4bc] sm:$0xf]  ;;  %v4506_v44 = vld [vmem:[#allocation2 + $0x4cc] sm:$0xf0] }
  0x8f   :  { %1945 = vmatpush.bf16.msra.mxu2 %v4405_v47  ;;  %v5715_v47 = vld [vmem:[#allocation2 + $0x1ec] sm:$0xf] }
  0x90   :  { %1918 = vmatpush.bf16.msrb.mxu3 %v4065_v53  ;;  %v3966_v53 = vld [vmem:[#allocation2 + $0x94] sm:$0xf0]  ;;  %v5875_v26 = vld [vmem:[#allocation2 + $0x6ec] sm:$0xf] }
  0x91   :  { %1932 = vmatpush.bf16.msra.mxu0 %v4225_v1  ;;  %1905 = vmatmul.bf16.vlgmr.msrb.gmra.mxu1 %v6245_v57  ;;  %v3969_v62 = vor.u32 %v5670_v52, %v3966_v53  ;;  %v4585_v1 = vor.u32 %v5827_v55, %v4584_v54  ;;  %v4349_v52 = vor.u32 %v5765_v40, %v4346_v41  ;;  %v5845_v53 = vld [vmem:[#allocation2 + $0x5fc] sm:$0xf]  ;;  %v4766_v40 = vld [vmem:[#allocation2 + $0x6d4] sm:$0xf0] }
  0x92   :  { %1953 = vmatpush.bf16.msra.mxu1 %v4685_v58  ;;  %v5867_v58 = vld [vmem:[#allocation2 + $0x6a8] sm:$0xf0]  ;;  %v4509_v54 = vor.u32 %v5805_v43, %v4506_v44  ;;  %v5825_v44 = vld [vmem:[#allocation2 + $0x55c] sm:$0xf] }
  0x93   :  { %1946 = vmatpush.bf16.msra.mxu2 %v4385_v5  ;;  %1919 = vmatmul.bf16.vlgmr.msrb.gmra.mxu3 %v6261_v11  ;;  %v4745_v2 = vor.u32 %v5867_v58, %v4744_v56  ;;  %v4564_v5 = vld [vmem:[#allocation2 + $0x530] sm:$0xf]  ;;  %v5760_v58 = vld [vmem:[#allocation2 + $0x354] sm:$0xf] }
  0x94   :  { %1967 = vmatpush.bf16.msra.mxu3 %v4845_v60  ;;  %1933 = vmatmul.bf16.vlgmr.msra.gmra.mxu0 %v6250_v59  ;;  %v4149_v60 = vor.u32 %v5715_v47, %v4146_v48  ;;  %v5890_v48 = vld [vmem:[#allocation2 + $0x764] sm:$0xf]  ;;  %v4666_v56 = vld [vmem:[#allocation2 + $0x60c] sm:$0xf0] }
  0x95   :  { %1988 = vmatpush.bf16.msrb.mxu0 %v4865_v6  ;;  %v5822_v6 = vld [vmem:[#allocation2 + $0x540] sm:$0xf0] }
  0x96   :  { %1954 = vmatpush.bf16.msra.mxu1 %v4665_v10  ;;  %1947 = vmatmul.bf16.vlgmr.msra.gmra.mxu2 %v6252_v61  ;;  %v3949_v10 = vor.u32 %v5665_v3, %v3946_v4  ;;  %v4565_v15 = vor.u32 %v5822_v6, %v4564_v5  ;;  %v4669_v3 = vor.u32 %v5845_v53, %v4666_v56  ;;  %v5840_v5 = vld [vmem:[#allocation2 + $0x5d4] sm:$0xf]  ;;  %v5865_v53 = vld [vmem:[#allocation2 + $0x69c] sm:$0xf] }
  0x97   :  { %1995 = vmatpush.bf16.msrb.mxu2 %v4049_v7  ;;  %v4724_v7 = vld [vmem:[#allocation2 + $0x670] sm:$0xf]  ;;  %v4489_v6 = vor.u32 %v5800_v63, %v4486_v0  ;;  %v4226_v0 = vld [vmem:[#allocation2 + $0x29c] sm:$0xf0] }
  0x98   :  { %1968 = vmatpush.bf16.msra.mxu3 %v4825_v12  ;;  %v5705_v12 = vld [vmem:[#allocation2 + $0x19c] sm:$0xf]  ;;  %v4725_v16 = vor.u32 %v5862_v8, %v4724_v7  ;;  %v4646_v7 = vld [vmem:[#allocation2 + $0x5e4] sm:$0xf0]  ;;  %v5755_v8 = vld [vmem:[#allocation2 + $0x32c] sm:$0xf] }
  0x99   :  { %2009 = vmatpush.bf16.msra.mxu0 %v4209_v19  ;;  %v5817_v19 = vld [vmem:[#allocation2 + $0x518] sm:$0xf0] }
  0x9a   :  { %1955 = vmatpush.bf16.msra.mxu1 %v4645_v23  ;;  %v4109_v23 = vor.u32 %v5705_v12, %v4106_v13  ;;  %v4545_v30 = vor.u32 %v5817_v19, %v4544_v18  ;;  %v5795_v12 = vld [vmem:[#allocation2 + $0x46c] sm:$0xf]  ;;  %v4466_v13 = vld [vmem:[#allocation2 + $0x47c] sm:$0xf0] }
  0x9b   :  { %1996 = vmatpush.bf16.msrb.mxu2 %v4029_v20  ;;  %v4704_v20 = vld [vmem:[#allocation2 + $0x648] sm:$0xf]  ;;  %v5835_v18 = vld [vmem:[#allocation2 + $0x5ac] sm:$0xf]  ;;  %v4469_v19 = vor.u32 %v5795_v12, %v4466_v13 }
  0x9c   :  { %1969 = vmatpush.bf16.msra.mxu3 %v4805_v24  ;;  %v4366_v24 = vld [vmem:[#allocation2 + $0x3b4] sm:$0xf0] }
  0x9d   :  { %2010 = vmatpush.bf16.msra.mxu0 %v4189_v31  ;;  %v4705_v31 = vor.u32 %v5857_v21, %v4704_v20  ;;  %v4369_v33 = vor.u32 %v5770_v22, %v4366_v24  ;;  %v4626_v20 = vld [vmem:[#allocation2 + $0x5bc] sm:$0xf0]  ;;  %v5750_v21 = vld [vmem:[#allocation2 + $0x304] sm:$0xf]  ;;  %v4286_v22 = vld [vmem:[#allocation2 + $0x314] sm:$0xf0] }
  0x9e   :  { %1956 = vmatpush.bf16.msra.mxu1 %v4625_v35  ;;  %v3906_v35 = vld [vmem:[#allocation2 + $0x1c] sm:$0xf0]  ;;  %v5790_v24 = vld [vmem:[#allocation2 + $0x444] sm:$0xf]  ;;  %v4629_v28 = vor.u32 %v5835_v18, %v4626_v20  ;;  %v4289_v29 = vor.u32 %v5750_v21, %v4286_v22  ;;  %v4212_v18 = vld [vmem:[#allocation2 + $0x268] sm:$0xf] }
  0x9f   :  { %1997 = vmatpush.bf16.msrb.mxu2 %v4009_v32  ;;  %v5655_v32 = vld [vmem:[#allocation2 + $0xc] sm:$0xf]  ;;  %v4372_v22 = vld [vmem:[#allocation2 + $0x3a8] sm:$0xf] }
  0xa0   :  { %1970 = vmatpush.bf16.msra.mxu3 %v4785_v36  ;;  %v5850_v36 = vld [vmem:[#allocation2 + $0x624] sm:$0xf]  ;;  %v3909_v47 = vor.u32 %v5655_v32, %v3906_v35  ;;  %v4606_v32 = vld [vmem:[#allocation2 + $0x594] sm:$0xf0] }
  0xa1   :  { %2011 = vmatpush.bf16.msra.mxu0 %v4169_v45  ;;  %v5695_v45 = vld [vmem:[#allocation2 + $0x14c] sm:$0xf] }
  0xa2   :  { %1957 = vmatpush.bf16.msra.mxu1 %v4605_v49  ;;  %v4846_v49 = vld [vmem:[#allocation2 + $0x774] sm:$0xf0] }
  0xa3   :  { %1998 = vmatpush.bf16.msrb.mxu2 %v3989_v46  ;;  %v4066_v46 = vld [vmem:[#allocation2 + $0x15c] sm:$0xf0] }
  0xa4   :  { %1971 = vmatpush.bf16.msra.mxu3 %v4765_v51  ;;  %4876 = vmatmul.msk.bf16.vlgmr.msrb.gmra.mxu0 %vm1697_vm0, %v6272_v50  ;;  %v4689_v51 = vor.u32 %v5850_v36, %v4686_v38  ;;  %v4069_v55 = vor.u32 %v5695_v45, %v4066_v46  ;;  %v5785_v36 = vld [vmem:[#allocation2 + $0x41c] sm:$0xf]  ;;  %v4426_v38 = vld [vmem:[#allocation2 + $0x42c] sm:$0xf0] }
  0xa5   :  { %2012 = vmatpush.bf16.msra.mxu0 %v4149_v60  ;;  %v4326_v60 = vld [vmem:[#allocation2 + $0x364] sm:$0xf0]  ;;  %v4429_v45 = vor.u32 %v5785_v36, %v4426_v38  ;;  %v4586_v46 = vld [vmem:[#allocation2 + $0x56c] sm:$0xf0]  ;;  %v5728_v36 = vld [vmem:[#allocation2 + $0x250] sm:$0xf0] }
  0xa6   :  { %1958 = vmatpush.bf16.msra.mxu1 %v4585_v1  ;;  %v5885_v1 = vld [vmem:[#allocation2 + $0x73c] sm:$0xf]  ;;  %v4329_v4 = vor.u32 %v5760_v58, %v4326_v60  ;;  %v5820_v58 = vld [vmem:[#allocation2 + $0x534] sm:$0xf]  ;;  %v4566_v60 = vld [vmem:[#allocation2 + $0x544] sm:$0xf0] }
  0xa7   :  { %1999 = vmatpush.bf16.msrb.mxu2 %v3969_v62  ;;  %v4849_v62 = vor.u32 %v5890_v48, %v4846_v49  ;;  %v4246_v48 = vld [vmem:[#allocation2 + $0x2c4] sm:$0xf0]  ;;  %v4569_v12 = vor.u32 %v5820_v58, %v4566_v60  ;;  %v4352_v38 = vld [vmem:[#allocation2 + $0x380] sm:$0xf]  ;;  %v3992_v58 = vld [vmem:[#allocation2 + $0xb0] sm:$0xf] }
  0xa8   :  { %1972 = vmatpush.bf16.msra.mxu3 %v4745_v2  ;;  %v4826_v2 = vld [vmem:[#allocation2 + $0x74c] sm:$0xf0]  ;;  %v5678_v60 = vld [vmem:[#allocation2 + $0xc0] sm:$0xf0] }
  0xa9   :  { %2013 = vmatpush.bf16.msra.mxu0 %v4129_v9  ;;  %v4306_v9 = vld [vmem:[#allocation2 + $0x33c] sm:$0xf0] }
  0xaa   :  { %1959 = vmatpush.bf16.msra.mxu1 %v4565_v15  ;;  %v4806_v15 = vld [vmem:[#allocation2 + $0x724] sm:$0xf0]  ;;  %v4309_v17 = vor.u32 %v5755_v8, %v4306_v9  ;;  %v5693_v8 = vld [vmem:[#allocation2 + $0x138] sm:$0xf0]  ;;  %v5860_v9 = vld [vmem:[#allocation2 + $0x674] sm:$0xf] }
  0xab   :  { %2000 = vmatpush.bf16.msrb.mxu2 %v3949_v10  ;;  %v4829_v10 = vor.u32 %v5885_v1, %v4826_v2  ;;  %v5775_v1 = vld [vmem:[#allocation2 + $0x3cc] sm:$0xf]  ;;  %v4386_v2 = vld [vmem:[#allocation2 + $0x3dc] sm:$0xf0] }
  0xac   :  { %1973 = vmatpush.bf16.msra.mxu3 %v4725_v16  ;;  %v4649_v16 = vor.u32 %v5840_v5, %v4646_v7  ;;  %v4052_v5 = vld [vmem:[#allocation2 + $0x128] sm:$0xf]  ;;  %v4866_v7 = vld [vmem:[#allocation2 + $0x79c] sm:$0xf0] }
  0xad   :  { %2014 = vmatpush.bf16.msra.mxu0 %v4109_v23  ;;  %v4809_v23 = vor.u32 %v5880_v14, %v4806_v15  ;;  %v5815_v14 = vld [vmem:[#allocation2 + $0x50c] sm:$0xf]  ;;  %v4389_v15 = vor.u32 %v5775_v1, %v4386_v2  ;;  %v4053_v20 = vor.u32 %v5693_v8, %v4052_v5  ;;  %v4152_v5 = vld [vmem:[#allocation2 + $0x1f0] sm:$0xf] }
  0xae   :  { %1960 = vmatpush.bf16.msra.mxu1 %v4545_v30  ;;  %v5830_v30 = vld [vmem:[#allocation2 + $0x584] sm:$0xf]  ;;  %v4312_v8 = vld [vmem:[#allocation2 + $0x330] sm:$0xf] }
  0xaf   :  { %2001 = vmatpush.bf16.msrb.mxu2 %v3929_v27  ;;  %v4786_v27 = vld [vmem:[#allocation2 + $0x6fc] sm:$0xf0]  ;;  %v4609_v41 = vor.u32 %v5830_v30, %v4606_v32  ;;  %v5813_v30 = vld [vmem:[#allocation2 + $0x4f8] sm:$0xf0] }
  0xb0   :  { %1974 = vmatpush.bf16.msra.mxu3 %v4705_v31  ;;  %v4449_v31 = vor.u32 %v5790_v24, %v4446_v25  ;;  %v4789_v35 = vor.u32 %v5875_v26, %v4786_v27  ;;  %v4032_v24 = vld [vmem:[#allocation2 + $0x100] sm:$0xf]  ;;  %v5688_v25 = vld [vmem:[#allocation2 + $0x110] sm:$0xf0]  ;;  %v5855_v26 = vld [vmem:[#allocation2 + $0x64c] sm:$0xf] }
  0xb1   :  { %2015 = vmatpush.bf16.msra.mxu0 %v4089_v39  ;;  %1961 = vmatmul.bf16.vlgmr.msra.gmra.mxu1 %v6288_v37  ;;  %v5870_v39 = vld [vmem:[#allocation2 + $0x6c4] sm:$0xf]  ;;  %v4706_v27 = vld [vmem:[#allocation2 + $0x65c] sm:$0xf0] }
  0xb2   :  { %2023 = vmatpush.bf16.msrb.mxu1 %v4369_v33  ;;  %v5745_v33 = vld [vmem:[#allocation2 + $0x2dc] sm:$0xf]  ;;  %v4769_v49 = vor.u32 %v5870_v39, %v4766_v40  ;;  %v5768_v39 = vld [vmem:[#allocation2 + $0x390] sm:$0xf0] }
  0xb3   :  { %1975 = vmatmul.bf16.vlgmr.msra.gmra.mxu3 %v6290_v42  ;;  %2002 = vmatpush.bf16.msrb.mxu2 %v3909_v47  ;;  %v5740_v47 = vld [vmem:[#allocation2 + $0x2b4] sm:$0xf] }
  0xb4   :  { %2037 = vmatpush.bf16.msrb.mxu3 %v4529_v34  ;;  %v4266_v34 = vld [vmem:[#allocation2 + $0x2ec] sm:$0xf0]  ;;  %v4249_v56 = vor.u32 %v5740_v47, %v4246_v48  ;;  %v5808_v47 = vld [vmem:[#allocation2 + $0x4d0] sm:$0xf0] }
  0xb5   :  { %2016 = vmatpush.bf16.msra.mxu0 %v4069_v55  ;;  %v4269_v43 = vor.u32 %v5745_v33, %v4266_v34  ;;  %v4589_v55 = vor.u32 %v5825_v44, %v4586_v46  ;;  %v4192_v33 = vld [vmem:[#allocation2 + $0x240] sm:$0xf]  ;;  %v4033_v34 = vor.u32 %v5688_v25, %v4032_v24  ;;  %v6315_v44 = vpop.f32.mrf.mxu0  ;;  %v5753_v24 = vld [vmem:[#allocation2 + $0x318] sm:$0xf0] }
  0xb6   :  { %2024 = vmatpush.bf16.msrb.mxu1 %v4349_v52  ;;  %2003 = vmatmul.bf16.vlgmr.msrb.gmra.mxu2 %v6245_v57  ;;  %v4406_v52 = vld [vmem:[#allocation2 + $0x404] sm:$0xf0]  ;;  %v4512_v46 = vld [vmem:[#allocation2 + $0x4c0] sm:$0xf]  ;;  %v4193_v48 = vor.u32 %v5728_v36, %v4192_v33  ;;  %v6323_v1 = vpop.f32.mrf.mxu3 }
  0xb7   :  { %2051 = vmatpush.bf16.msra.mxu2 %v4689_v51  ;;  %v5780_v51 = vld [vmem:[#allocation2 + $0x3f4] sm:$0xf]  ;;  %v4272_v36 = vld [vmem:[#allocation2 + $0x2e0] sm:$0xf] }
  0xb8   :  { %2038 = vmatpush.bf16.msrb.mxu3 %v4509_v54  ;;  %2017 = vmatmul.bf16.vlgmr.msra.gmra.mxu0 %v6261_v11  ;;  %v4746_v54 = vld [vmem:[#allocation2 + $0x6ac] sm:$0xf0]  ;;  %v4409_v63 = vor.u32 %v5780_v51, %v4406_v52  ;;  %v4172_v51 = vld [vmem:[#allocation2 + $0x218] sm:$0xf] }
  0xb9   :  { %2065 = vmatpush.bf16.msrb.mxu0 %v4849_v62  ;;  %v5735_v62 = vld [vmem:[#allocation2 + $0x28c] sm:$0xf] }
  0xba   :  { %2025 = vmatpush.bf16.msrb.mxu1 %v4329_v4  ;;  %v4749_v4 = vor.u32 %v5865_v53, %v4746_v54  ;;  %v4229_v13 = vor.u32 %v5735_v62, %v4226_v0  ;;  %v5723_v53 = vld [vmem:[#allocation2 + $0x228] sm:$0xf0]  ;;  %v4332_v54 = vld [vmem:[#allocation2 + $0x358] sm:$0xf]  ;;  %v6321_v62 = vpop.f32.mrf.mxu1 }
  0xbb   :  { %2052 = vmatpush.bf16.msra.mxu2 %v4669_v3  ;;  %v6312_v3 = vpop.f32.mrf.mxu2  ;;  %v5803_v0 = vld [vmem:[#allocation2 + $0x4a8] sm:$0xf0]  ;;  %v4173_v2 = vor.u32 %v5723_v53, %v4172_v51  ;;  %v4092_v51 = vld [vmem:[#allocation2 + $0x178] sm:$0xf] }
  0xbc   :  { %2039 = vmatpush.bf16.msrb.mxu3 %v4489_v6  ;;  %v5895_v6 = vld [vmem:[#allocation2 + $0x78c] sm:$0xf]  ;;  %v375_v53 = vld [vmem:[#allocation6] ss:$8 sm:$0x10] }
  0xbd   :  { %2066 = vmatpush.bf16.msrb.mxu0 %v4829_v10  ;;  %v4726_v10 = vld [vmem:[#allocation2 + $0x684] sm:$0xf0] }
  0xbe   :  { %2026 = vmatpush.bf16.msrb.mxu1 %v4309_v17  ;;  %v4869_v17 = vor.u32 %v5895_v6, %v4866_v7  ;;  %v4729_v21 = vor.u32 %v5860_v9, %v4726_v10  ;;  %v3993_v6 = vor.u32 %v5678_v60, %v3992_v58  ;;  %v5718_v7 = vld [vmem:[#allocation2 + $0x200] sm:$0xf0]  ;;  %v5703_v58 = vld [vmem:[#allocation2 + $0x188] sm:$0xf0]  ;;  %v4252_v60 = vld [vmem:[#allocation2 + $0x2b8] sm:$0xf] }
  0xbf   :  { %2053 = vmatpush.bf16.msra.mxu2 %v4649_v16  ;;  %v4546_v16 = vld [vmem:[#allocation2 + $0x51c] sm:$0xf0]  ;;  %v5758_v9 = vld [vmem:[#allocation2 + $0x340] sm:$0xf0] }
  0xc0   :  { %2040 = vmatpush.bf16.msrb.mxu3 %v4469_v19  ;;  %v5733_v19 = vld [vmem:[#allocation2 + $0x278] sm:$0xf0] }
  0xc1   :  { %2067 = vmatpush.bf16.msrb.mxu0 %v4809_v23  ;;  %v5773_v23 = vld [vmem:[#allocation2 + $0x3b8] sm:$0xf0] }
  0xc2   :  { %2027 = vmatpush.bf16.msrb.mxu1 %v4289_v29  ;;  %v4532_v29 = vld [vmem:[#allocation2 + $0x4e8] sm:$0xf]  ;;  %v4373_v32 = vor.u32 %v5773_v23, %v4372_v22  ;;  %v5713_v22 = vld [vmem:[#allocation2 + $0x1d8] sm:$0xf0]  ;;  %v6330_v33 = vpop.f32.mrf.mxu1 }
  0xc3   :  { %2054 = vmatpush.bf16.msra.mxu2 %v4629_v28  ;;  %v4549_v28 = vor.u32 %v5815_v14, %v4546_v16  ;;  %v4533_v40 = vor.u32 %v5813_v30, %v4532_v29  ;;  %v5798_v16 = vld [vmem:[#allocation2 + $0x480] sm:$0xf0]  ;;  %v4292_v23 = vld [vmem:[#allocation2 + $0x308] sm:$0xf]  ;;  %v5793_v29 = vld [vmem:[#allocation2 + $0x458] sm:$0xf0] }
  0xc4   :  { %2041 = vmatpush.bf16.msrb.mxu3 %v4449_v31  ;;  %v4213_v31 = vor.u32 %v5733_v19, %v4212_v18  ;;  %v4313_v18 = vor.u32 %v5758_v9, %v4312_v8  ;;  %v4132_v19 = vld [vmem:[#allocation2 + $0x1c8] sm:$0xf]  ;;  %v5783_v8 = vld [vmem:[#allocation2 + $0x408] sm:$0xf0]  ;;  %v4093_v9 = vor.u32 %v5703_v58, %v4092_v51  ;;  %v4832_v51 = vld [vmem:[#allocation2 + $0x740] sm:$0xf] }
  0xc5   :  { %2068 = vmatpush.bf16.msrb.mxu0 %v4789_v35  ;;  %v4709_v35 = vor.u32 %v5855_v26, %v4706_v27  ;;  %v3952_v26 = vld [vmem:[#allocation2 + $0x60] sm:$0xf]  ;;  %v5668_v27 = vld [vmem:[#allocation2 + $0x70] sm:$0xf0]  ;;  %v4133_v30 = vor.u32 %v5713_v22, %v4132_v19  ;;  %v4852_v19 = vld [vmem:[#allocation2 + $0x768] sm:$0xf] }
  0xc6   :  { %2028 = vmatpush.bf16.msrb.mxu1 %v4269_v43  ;;  %v5683_v43 = vld [vmem:[#allocation2 + $0xe8] sm:$0xf0]  ;;  %v4652_v58 = vld [vmem:[#allocation2 + $0x5d8] sm:$0xf] }
  0xc7   :  { %2055 = vmatpush.bf16.msra.mxu2 %v4609_v41  ;;  %v4012_v41 = vld [vmem:[#allocation2 + $0xd8] sm:$0xf] }
  0xc8   :  { %2042 = vmatpush.bf16.msrb.mxu3 %v4429_v45  ;;  %v6318_v45 = vpop.f32.mrf.mxu2  ;;  %v4013_v52 = vor.u32 %v5683_v43, %v4012_v41  ;;  %v3932_v41 = vld [vmem:[#allocation2 + $0x38] sm:$0xf]  ;;  %v5663_v43 = vld [vmem:[#allocation2 + $0x48] sm:$0xf0] }
  0xc9   :  { %2069 = vmatpush.bf16.msrb.mxu0 %v4769_v49  ;;  %v4353_v49 = vor.u32 %v5768_v39, %v4352_v38  ;;  %v5748_v38 = vld [vmem:[#allocation2 + $0x2f0] sm:$0xf0]  ;;  %v6332_v39 = vpop.f32.mrf.mxu3 }
  0xca   :  { %2029 = vmatpush.bf16.msrb.mxu1 %v4249_v56  ;;  %v4513_v56 = vor.u32 %v5808_v47, %v4512_v46  ;;  %v4432_v46 = vld [vmem:[#allocation2 + $0x420] sm:$0xf]  ;;  %v5788_v47 = vld [vmem:[#allocation2 + $0x430] sm:$0xf0] }
  0xcb   :  { %2056 = vmatpush.bf16.msra.mxu2 %v4589_v55  ;;  %v5763_v55 = vld [vmem:[#allocation2 + $0x368] sm:$0xf0] }
  0xcc   :  { %2043 = vmatpush.bf16.msrb.mxu3 %v4409_v63  ;;  %v4492_v63 = vld [vmem:[#allocation2 + $0x498] sm:$0xf] }
  0xcd   :  { %2070 = vmatpush.bf16.msrb.mxu0 %v4749_v4  ;;  %v4333_v4 = vor.u32 %v5763_v55, %v4332_v54  ;;  %v4493_v10 = vor.u32 %v5803_v0, %v4492_v63  ;;  %v5743_v63 = vld [vmem:[#allocation2 + $0x2c8] sm:$0xf0]  ;;  %v4433_v0 = vor.u32 %v5788_v47, %v4432_v46  ;;  %v5945_v46 = vld [vmem:[#allocation4 + $0x170] sm:$0xf0] }
  0xce   :  { %2030 = vmatpush.bf16.msrb.mxu1 %v4229_v13  ;;  %v5673_v13 = vld [vmem:[#allocation2 + $0x98] sm:$0xf0] }
  0xcf   :  { %2057 = vmatpush.bf16.msra.mxu2 %v4569_v12  ;;  %v3972_v12 = vld [vmem:[#allocation2 + $0x88] sm:$0xf] }
  0xd0   :  { %2044 = vmatpush.bf16.msrb.mxu3 %v4389_v15  ;;  %v6326_v14 = vpop.f32.mrf.mxu2  ;;  %v4472_v15 = vld [vmem:[#allocation2 + $0x470] sm:$0xf] }
  0xd1   :  { %2071 = vmatpush.bf16.msrb.mxu0 %v4729_v21  ;;  %2031 = vmatmul.bf16.vlgmr.msrb.gmra.mxu1 %v6250_v59  ;;  %v3973_v21 = vor.u32 %v5673_v13, %v3972_v12  ;;  %v4473_v25 = vor.u32 %v5798_v16, %v4472_v15  ;;  %v4072_v12 = vld [vmem:[#allocation2 + $0x150] sm:$0xf]  ;;  %v5698_v13 = vld [vmem:[#allocation2 + $0x160] sm:$0xf0]  ;;  %v6340_v16 = vpop.f32.mrf.mxu1 }
  0xd2   :  { %2086 = vmatpush.bf16.msra.mxu1 %v4869_v17  ;;  %v4153_v17 = vor.u32 %v5718_v7, %v4152_v5  ;;  %v4692_v5 = vld [vmem:[#allocation2 + $0x628] sm:$0xf]  ;;  %v4412_v7 = vld [vmem:[#allocation2 + $0x3f8] sm:$0xf]  ;;  %v4232_v15 = vld [vmem:[#allocation2 + $0x290] sm:$0xf] }
  0xd3   :  { %2045 = vmatmul.bf16.vlgmr.msrb.gmra.mxu3 %v6252_v61  ;;  %2058 = vmatpush.bf16.msra.mxu2 %v4549_v28  ;;  %v4452_v28 = vld [vmem:[#allocation2 + $0x448] sm:$0xf] }
  0xd4   :  { %2093 = vmatpush.bf16.msra.mxu3 %v4053_v20  ;;  %v6328_v20 = vpop.f32.mrf.mxu0 }
  0xd5   :  { %2072 = vmatpush.bf16.msrb.mxu0 %v4709_v35  ;;  %v5708_v35 = vld [vmem:[#allocation2 + $0x1b0] sm:$0xf0] }
  0xd6   :  { %2107 = vmatpush.bf16.msrb.mxu1 %v4213_v31  ;;  %2059 = vmatmul.bf16.vlgmr.msra.gmra.mxu2 %v6288_v37  ;;  %v4293_v31 = vor.u32 %v5753_v24, %v4292_v23  ;;  %v6344_v24 = vpop.f32.mrf.mxu3 }
  0xd7   :  { %2121 = vmatpush.bf16.msrb.mxu2 %v4373_v32  ;;  %v4112_v32 = vld [vmem:[#allocation2 + $0x1a0] sm:$0xf] }
  0xd8   :  { %2094 = vmatpush.bf16.msra.mxu3 %v4033_v34  ;;  %2073 = vmatmul.bf16.vlgmr.msrb.gmra.mxu0 %v6290_v42  ;;  %v3953_v34 = vor.u32 %v5668_v27, %v3952_v26  ;;  %v6338_v55 = vpop.f32.mrf.mxu2  ;;  %v4672_v26 = vld [vmem:[#allocation2 + $0x600] sm:$0xf]  ;;  %v4872_v27 = vld [vmem:[#allocation2 + $0x790] sm:$0xf] }
  0xd9   :  { %2135 = vmatpush.bf16.msra.mxu0 %v4533_v40  ;;  %v4453_v40 = vor.u32 %v5793_v29, %v4452_v28  ;;  %v5898_v28 = vld [vmem:[#allocation2 + $0x7a0] sm:$0xf0]  ;;  %v5848_v29 = vld [vmem:[#allocation2 + $0x610] sm:$0xf0] }
  0xda   :  { %2108 = vmatpush.bf16.msrb.mxu1 %v4193_v48  ;;  %v4113_v48 = vor.u32 %v5708_v35, %v4112_v32  ;;  %v4073_v32 = vor.u32 %v5698_v13, %v4072_v12  ;;  %v4965_v35 = vld [vmem:[#allocation4 + $0xa8] sm:$0xf]  ;;  %v5883_v12 = vld [vmem:[#allocation2 + $0x728] sm:$0xf0]  ;;  %v6353_v13 = vpop.f32.mrf.mxu1 }
  0xdb   :  { %2122 = vmatpush.bf16.msrb.mxu2 %v4353_v49  ;;  %v4273_v49 = vor.u32 %v5748_v38, %v4272_v36  ;;  %v5921_v36 = vld [vmem:[#allocation4 + $0xb0] sm:$0xf0] }
  0xdc   :  { %2095 = vmatpush.bf16.msra.mxu3 %v4013_v52  ;;  %v374_v52 = vld [vmem:[#allocation6] ss:$8 sm:$0xf]  ;;  %v6336_v54 = vpop.f32.mrf.mxu0 }
  0xdd   :  { %2136 = vmatpush.bf16.msra.mxu0 %v4513_v56  ;;  %v3933_v56 = vor.u32 %v5663_v43, %v3932_v41  ;;  %v6342_v22 = vor.u32 %v375_v53, %v374_v52  ;;  %v4873_v41 = vor.u32 %v5898_v28, %v4872_v27  ;;  %v5061_v43 = vld [vmem:[#allocation4 + $0x168] sm:$0xf]  ;;  %v5888_v52 = vld [vmem:[#allocation2 + $0x750] sm:$0xf0]  ;;  %v5037_v27 = vld [vmem:[#allocation4 + $0x138] sm:$0xf] }
  0xde   :  { %2109 = vmatpush.bf16.msrb.mxu1 %v4173_v2  ;;  %v3912_v2 = vld [vmem:[#allocation2 + $0x10] sm:$0xf]  ;;  %v5939_v28 = vld [vmem:[#allocation4 + $0x140] sm:$0xf0] }
  0xdf   :  { %2123 = vmatpush.bf16.msrb.mxu2 %v4333_v4  ;;  %v5658_v4 = vld [vmem:[#allocation2 + $0x20] sm:$0xf0]  ;;  %v378_v47 = vperm.slane %v6342_v22, 0 }
  0xe0   :  { %2096 = vmatpush.bf16.msra.mxu3 %v3993_v6  ;;  %v5853_v6 = vld [vmem:[#allocation2 + $0x638] sm:$0xf0] }
  0xe1   :  { %2137 = vmatpush.bf16.msra.mxu0 %v4493_v10  ;;  %4877 = vmatmul.msk.bf16.vlgmr.msra.gmra.mxu1 %vm1697_vm0, %v6272_v50  ;;  %v4253_v10 = vor.u32 %v5743_v63, %v4252_v60  ;;  %v4693_v23 = vor.u32 %v5853_v6, %v4692_v5  ;;  %v5843_v60 = vld [vmem:[#allocation2 + $0x5e8] sm:$0xf0]  ;;  %v5062_v63 = vor.u32 %v5945_v46, %v5061_v43  ;;  %v5049_v5 = vld [vmem:[#allocation4 + $0x150] sm:$0xf]  ;;  %v5942_v6 = vld [vmem:[#allocation4 + $0x158] sm:$0xf0] }
  0xe2   :  { %2110 = vmatpush.bf16.msrb.mxu1 %v4153_v17  ;;  %v3913_v17 = vor.u32 %v5658_v4, %v3912_v2  ;;  %v5918_v2 = vld [vmem:[#allocation4 + $0x98] sm:$0xf0]  ;;  %v4833_v4 = vor.u32 %v5888_v52, %v4832_v51  ;;  %v5025_v43 = vld [vmem:[#allocation4 + $0x120] sm:$0xf]  ;;  %v5936_v46 = vld [vmem:[#allocation4 + $0x128] sm:$0xf0] }
  0xe3   :  { %2124 = vmatpush.bf16.msrb.mxu2 %v4313_v18  ;;  %v5738_v18 = vld [vmem:[#allocation2 + $0x2a0] sm:$0xf0]  ;;  %v5873_v51 = vld [vmem:[#allocation2 + $0x6d8] sm:$0xf0] }
  0xe4   :  { %2097 = vmatpush.bf16.msra.mxu3 %v3973_v21  ;;  %v5893_v21 = vld [vmem:[#allocation2 + $0x778] sm:$0xf0]  ;;  %v6349_v53 = vpop.f32.mrf.mxu0 }
  0xe5   :  { %2138 = vmatpush.bf16.msra.mxu0 %v4473_v25  ;;  %v4413_v25 = vor.u32 %v5783_v8, %v4412_v7  ;;  %v4853_v38 = vor.u32 %v5893_v21, %v4852_v19  ;;  %v1713_v7 = vadd.f32 %v6328_v20, %v378_v47  ;;  %v379_v8 = vperm.slane %v6342_v22, 1  ;;  %v1810_v20 = vpop.f32.mrf.mxu3 }
  0xe6   :  { %2111 = vmatpush.bf16.msrb.mxu1 %v4133_v30  ;;  %v4392_v30 = vld [vmem:[#allocation2 + $0x3d0] sm:$0xf]  ;;  %v1711_v19 = vadd.f32 %v6315_v44, %v378_v47  ;;  %v5050_v21 = vor.u32 %v5942_v6, %v5049_v5 }
  0xe7   :  { %2125 = vmatpush.bf16.msrb.mxu2 %v4293_v31  ;;  %v5778_v31 = vld [vmem:[#allocation2 + $0x3e0] sm:$0xf0]  ;;  %v4792_v44 = vld [vmem:[#allocation2 + $0x6f0] sm:$0xf] }
  0xe8   :  { %2098 = vmatpush.bf16.msra.mxu3 %v3953_v34  ;;  %v4233_v34 = vor.u32 %v5738_v18, %v4232_v15  ;;  %v5838_v18 = vld [vmem:[#allocation2 + $0x5c0] sm:$0xf0]  ;;  %v5013_v5 = vld [vmem:[#allocation4 + $0x108] sm:$0xf] }
  0xe9   :  { %2139 = vmatpush.bf16.msra.mxu0 %v4453_v40  ;;  %v6346_v40 = vpop.f32.mrf.mxu2 }
  0xea   :  { %2112 = vmatpush.bf16.msrb.mxu1 %v4113_v48  ;;  %v4673_v48 = vor.u32 %v5848_v29, %v4672_v26  ;;  %v1809_v29 = vadd.f32 %v6344_v24, %v379_v8 }
  0xeb   :  { %2126 = vmatpush.bf16.msrb.mxu2 %v4273_v49  ;;  %v4393_v49 = vor.u32 %v5778_v31, %v4392_v30 }
  0xec   :  { %2099 = vmatpush.bf16.msra.mxu3 %v3933_v56  ;;  %v4966_v56 = vor.u32 %v5921_v36, %v4965_v35  ;;  %v4612_v35 = vld [vmem:[#allocation2 + $0x588] sm:$0xf]  ;;  %v5833_v36 = vld [vmem:[#allocation2 + $0x598] sm:$0xf0]  ;;  %v1823_v47 = vadd.f32 %v6346_v40, %v1809_v29 }
  0xed   :  { %2140 = vmatpush.bf16.msra.mxu0 %v4433_v0  ;;  %v4953_v0 = vld [vmem:[#allocation4 + $0x90] sm:$0xf]  ;;  %v1836_v31 = vpop.f32.mrf.mxu0  ;;  %v5933_v40 = vld [vmem:[#allocation4 + $0x110] sm:$0xf0] }
  0xee   :  { %2113 = vmatpush.bf16.msrb.mxu1 %v4093_v9  ;;  %v4653_v9 = vor.u32 %v5843_v60, %v4652_v58  ;;  %v4954_v15 = vor.u32 %v5918_v2, %v4953_v0  ;;  %v1850_v52 = vpop.f32.mrf.mxu1  ;;  %v5828_v58 = vld [vmem:[#allocation2 + $0x570] sm:$0xf0]  ;;  %v5026_v0 = vor.u32 %v5936_v46, %v5025_v43  ;;  %v4917_v2 = vld [vmem:[#allocation4 + $0x48] sm:$0xf]  ;;  %v4989_v43 = vld [vmem:[#allocation4 + $0xd8] sm:$0xf] }
  0xef   :  { %2127 = vmatpush.bf16.msrb.mxu2 %v4253_v10  ;;  %v4812_v10 = vld [vmem:[#allocation2 + $0x718] sm:$0xf]  ;;  %v5927_v46 = vld [vmem:[#allocation4 + $0xe0] sm:$0xf0] }
  0xf0   :  { %2100 = vmatpush.bf16.msra.mxu3 %v3913_v17  ;;  %v4632_v17 = vld [vmem:[#allocation2 + $0x5b0] sm:$0xf]  ;;  %v4813_v26 = vor.u32 %v5883_v12, %v4812_v10  ;;  %v4752_v12 = vld [vmem:[#allocation2 + $0x6a0] sm:$0xf] }
  0xf1   :  { %2141 = vmatpush.bf16.msra.mxu0 %v4413_v25  ;;  %v5915_v25 = vld [vmem:[#allocation4 + $0x80] sm:$0xf0]  ;;  %v4633_v30 = vor.u32 %v5838_v18, %v4632_v17 }
  0xf2   :  { %2114 = vmatpush.bf16.msrb.mxu1 %v4073_v32  ;;  %v1824_v32 = vpop.f32.mrf.mxu2  ;;  %v5823_v18 = vld [vmem:[#allocation2 + $0x548] sm:$0xf0] }
  0xf3   :  { %2128 = vmatpush.bf16.msrb.mxu2 %v4233_v34  ;;  %2101 = vmatmul.bf16.vlgmr.msra.gmra.mxu3 %v6245_v57  ;;  %v5878_v57 = vld [vmem:[#allocation2 + $0x700] sm:$0xf0] }
  0xf4   :  { %2149 = vmatpush.bf16.msrb.mxu3 %v4693_v23  ;;  %v4941_v23 = vld [vmem:[#allocation4 + $0x78] sm:$0xf]  ;;  %v4793_v24 = vor.u32 %v5878_v57, %v4792_v44  ;;  %v4732_v57 = vld [vmem:[#allocation2 + $0x678] sm:$0xf] }
  0xf5   :  { %2142 = vmatpush.bf16.msra.mxu0 %v4393_v49  ;;  %2115 = vmatmul.bf16.vlgmr.msrb.gmra.mxu1 %v6261_v11  ;;  %v4942_v34 = vor.u32 %v5915_v25, %v4941_v23  ;;  %v4772_v49 = vld [vmem:[#allocation2 + $0x6c8] sm:$0xf]  ;;  %v1838_v17 = vpop.f32.mrf.mxu0  ;;  %v5014_v23 = vor.u32 %v5933_v40, %v5013_v5  ;;  %v4905_v25 = vld [vmem:[#allocation4 + $0x30] sm:$0xf]  ;;  %v5924_v5 = vld [vmem:[#allocation4 + $0xc8] sm:$0xf0] }
  0xf6   :  { %2163 = vmatpush.bf16.msra.mxu1 %v4853_v38  ;;  %2129 = vmatmul.bf16.vlgmr.msrb.gmra.mxu2 %v6250_v59  ;;  %v1727_v59 = vadd.f32 %v6330_v33, %v1713_v7  ;;  %v1725_v38 = vadd.f32 %v6321_v62, %v1711_v19  ;;  %v5912_v33 = vld [vmem:[#allocation4 + $0x68] sm:$0xf0]  ;;  %v4592_v62 = vld [vmem:[#allocation2 + $0x560] sm:$0xf]  ;;  %v1837_v7 = vadd.f32 %v1836_v31, %v1823_v47  ;;  %v5863_v31 = vld [vmem:[#allocation2 + $0x688] sm:$0xf0] }
  0xf7   :  { %2184 = vmatpush.bf16.msra.mxu2 %v4873_v41  ;;  %v4929_v41 = vld [vmem:[#allocation4 + $0x60] sm:$0xf]  ;;  %v4593_v10 = vor.u32 %v5828_v58, %v4592_v62 }
  0xf8   :  { %2150 = vmatpush.bf16.msrb.mxu3 %v4673_v48  ;;  %2143 = vmatmul.bf16.vlgmr.msra.gmra.mxu0 %v6252_v61  ;;  %v5038_v61 = vor.u32 %v5939_v28, %v5037_v27  ;;  %v1741_v11 = vadd.f32 %v6318_v45, %v1727_v59  ;;  %v4613_v48 = vor.u32 %v5833_v36, %v4612_v35  ;;  %v5001_v28 = vld [vmem:[#allocation4 + $0xf0] sm:$0xf]  ;;  %v5930_v59 = vld [vmem:[#allocation4 + $0xf8] sm:$0xf0] }
  0xf9   :  { %3015 = vmatpush.bf16.msrb.mxu0 %v4966_v56  ;;  %v4930_v56 = vor.u32 %v5912_v33, %v4929_v41  ;;  %v1739_v60 = vadd.f32 %v6312_v3, %v1725_v38  ;;  %v4773_v45 = vor.u32 %v5873_v51, %v4772_v49  ;;  %v5002_v38 = vor.u32 %v5930_v59, %v5001_v28  ;;  %v5969_v41 = vld [vmem:[#allocation4 + $0x230] sm:$0xf0]  ;;  %v1852_v33 = vpop.f32.mrf.mxu1  ;;  %v5858_v49 = vld [vmem:[#allocation2 + $0x660] sm:$0xf0]  ;;  %v5121_v59 = vld [vmem:[#allocation4 + $0x1e0] sm:$0xf] }
  0xfa   :  { %2164 = vmatpush.bf16.msra.mxu1 %v4833_v4  ;;  %v5909_v4 = vld [vmem:[#allocation4 + $0x50] sm:$0xf0]  ;;  %v1755_v6 = vadd.f32 %v6332_v39, %v1741_v11  ;;  %v5906_v39 = vld [vmem:[#allocation4 + $0x38] sm:$0xf0] }
  0xfb   :  { %3029 = vmatpush.bf16.msrb.mxu2 %v5062_v63  ;;  %v1811_v63 = vadd.f32 %v1810_v20, %v379_v8  ;;  %v4918_v3 = vor.u32 %v5909_v4, %v4917_v2  ;;  %v4572_v8 = vld [vmem:[#allocation2 + $0x538] sm:$0xf]  ;;  %v1753_v19 = vadd.f32 %v6323_v1, %v1739_v60  ;;  %v4906_v1 = vor.u32 %v5906_v39, %v4905_v25  ;;  %v5966_v4 = vld [vmem:[#allocation4 + $0x218] sm:$0xf0]  ;;  %v4955_v25 = vld [vmem:[#allocation4 + $0x9c] sm:$0xf0] }
  0xfc   :  { %2151 = vmatpush.bf16.msrb.mxu3 %v4653_v9  ;;  %v1864_v9 = vpop.f32.mrf.mxu3  ;;  %v1769_v20 = vadd.f32 %v6349_v53, %v1755_v6  ;;  %v4573_v44 = vor.u32 %v5823_v18, %v4572_v8  ;;  %v4552_v53 = vld [vmem:[#allocation2 + $0x510] sm:$0xf]  ;;  %v5145_v2 = vld [vmem:[#allocation4 + $0x210] sm:$0xf]  ;;  %v5133_v8 = vld [vmem:[#allocation4 + $0x1f8] sm:$0xf] }
  0xfd   :  { %3016 = vmatpush.bf16.msrb.mxu0 %v4954_v15  ;;  %v5868_v15 = vld [vmem:[#allocation2 + $0x6b0] sm:$0xf0]  ;;  %v1767_v29 = vadd.f32 %v6336_v54, %v1753_v19  ;;  %v5157_v54 = vld [vmem:[#allocation4 + $0x228] sm:$0xf]  ;;  %v5963_v18 = vld [vmem:[#allocation4 + $0x200] sm:$0xf0] }
  0xfe   :  { %2165 = vmatpush.bf16.msra.mxu1 %v4813_v26  ;;  %v1878_v26 = vpop.f32.mrf.mxu2  ;;  %v4753_v27 = vor.u32 %v5868_v15, %v4752_v12  ;;  %v1783_v35 = vadd.f32 %v6353_v13, %v1769_v20  ;;  %v1892_v13 = vpop.f32.mrf.mxu0  ;;  %v5158_v62 = vor.u32 %v5969_v41, %v5157_v54  ;;  %v5146_v15 = vor.u32 %v5966_v4, %v5145_v2  ;;  %v4931_v54 = vld [vmem:[#allocation4 + $0x6c] sm:$0xf0]  ;;  %v4907_v2 = vld [vmem:[#allocation4 + $0x3c] sm:$0xf0] }
  0xff   :  { %3030 = vmatpush.bf16.msrb.mxu2 %v5050_v21  ;;  %v1825_v21 = vadd.f32 %v1824_v32, %v1811_v63  ;;  %v5818_v32 = vld [vmem:[#allocation2 + $0x520] sm:$0xf0]  ;;  %v1781_v11 = vadd.f32 %v6340_v16, %v1767_v29  ;;  %v4990_v63 = vor.u32 %v5927_v46, %v4989_v43  ;;  %v5960_v29 = vld [vmem:[#allocation4 + $0x1e8] sm:$0xf0]  ;;  %v5097_v43 = vld [vmem:[#allocation4 + $0x1b0] sm:$0xf] }
 0x100   :  { %2152 = vmatpush.bf16.msrb.mxu3 %v4633_v30  ;;  %v1851_v30 = vadd.f32 %v1850_v52, %v1837_v7  ;;  %v4553_v47 = vor.u32 %v5818_v32, %v4552_v53  ;;  %v1797_v58 = vadd.f32 %v6338_v55, %v1783_v35  ;;  %v5253_v53 = vld [vmem:[#allocation4 + $0x2e8] sm:$0xf]  ;;  %v5993_v32 = vld [vmem:[#allocation4 + $0x2f0] sm:$0xf0]  ;;  %v5954_v46 = vld [vmem:[#allocation4 + $0x1b8] sm:$0xf0] }
 0x101   :  { %3017 = vmatpush.bf16.msrb.mxu0 %v4942_v34  ;;  %v4893_v34 = vld [vmem:[#allocation4 + $0x18] sm:$0xf]  ;;  %v1839_v36 = vadd.f32 %v1838_v17, %v1825_v21  ;;  %v1795_v40 = vadd.f32 %v6326_v14, %v1781_v11  ;;  %v5109_v35 = vld [vmem:[#allocation4 + $0x1c8] sm:$0xf] }
 0x102   :  { %2166 = vmatpush.bf16.msra.mxu1 %v4793_v24  ;;  %v4733_v24 = vor.u32 %v5863_v31, %v4732_v57  ;;  %v2196_v17 = vmax.f32 %v1797_v58, 0.0  ;;  %v5914_v57 = vld [vmem:[#allocation4 + $0x7c] sm:$0xf]  ;;  %v4943_v31 = vld [vmem:[#allocation4 + $0x84] sm:$0xf0] }
 0x103   :  { %3031 = vmatpush.bf16.msrb.mxu2 %v5038_v61  ;;  %v5903_v61 = vld [vmem:[#allocation4 + $0x20] sm:$0xf0]  ;;  %v1853_v60 = vadd.f32 %v1852_v33, %v1839_v36  ;;  %v2191_v14 = vmax.f32 %v1795_v40, 0.0  ;;  %v5254_v36 = vor.u32 %v5993_v32, %v5253_v53  ;;  %v5241_v33 = vld [vmem:[#allocation4 + $0x2d0] sm:$0xf] }
 0x104   :  { %2153 = vmatpush.bf16.msrb.mxu3 %v4613_v48  ;;  %v4712_v48 = vld [vmem:[#allocation2 + $0x650] sm:$0xf]  ;;  %v1866_v51 = vpop.f32.mrf.mxu3  ;;  %v4894_v52 = vor.u32 %v5903_v61, %v4893_v34  ;;  %v5911_v61 = vld [vmem:[#allocation4 + $0x64] sm:$0xf]  ;;  %v5948_v40 = vld [vmem:[#allocation4 + $0x188] sm:$0xf0] }
 0x105   :  { %3018 = vmatpush.bf16.msrb.mxu0 %v4930_v56  ;;  %v4881_v56 = vld [vmem:[#allocation4] sm:$0xf]  ;;  %v4713_v16 = vor.u32 %v5858_v49, %v4712_v48  ;;  %v1867_v7 = vadd.f32 %v1866_v51, %v1853_v60  ;;  %v4919_v48 = vld [vmem:[#allocation4 + $0x54] sm:$0xf0]  ;;  %v5098_v49 = vor.u32 %v5954_v46, %v5097_v43  ;;  %v5975_v32 = vld [vmem:[#allocation4 + $0x260] sm:$0xf0] }
 0x106   :  { %2167 = vmatpush.bf16.msra.mxu1 %v4773_v45  ;;  %4878 = vmatmul.msk.bf16.vlgmr.msra.gmra.mxu2 %vm1697_vm0, %v6272_v50  ;;  %v1865_v50 = vadd.f32 %v1864_v9, %v1851_v30  ;;  %v4977_v45 = vld [vmem:[#allocation4 + $0xc0] sm:$0xf]  ;;  %v5920_v9 = vld [vmem:[#allocation4 + $0xac] sm:$0xf]  ;;  %v1880_v12 = vpop.f32.mrf.mxu2  ;;  %v1894_v39 = vpop.f32.mrf.mxu0  ;;  %v5229_v51 = vld [vmem:[#allocation4 + $0x2b8] sm:$0xf] }
 0x107   :  { %3032 = vmatpush.bf16.msrb.mxu2 %v5026_v0  ;;  %v5900_v0 = vld [vmem:[#allocation4 + $0x8] sm:$0xf0]  ;;  %v1881_v21 = vadd.f32 %v1880_v12, %v1867_v7  ;;  %v5902_v12 = vld [vmem:[#allocation4 + $0x1c] sm:$0xf]  ;;  %v5181_v53 = vld [vmem:[#allocation4 + $0x258] sm:$0xf] }
 0x108   :  { %2154 = vmatpush.bf16.msrb.mxu3 %v4593_v10  ;;  %v1879_v6 = vadd.f32 %v1878_v26, %v1865_v50  ;;  %v4967_v10 = vld [vmem:[#allocation4 + $0xb4] sm:$0xf0]  ;;  %v4882_v55 = vor.u32 %v5900_v0, %v4881_v56  ;;  %v5134_v26 = vor.u32 %v5963_v18, %v5133_v8  ;;  %v4934_v50 = vor.u32 %v5911_v61, %v4931_v54  ;;  %v5951_v56 = vld [vmem:[#allocation4 + $0x1a0] sm:$0xf0]  ;;  %v5905_v0 = vld [vmem:[#allocation4 + $0x34] sm:$0xf] }
 0x109   :  { %3019 = vmatpush.bf16.msrb.mxu0 %v4918_v3  ;;  %v4978_v3 = vor.u32 %v5924_v5, %v4977_v45  ;;  %v4970_v19 = vor.u32 %v5920_v9, %v4967_v10  ;;  %v1895_v28 = vadd.f32 %v1894_v39, %v1881_v21  ;;  %v5984_v45 = vld [vmem:[#allocation4 + $0x2a8] sm:$0xf0]  ;;  %v5073_v5 = vld [vmem:[#allocation4 + $0x180] sm:$0xf]  ;;  %v4910_v7 = vor.u32 %v5905_v0, %v4907_v2  ;;  %v5063_v10 = vld [vmem:[#allocation4 + $0x174] sm:$0xf0] }
 0x10a   :  { %2168 = vmatpush.bf16.msra.mxu1 %v4753_v27  ;;  %v1893_v20 = vadd.f32 %v1892_v13, %v1879_v6  ;;  %v6377_v27 = vpack.c.bf16 %v2196_v17, %v2191_v14  ;;  %v5987_v13 = vld [vmem:[#allocation4 + $0x2c0] sm:$0xf0]  ;;  %v5944_v9 = vld [vmem:[#allocation4 + $0x16c] sm:$0xf]  ;;  %v5205_v17 = vld [vmem:[#allocation4 + $0x288] sm:$0xf] }
 0x10b   :  { %3033 = vmatpush.bf16.msrb.mxu2 %v5014_v23  ;;  %v5917_v23 = vld [vmem:[#allocation4 + $0x94] sm:$0xf]  ;;  %v5230_v58 = vor.u32 %v5987_v13, %v5229_v51  ;;  %v5066_v18 = vor.u32 %v5944_v9, %v5063_v10  ;;  %v380_v14 = vperm.slane %v6342_v22, 2  ;;  %v4883_v39 = vld [vmem:[#allocation4 + $0xc] sm:$0xf0] }
 0x10c   :  { %2155 = vmatpush.bf16.msrb.mxu3 %v4573_v44  ;;  %v2192_v30 = vmax.f32 %v1893_v20, 0.0  ;;  %v2197_v44 = vmax.f32 %v1895_v28, 0.0  ;;  %v5941_v21 = vld [vmem:[#allocation4 + $0x154] sm:$0xf]  ;;  %v5193_v28 = vld [vmem:[#allocation4 + $0x270] sm:$0xf] }
 0x10d   :  { %3020 = vmatpush.bf16.msrb.mxu0 %v4906_v1  ;;  %v5122_v1 = vor.u32 %v5960_v29, %v5121_v59  ;;  %v5978_v59 = vld [vmem:[#allocation4 + $0x278] sm:$0xf0]  ;;  %v5027_v61 = vld [vmem:[#allocation4 + $0x12c] sm:$0xf0]  ;;  %v5932_v51 = vld [vmem:[#allocation4 + $0x10c] sm:$0xf] }
 0x10e   :  { %2169 = vmatpush.bf16.msra.mxu1 %v4733_v24  ;;  %v6381_v34 = vpack.c.bf16 %v2197_v44, %v2192_v30  ;;  %v5990_v24 = vld [vmem:[#allocation4 + $0x2d8] sm:$0xf0]  ;;  %v5194_v30 = vor.u32 %v5978_v59, %v5193_v28  ;;  %v5015_v13 = vld [vmem:[#allocation4 + $0x114] sm:$0xf0]  ;;  %v5956_v59 = vld [vmem:[#allocation4 + $0x1cc] sm:$0xf] }
 0x10f   :  { %3034 = vmatpush.bf16.msrb.mxu2 %v5002_v38  ;;  %v4946_v38 = vor.u32 %v5914_v57, %v4943_v31  ;;  %v5242_v11 = vor.u32 %v5990_v24, %v5241_v33  ;;  %v5938_v31 = vld [vmem:[#allocation4 + $0x13c] sm:$0xf]  ;;  %v5972_v33 = vld [vmem:[#allocation4 + $0x248] sm:$0xf0] }
 0x110   :  { %2156 = vmatpush.bf16.msrb.mxu3 %v4553_v47  ;;  %v5908_v47 = vld [vmem:[#allocation4 + $0x4c] sm:$0xf]  ;;  %v5926_v10 = vld [vmem:[#allocation4 + $0xdc] sm:$0xf] }
 0x111   :  { %3021 = vmatpush.bf16.msrb.mxu0 %v4894_v52  ;;  %v5085_v52 = vld [vmem:[#allocation4 + $0x198] sm:$0xf]  ;;  %v4922_v60 = vor.u32 %v5908_v47, %v4919_v48 }
 0x112   :  { %2170 = vmatpush.bf16.msra.mxu1 %v4713_v16  ;;  %v5086_v4 = vor.u32 %v5951_v56, %v5085_v52  ;;  %v5217_v16 = vld [vmem:[#allocation4 + $0x2a0] sm:$0xf]  ;;  %v5159_v47 = vld [vmem:[#allocation4 + $0x234] sm:$0xf0] }
 0x113   :  { %3035 = vmatpush.bf16.msrb.mxu2 %v4990_v63  ;;  %2157 = vmatmul.bf16.vlgmr.msrb.gmra.mxu3 %v6288_v37  ;;  %v4958_v37 = vor.u32 %v5917_v23, %v4955_v25  ;;  %v1906_v63 = vpop.f32.mrf.mxu1  ;;  %v5218_v6 = vor.u32 %v5984_v45, %v5217_v16  ;;  %v5051_v23 = vld [vmem:[#allocation4 + $0x15c] sm:$0xf0]  ;;  %v5899_v25 = vld [vmem:[#allocation4 + $0x4] sm:$0xf] }
 0x114   :  { %3043 = vmatpush.bf16.msra.mxu3 %v5158_v62  ;;  %v6384_v62 = vpop.f32.mrf.mxu0  ;;  %v1907_v44 = vadd.f32 %v1906_v63, %v380_v14  ;;  %v4886_v57 = vor.u32 %v5899_v25, %v4883_v39  ;;  %v5147_v63 = vld [vmem:[#allocation4 + $0x21c] sm:$0xf0] }
 0x115   :  { %3022 = vmatpush.bf16.msrb.mxu0 %v4882_v55  ;;  %2171 = vmatmul.bf16.vlgmr.msra.gmra.mxu1 %v6290_v42  ;;  %v5957_v42 = vld [vmem:[#allocation4 + $0x1d0] sm:$0xf0]  ;;  %v4895_v55 = vld [vmem:[#allocation4 + $0x24] sm:$0xf0]  ;;  %v5003_v16 = vld [vmem:[#allocation4 + $0xfc] sm:$0xf0] }
 0x116   :  { %3057 = vmatpush.bf16.msrb.mxu1 %v5254_v36  ;;  %v5110_v41 = vor.u32 %v5957_v42, %v5109_v35  ;;  %v1920_v8 = vpop.f32.mrf.mxu3  ;;  %v4898_v20 = vor.u32 %v5902_v12, %v4895_v55  ;;  %v5182_v35 = vor.u32 %v5975_v32, %v5181_v53  ;;  %v4991_v12 = vld [vmem:[#allocation4 + $0xe4] sm:$0xf0]  ;;  %v5953_v32 = vld [vmem:[#allocation4 + $0x1b4] sm:$0xf] }
 0x117   :  { %3036 = vmatpush.bf16.msrb.mxu2 %v4978_v3  ;;  %v5981_v3 = vld [vmem:[#allocation4 + $0x290] sm:$0xf0]  ;;  %v1921_v36 = vadd.f32 %v1920_v8, %v1907_v44  ;;  %v4994_v8 = vor.u32 %v5926_v10, %v4991_v12 }
 0x118   :  { %3044 = vmatpush.bf16.msra.mxu3 %v5146_v15  ;;  %3023 = vmatmul.bf16.vlgmr.msrb.gmra.mxu0 %v6377_v27  ;;  %v5074_v15 = vor.u32 %v5948_v40, %v5073_v5 }
 0x119   :  { %v1948_v24 = vpop.f32.mrf.mxu2 }
 0x11a   :  { %3037 = vmatmul.bf16.vlgmr.msrb.gmra.mxu2 %v6381_v34  ;;  %3058 = vmatpush.bf16.msrb.mxu1 %v5242_v11 }
 0x11b   :  { %3085 = vmatpush.bf16.msra.mxu2 %v4970_v19  ;;  %v5206_v19 = vor.u32 %v5981_v3, %v5205_v17  ;;  %v1908_v29 = vpop.f32.mrf.mxu1 }
 0x11c   :  { %3045 = vmatpush.bf16.msra.mxu3 %v5134_v26  ;;  %v1936_v26 = vpop.f32.mrf.mxu0  ;;  %v1909_v48 = vadd.f32 %v1908_v29, %v380_v14  ;;  %v5111_v29 = vld [vmem:[#allocation4 + $0x1d4] sm:$0xf0] }
 0x11d   :  { %v5114_v44 = vor.u32 %v5956_v59, %v5111_v29  ;;  %v5301_v59 = vld [vmem:[#allocation4 + $0x348] sm:$0xf]  ;;  %v6005_v29 = vld [vmem:[#allocation4 + $0x350] sm:$0xf0] }
 0x11e   :  { %3059 = vmatpush.bf16.msrb.mxu1 %v5230_v58  ;;  %v1922_v54 = vpop.f32.mrf.mxu3  ;;  %v5018_v58 = vor.u32 %v5932_v51, %v5015_v13  ;;  %v4949_v51 = vld [vmem:[#allocation4 + $0x80] sm:$0xf]  ;;  %v5916_v13 = vld [vmem:[#allocation4 + $0x88] sm:$0xf0] }
 0x11f   :  { %3086 = vmatpush.bf16.msra.mxu2 %v4958_v37  ;;  %v5054_v37 = vor.u32 %v5941_v21, %v5051_v23  ;;  %v1923_v2 = vadd.f32 %v1922_v54, %v1909_v48  ;;  %v5923_v21 = vld [vmem:[#allocation4 + $0xc4] sm:$0xf]  ;;  %v4979_v23 = vld [vmem:[#allocation4 + $0xcc] sm:$0xf0] }
 0x120   :  { %3046 = vmatpush.bf16.msra.mxu3 %v5122_v1  ;;  %v5039_v1 = vld [vmem:[#allocation4 + $0x144] sm:$0xf0]  ;;  %v4982_v28 = vor.u32 %v5923_v21, %v4979_v23 }
 0x121   :  { %v5042_v42 = vor.u32 %v5938_v31, %v5039_v1  ;;  %v4973_v31 = vld [vmem:[#allocation4 + $0xb0] sm:$0xf]  ;;  %v5922_v1 = vld [vmem:[#allocation4 + $0xb8] sm:$0xf0] }
 0x122   :  { %3060 = vmatpush.bf16.msrb.mxu1 %v5218_v6  ;;  %v5135_v6 = vld [vmem:[#allocation4 + $0x204] sm:$0xf0]  ;;  %v4974_v54 = vor.u32 %v5922_v1, %v4973_v31 }
 0x123   :  { %3087 = vmatpush.bf16.msra.mxu2 %v4946_v38  ;;  %v5935_v38 = vld [vmem:[#allocation4 + $0x124] sm:$0xf] }
 0x124   :  { %3047 = vmatpush.bf16.msra.mxu3 %v5110_v41  ;;  %v5169_v41 = vld [vmem:[#allocation4 + $0x240] sm:$0xf]  ;;  %v5030_v43 = vor.u32 %v5935_v38, %v5027_v61  ;;  %v1990_v46 = vpop.f32.mrf.mxu0 }
 0x125   :  { %v5170_v11 = vor.u32 %v5972_v33, %v5169_v41  ;;  %v4961_v41 = vld [vmem:[#allocation4 + $0x98] sm:$0xf] }
 0x126   :  { %3061 = vmatpush.bf16.msrb.mxu1 %v5206_v19  ;;  %v5123_v19 = vld [vmem:[#allocation4 + $0x1ec] sm:$0xf0] }
 0x127   :  { %3088 = vmatpush.bf16.msra.mxu2 %v4934_v50  ;;  %v5968_v50 = vld [vmem:[#allocation4 + $0x22c] sm:$0xf] }
 0x128   :  { %3048 = vmatpush.bf16.msra.mxu3 %v5098_v49  ;;  %v1935_v49 = vadd.f32 %v6384_v62, %v1921_v36  ;;  %v5162_v52 = vor.u32 %v5968_v50, %v5159_v47  ;;  %v5962_v62 = vld [vmem:[#allocation4 + $0x1fc] sm:$0xf]  ;;  %v5087_v47 = vld [vmem:[#allocation4 + $0x1a4] sm:$0xf0] }
 0x129   :  { %v5138_v55 = vor.u32 %v5962_v62, %v5135_v6  ;;  %v5950_v50 = vld [vmem:[#allocation4 + $0x19c] sm:$0xf]  ;;  %v5913_v62 = vld [vmem:[#allocation4 + $0x70] sm:$0xf0]  ;;  %v5325_v6 = vld [vmem:[#allocation4 + $0x378] sm:$0xf] }
 0x12a   :  { %3062 = vmatpush.bf16.msrb.mxu1 %v5194_v30  ;;  %v1949_v0 = vadd.f32 %v1948_v24, %v1935_v49  ;;  %v5919_v24 = vld [vmem:[#allocation4 + $0xa0] sm:$0xf0]  ;;  %v5090_v48 = vor.u32 %v5950_v50, %v5087_v47 }
 0x12b   :  { %3089 = vmatpush.bf16.msra.mxu2 %v4922_v60  ;;  %v5965_v60 = vld [vmem:[#allocation4 + $0x214] sm:$0xf]  ;;  %v4962_v49 = vor.u32 %v5919_v24, %v4961_v41  ;;  %v6010_v24 = vld [vmem:[#allocation4 + $0x37c] sm:$0xf] }
 0x12c   :  { %3049 = vmatpush.bf16.msra.mxu3 %v5086_v4  ;;  %v5929_v4 = vld [vmem:[#allocation4 + $0xf4] sm:$0xf]  ;;  %v5150_v45 = vor.u32 %v5965_v60, %v5147_v63  ;;  %v1992_v17 = vpop.f32.mrf.mxu0  ;;  %v5947_v63 = vld [vmem:[#allocation4 + $0x184] sm:$0xf] }
 0x12d   :  { %v5006_v40 = vor.u32 %v5929_v4, %v5003_v16  ;;  %v4950_v16 = vor.u32 %v5916_v13, %v4949_v51  ;;  %v5901_v13 = vld [vmem:[#allocation4 + $0x10] sm:$0xf0] }
 0x12e   :  { %3063 = vmatpush.bf16.msrb.mxu1 %v5182_v35  ;;  %v1962_v56 = vpop.f32.mrf.mxu1  ;;  %v5099_v35 = vld [vmem:[#allocation4 + $0x1bc] sm:$0xf0] }
 0x12f   :  { %3090 = vmatpush.bf16.msra.mxu2 %v4910_v7  ;;  %v1937_v7 = vadd.f32 %v1936_v26, %v1923_v2  ;;  %v1963_v9 = vadd.f32 %v1962_v56, %v1949_v0  ;;  %v5102_v61 = vor.u32 %v5953_v32, %v5099_v35  ;;  %v6014_v56 = vld [vmem:[#allocation4 + $0x398] sm:$0xf0]  ;;  %v5075_v0 = vld [vmem:[#allocation4 + $0x18c] sm:$0xf0] }
 0x130   :  { %3050 = vmatpush.bf16.msra.mxu3 %v5074_v15  ;;  %v1950_v15 = vpop.f32.mrf.mxu2  ;;  %v5078_v2 = vor.u32 %v5947_v63, %v5075_v0  ;;  %v6007_v63 = vld [vmem:[#allocation4 + $0x364] sm:$0xf]  ;;  %v5315_v0 = vld [vmem:[#allocation4 + $0x36c] sm:$0xf0] }
 0x131   :  { %v1951_v14 = vadd.f32 %v1950_v15, %v1937_v7  ;;  %v6011_v7 = vld [vmem:[#allocation4 + $0x380] sm:$0xf0]  ;;  %v5910_v15 = vld [vmem:[#allocation4 + $0x58] sm:$0xf0] }
 0x132   :  { %3064 = vmatpush.bf16.msrb.mxu1 %v5170_v11  ;;  %v5326_v10 = vor.u32 %v6011_v7, %v5325_v6  ;;  %v5265_v7 = vld [vmem:[#allocation4 + $0x300] sm:$0xf] }
 0x133   :  { %3091 = vmatpush.bf16.msra.mxu2 %v4898_v20 }
 0x134   :  { %3099 = vmatpush.bf16.msrb.mxu3 %v5066_v18  ;;  %v5959_v18 = vld [vmem:[#allocation4 + $0x1e4] sm:$0xf] }
 0x135   :  { %v5126_v25 = vor.u32 %v5959_v18, %v5123_v19  ;;  %v2018_v53 = vpop.f32.mrf.mxu0 }
 0x136   :  { %3113 = vmatpush.bf16.msra.mxu1 %v5162_v52  ;;  %v1976_v5 = vpop.f32.mrf.mxu3  ;;  %v1964_v3 = vpop.f32.mrf.mxu1  ;;  %v5337_v52 = vld [vmem:[#allocation4 + $0x390] sm:$0xf] }
 0x137   :  { %3092 = vmatpush.bf16.msra.mxu2 %v4886_v57  ;;  %v1977_v20 = vadd.f32 %v1976_v5, %v1963_v9  ;;  %v1965_v39 = vadd.f32 %v1964_v3, %v1951_v14  ;;  %v5338_v60 = vor.u32 %v6014_v56, %v5337_v52  ;;  %v6008_v3 = vld [vmem:[#allocation4 + $0x368] sm:$0xf0]  ;;  %v5351_v14 = vld [vmem:[#allocation4 + $0x3b4] sm:$0xf0]  ;;  %v5999_v56 = vld [vmem:[#allocation4 + $0x320] sm:$0xf0] }
 0x138   :  { %3100 = vmatpush.bf16.msrb.mxu3 %v5054_v37  ;;  %v5277_v52 = vld [vmem:[#allocation4 + $0x318] sm:$0xf] }
 0x139   :  { %v1991_v37 = vadd.f32 %v1990_v46, %v1977_v20  ;;  %v2004_v38 = vpop.f32.mrf.mxu2  ;;  %v6017_v46 = vld [vmem:[#allocation4 + $0x3b0] sm:$0xf0] }
 0x13a   :  { %3093 = vmatmul.bf16.vlgmr.msra.gmra.mxu2 %v6377_v27  ;;  %3114 = vmatpush.bf16.msra.mxu1 %v5150_v45  ;;  %v4937_v45 = vld [vmem:[#allocation4 + $0x68] sm:$0xf] }
 0x13b   :  { %v4938_v12 = vor.u32 %v5913_v62, %v4937_v45 }
 0x13c   :  { %3101 = vmatpush.bf16.msrb.mxu3 %v5042_v42  ;;  %v2193_v42 = vmax.f32 %v1991_v37, 0.0 }
 0x13d   :  { %v2020_v4 = vpop.f32.mrf.mxu0 }
 0x13e   :  { %3115 = vmatpush.bf16.msra.mxu1 %v5138_v55  ;;  %v1978_v26 = vpop.f32.mrf.mxu3  ;;  %v4925_v55 = vld [vmem:[#allocation4 + $0x50] sm:$0xf] }
 0x13f   :  { %v1979_v30 = vadd.f32 %v1978_v26, %v1965_v39  ;;  %v4913_v39 = vld [vmem:[#allocation4 + $0x38] sm:$0xf] }
 0x140   :  { %3102 = vmatpush.bf16.msrb.mxu3 %v5030_v43  ;;  %v5349_v43 = vld [vmem:[#allocation4 + $0x3a8] sm:$0xf] }
 0x141   :  { %v1993_v57 = vadd.f32 %v1992_v17, %v1979_v30  ;;  %v5350_v11 = vor.u32 %v6017_v46, %v5349_v43  ;;  %v5313_v17 = vld [vmem:[#allocation4 + $0x360] sm:$0xf]  ;;  %v5302_v30 = vor.u32 %v6005_v29, %v5301_v59  ;;  %v5327_v43 = vld [vmem:[#allocation4 + $0x384] sm:$0xf0]  ;;  %v5069_v29 = vld [vmem:[#allocation4 + $0x170] sm:$0xf] }
 0x142   :  { %3116 = vmatpush.bf16.msra.mxu1 %v5126_v25  ;;  %v5314_v19 = vor.u32 %v6008_v3, %v5313_v17  ;;  %v4926_v25 = vor.u32 %v5910_v15, %v4925_v55  ;;  %v5992_v55 = vld [vmem:[#allocation4 + $0x2ec] sm:$0xf]  ;;  %v5255_v15 = vld [vmem:[#allocation4 + $0x2f4] sm:$0xf0] }
 0x143   :  { %v2198_v36 = vmax.f32 %v1993_v57, 0.0  ;;  %3071 = vmatpush.bf16.msra.mxu0 %v5350_v11  ;;  %v5339_v57 = vld [vmem:[#allocation4 + $0x39c] sm:$0xf0]  ;;  %v5330_v11 = vor.u32 %v6010_v24, %v5327_v43  ;;  %v6004_v17 = vld [vmem:[#allocation4 + $0x34c] sm:$0xf]  ;;  %v5258_v3 = vor.u32 %v5992_v55, %v5255_v15 }
 0x144   :  { %3103 = vmatpush.bf16.msrb.mxu3 %v5018_v58  ;;  %v381_v58 = vperm.slane %v6342_v22, 3  ;;  %v5998_v24 = vld [vmem:[#allocation4 + $0x31c] sm:$0xf]  ;;  %v5991_v55 = vld [vmem:[#allocation4 + $0x2e0] sm:$0xf0] }
 0x145   :  { %v6389_v33 = vpack.c.bf16 %v2198_v36, %v2193_v42  ;;  %v4901_v42 = vld [vmem:[#allocation4 + $0x20] sm:$0xf]  ;;  %v5904_v36 = vld [vmem:[#allocation4 + $0x28] sm:$0xf0]  ;;  %v5297_v15 = vld [vmem:[#allocation4 + $0x338] sm:$0xf] }
 0x146   :  { %3117 = vmatpush.bf16.msra.mxu1 %v5114_v44  ;;  %v2005_v9 = vadd.f32 %v2004_v38, %v381_v58  ;;  %v6013_v44 = vld [vmem:[#allocation4 + $0x394] sm:$0xf]  ;;  %v5289_v38 = vld [vmem:[#allocation4 + $0x330] sm:$0xf]  ;;  %v4902_v47 = vor.u32 %v5904_v36, %v4901_v42  ;;  %v5057_v42 = vld [vmem:[#allocation4 + $0x158] sm:$0xf] }
 0x147   :  { %3051 = vmatmul.bf16.vlgmr.msra.gmra.mxu3 %v6389_v33  ;;  %3072 = vmatpush.bf16.msra.mxu0 %v5338_v60  ;;  %v5342_v32 = vor.u32 %v6013_v44, %v5339_v57  ;;  %v5278_v60 = vor.u32 %v5999_v56, %v5277_v52  ;;  %v5291_v44 = vld [vmem:[#allocation4 + $0x33c] sm:$0xf0]  ;;  %v5943_v36 = vld [vmem:[#allocation4 + $0x160] sm:$0xf0]  ;;  %v5219_v52 = vld [vmem:[#allocation4 + $0x2ac] sm:$0xf0] }
 0x148   :  { %3104 = vmatpush.bf16.msrb.mxu3 %v5006_v40  ;;  %v2006_v40 = vpop.f32.mrf.mxu2  ;;  %v2019_v18 = vadd.f32 %v2018_v53, %v2005_v9  ;;  %v5996_v9 = vld [vmem:[#allocation4 + $0x308] sm:$0xf0]  ;;  %v5995_v56 = vld [vmem:[#allocation4 + $0x304] sm:$0xf] }
 0x149   :  { %v2007_v20 = vadd.f32 %v2006_v40, %v381_v58  ;;  %v6018_v40 = vld [vmem:[#allocation4 + $0x3b8] sm:$0xf0] }
 0x14a   :  { %3118 = vmatpush.bf16.msra.mxu1 %v5102_v61  ;;  %v6002_v61 = vld [vmem:[#allocation4 + $0x338] sm:$0xf0] }
 0x14b   :  { %3073 = vmatpush.bf16.msra.mxu0 %v5326_v10  ;;  %v2021_v31 = vadd.f32 %v2020_v4, %v2007_v20  ;;  %v5290_v41 = vor.u32 %v6002_v61, %v5289_v38  ;;  %v5318_v4 = vor.u32 %v6007_v63, %v5315_v0  ;;  %v5345_v20 = vld [vmem:[#allocation4 + $0x398] sm:$0xf]  ;;  %v5261_v63 = vld [vmem:[#allocation4 + $0x2f0] sm:$0xf]  ;;  %v5994_v0 = vld [vmem:[#allocation4 + $0x2f8] sm:$0xf0] }
 0x14c   :  { %3105 = vmatpush.bf16.msrb.mxu3 %v4994_v8  ;;  %v6016_v8 = vld [vmem:[#allocation4 + $0x3ac] sm:$0xf] }
 0x14d   :  { %v5354_v21 = vor.u32 %v6016_v8, %v5351_v14  ;;  %v5303_v8 = vld [vmem:[#allocation4 + $0x354] sm:$0xf0] }
 0x14e   :  { %3119 = vmatpush.bf16.msra.mxu1 %v5090_v48  ;;  %v2032_v5 = vpop.f32.mrf.mxu1  ;;  %v4889_v48 = vld [vmem:[#allocation4 + $0x8] sm:$0xf]  ;;  %v5306_v14 = vor.u32 %v6004_v17, %v5303_v8 }
 0x14f   :  { %3074 = vmatpush.bf16.msra.mxu0 %v5314_v19  ;;  %3141 = vmatpush.bf16.msrb.mxu2 %v5354_v21  ;;  %v2033_v37 = vadd.f32 %v2032_v5, %v2019_v18  ;;  %v4890_v5 = vor.u32 %v5901_v13, %v4889_v48  ;;  %v6015_v21 = vld [vmem:[#allocation4 + $0x3a0] sm:$0xf0]  ;;  %v5045_v48 = vld [vmem:[#allocation4 + $0x140] sm:$0xf] }
 0x150   :  { %3106 = vmatpush.bf16.msrb.mxu3 %v4982_v28  ;;  %v5907_v28 = vld [vmem:[#allocation4 + $0x40] sm:$0xf0] }
 0x151   :  { %v4914_v35 = vor.u32 %v5907_v28, %v4913_v39  ;;  %v5989_v39 = vld [vmem:[#allocation4 + $0x2d4] sm:$0xf]  ;;  %v5983_v13 = vld [vmem:[#allocation4 + $0x2a4] sm:$0xf] }
 0x152   :  { %3120 = vmatpush.bf16.msra.mxu1 %v5078_v2  ;;  %v6001_v28 = vld [vmem:[#allocation4 + $0x334] sm:$0xf] }
 0x153   :  { %3075 = vmatpush.bf16.msra.mxu0 %v5302_v30  ;;  %3142 = vmatpush.bf16.msrb.mxu2 %v5342_v32  ;;  %v5294_v57 = vor.u32 %v6001_v28, %v5291_v44  ;;  %v5931_v44 = vld [vmem:[#allocation4 + $0x100] sm:$0xf0] }
 0x154   :  { %3155 = vmatpush.bf16.msra.mxu3 %v4974_v54 }
 0x155   :  { %v2074_v53 = vpop.f32.mrf.mxu0 }
 0x156   :  { %v2046_v23 = vpop.f32.mrf.mxu3  ;;  %v2034_v26 = vpop.f32.mrf.mxu1 }
 0x157   :  { %3107 = vmatmul.bf16.vlgmr.msrb.gmra.mxu3 %v6381_v34  ;;  %v2047_v54 = vadd.f32 %v2046_v23, %v2033_v37  ;;  %v2035_v46 = vadd.f32 %v2034_v26, %v2021_v31  ;;  %3076 = vmatpush.bf16.msra.mxu0 %v5290_v41  ;;  %v5243_v26 = vld [vmem:[#allocation4 + $0x2dc] sm:$0xf0]  ;;  %v5946_v37 = vld [vmem:[#allocation4 + $0x178] sm:$0xf0]  ;;  %v5231_v41 = vld [vmem:[#allocation4 + $0x2c4] sm:$0xf0] }
 0x158   :  { %3156 = vmatpush.bf16.msra.mxu3 %v4962_v49  ;;  %3143 = vmatpush.bf16.msrb.mxu2 %v5330_v11  ;;  %v5246_v30 = vor.u32 %v5989_v39, %v5243_v26  ;;  %v5333_v31 = vld [vmem:[#allocation4 + $0x380] sm:$0xf]  ;;  %v6009_v11 = vld [vmem:[#allocation4 + $0x370] sm:$0xf0]  ;;  %v5988_v39 = vld [vmem:[#allocation4 + $0x2c8] sm:$0xf0] }
 0x159   :  { %v2060_v1 = vpop.f32.mrf.mxu2  ;;  %v5285_v26 = vld [vmem:[#allocation4 + $0x320] sm:$0xf] }
 0x15a   :  { %v2061_v58 = vadd.f32 %v2060_v1, %v2047_v54  ;;  %v6012_v1 = vld [vmem:[#allocation4 + $0x388] sm:$0xf0]  ;;  %v5986_v54 = vld [vmem:[#allocation4 + $0x2bc] sm:$0xf] }
 0x15b   :  { %3077 = vmatpush.bf16.msra.mxu0 %v5278_v60  ;;  %v5334_v38 = vor.u32 %v6012_v1, %v5333_v31  ;;  %v5234_v43 = vor.u32 %v5986_v54, %v5231_v41  ;;  %v5267_v60 = vld [vmem:[#allocation4 + $0x30c] sm:$0xf0]  ;;  %v5183_v31 = vld [vmem:[#allocation4 + $0x264] sm:$0xf0]  ;;  %v5997_v41 = vld [vmem:[#allocation4 + $0x310] sm:$0xf0] }
 0x15c   :  { %3157 = vmatpush.bf16.msra.mxu3 %v4950_v16  ;;  %v5357_v16 = vld [vmem:[#allocation4 + $0x3b0] sm:$0xf]  ;;  %3144 = vmatpush.bf16.msrb.mxu2 %v5318_v4  ;;  %v2075_v10 = vadd.f32 %v2074_v53, %v2061_v58  ;;  %v5222_v58 = vor.u32 %v5983_v13, %v5219_v52  ;;  %v5262_v4 = vor.u32 %v5994_v0, %v5261_v63  ;;  %v5982_v13 = vld [vmem:[#allocation4 + $0x298] sm:$0xf0]  ;;  %v4985_v52 = vld [vmem:[#allocation4 + $0xc8] sm:$0xf] }
 0x15d   :  { %v2076_v62 = vpop.f32.mrf.mxu0  ;;  %v5358_v6 = vor.u32 %v6018_v40, %v5357_v16  ;;  %v5309_v16 = vld [vmem:[#allocation4 + $0x350] sm:$0xf]  ;;  %v5033_v40 = vld [vmem:[#allocation4 + $0x128] sm:$0xf]  ;;  %v5201_v63 = vld [vmem:[#allocation4 + $0x278] sm:$0xf] }
 0x15e   :  { %v2048_v50 = vpop.f32.mrf.mxu3  ;;  %v2088_v51 = vpop.f32.mrf.mxu1  ;;  %v5979_v0 = vld [vmem:[#allocation4 + $0x280] sm:$0xf0] }
 0x15f   :  { %v2049_v49 = vadd.f32 %v2048_v50, %v2035_v46  ;;  %v2089_v18 = vadd.f32 %v2088_v51, %v2075_v10  ;;  %v5279_v46 = vld [vmem:[#allocation4 + $0x324] sm:$0xf0] }
 0x160   :  { %3158 = vmatpush.bf16.msra.mxu3 %v4938_v12  ;;  %v5266_v12 = vor.u32 %v5996_v9, %v5265_v7  ;;  %3145 = vmatpush.bf16.msrb.mxu2 %v5306_v14  ;;  %v5282_v50 = vor.u32 %v5998_v24, %v5279_v46  ;;  %v5980_v7 = vld [vmem:[#allocation4 + $0x28c] sm:$0xf]  ;;  %v5207_v9 = vld [vmem:[#allocation4 + $0x294] sm:$0xf0]  ;;  %v5934_v14 = vld [vmem:[#allocation4 + $0x118] sm:$0xf0] }
 0x161   :  { %v2062_v2 = vpop.f32.mrf.mxu2  ;;  %v2194_v53 = vmax.f32 %v2089_v18, 0.0  ;;  %v5210_v10 = vor.u32 %v5980_v7, %v5207_v9  ;;  %v5021_v18 = vld [vmem:[#allocation4 + $0x110] sm:$0xf] }
 0x162   :  { %v2063_v45 = vadd.f32 %v2062_v2, %v2049_v49  ;;  %3078 = vmatpush.bf16.msra.mxu0 %v5266_v12  ;;  %v5940_v49 = vld [vmem:[#allocation4 + $0x148] sm:$0xf0]  ;;  %v5270_v2 = vor.u32 %v5995_v56, %v5267_v60  ;;  %v5249_v12 = vld [vmem:[#allocation4 + $0x2d8] sm:$0xf]  ;;  %v5925_v56 = vld [vmem:[#allocation4 + $0xd0] sm:$0xf0] }
 0x163   :  { %v5250_v17 = vor.u32 %v5991_v55, %v5249_v12  ;;  %v5177_v12 = vld [vmem:[#allocation4 + $0x248] sm:$0xf]  ;;  %v5973_v55 = vld [vmem:[#allocation4 + $0x250] sm:$0xf0] }
 0x164   :  { %3159 = vmatpush.bf16.msra.mxu3 %v4926_v25  ;;  %v2077_v19 = vadd.f32 %v2076_v62, %v2063_v45  ;;  %v5346_v25 = vor.u32 %v6015_v21, %v5345_v20  ;;  %3146 = vmatpush.bf16.msrb.mxu2 %v5294_v57  ;;  %v6006_v45 = vld [vmem:[#allocation4 + $0x358] sm:$0xf0]  ;;  %v5977_v20 = vld [vmem:[#allocation4 + $0x274] sm:$0xf]  ;;  %v5195_v21 = vld [vmem:[#allocation4 + $0x27c] sm:$0xf0] }
 0x165   :  { %v5310_v62 = vor.u32 %v6006_v45, %v5309_v16  ;;  %v5974_v57 = vld [vmem:[#allocation4 + $0x25c] sm:$0xf]  ;;  %v5202_v16 = vor.u32 %v5979_v0, %v5201_v63  ;;  %v5409_v0 = vld [vmem:[%s6796_s3 + $0x60] sm:$0xf] }
 0x166   :  { %v2090_v23 = vpop.f32.mrf.mxu1  ;;  %3127 = vmatpush.bf16.msrb.mxu0 %v5258_v3  ;;  %v6003_v3 = vld [vmem:[#allocation4 + $0x340] sm:$0xf0] }
 0x167   :  { %v2091_v59 = vadd.f32 %v2090_v23, %v2077_v19  ;;  %v5298_v19 = vor.u32 %v6003_v3, %v5297_v15  ;;  %v5198_v23 = vor.u32 %v5977_v20, %v5195_v21 }
 0x168   :  { %3160 = vmatpush.bf16.msra.mxu3 %v4914_v35  ;;  %v5070_v35 = vor.u32 %v5946_v37, %v5069_v29  ;;  %3147 = vmatpush.bf16.msrb.mxu2 %v5282_v50  ;;  %v5022_v29 = vor.u32 %v5934_v14, %v5021_v18  ;;  %v5009_v37 = vld [vmem:[#allocation4 + $0xf8] sm:$0xf]  ;;  %v5171_v50 = vld [vmem:[#allocation4 + $0x24c] sm:$0xf0] }
 0x169   :  { %v2199_v32 = vmax.f32 %v2091_v59, 0.0  ;;  %v6000_v59 = vld [vmem:[#allocation4 + $0x328] sm:$0xf0]  ;;  %v5010_v24 = vor.u32 %v5931_v44, %v5009_v37  ;;  %v5970_v44 = vld [vmem:[#allocation4 + $0x238] sm:$0xf0] }
 0x16a   :  { %3128 = vmatpush.bf16.msrb.mxu0 %v5246_v30  ;;  %v5286_v30 = vor.u32 %v6000_v59, %v5285_v26 }
 0x16b   :  { %v6395_v61 = vpack.c.bf16 %v2199_v32, %v2194_v53  ;;  %v5186_v53 = vor.u32 %v5974_v57, %v5183_v31  ;;  %v5225_v32 = vld [vmem:[#allocation4 + $0x2a8] sm:$0xf] }
 0x16c   :  { %3161 = vmatpush.bf16.msra.mxu3 %v4902_v47  ;;  %v5058_v47 = vor.u32 %v5943_v36, %v5057_v42  ;;  %3148 = vmatpush.bf16.msrb.mxu2 %v5270_v2  ;;  %v5273_v42 = vld [vmem:[#allocation4 + $0x308] sm:$0xf] }
 0x16d   :  { %3065 = vmatmul.bf16.vlgmr.msrb.gmra.mxu1 %v6395_v61  ;;  %v5274_v46 = vor.u32 %v5997_v41, %v5273_v42  ;;  %v5129_v41 = vld [vmem:[#allocation4 + $0x1e8] sm:$0xf] }
 0x16e   :  { %3169 = vmatpush.bf16.msrb.mxu1 %v5070_v35  ;;  %3129 = vmatpush.bf16.msrb.mxu0 %v5234_v43  ;;  %v5985_v35 = vld [vmem:[#allocation4 + $0x2b0] sm:$0xf0]  ;;  %v4997_v43 = vld [vmem:[#allocation4 + $0xe0] sm:$0xf] }
 0x16f   :  { %v5226_v54 = vor.u32 %v5985_v35, %v5225_v32  ;;  %v5153_v32 = vld [vmem:[#allocation4 + $0x218] sm:$0xf]  ;;  %v5967_v35 = vld [vmem:[#allocation4 + $0x220] sm:$0xf0] }
 0x170   :  { %3162 = vmatpush.bf16.msra.mxu3 %v4890_v5  ;;  %v5046_v5 = vor.u32 %v5940_v49, %v5045_v48  ;;  %3197 = vmatpush.bf16.msra.mxu2 %v5262_v4  ;;  %v5213_v49 = vld [vmem:[#allocation4 + $0x290] sm:$0xf]  ;;  %v4986_v4 = vor.u32 %v5925_v56, %v4985_v52  ;;  %v5154_v42 = vor.u32 %v5967_v35, %v5153_v32  ;;  %v5081_v52 = vld [vmem:[#allocation4 + $0x188] sm:$0xf]  ;;  %v5949_v56 = vld [vmem:[#allocation4 + $0x190] sm:$0xf0] }
 0x171   :  { %v5387_v32 = vld [vmem:[%s6796_s3 + $0x38] sm:$0xf0] }
 0x172   :  { %3170 = vmatpush.bf16.msrb.mxu1 %v5058_v47  ;;  %3130 = vmatpush.bf16.msrb.mxu0 %v5222_v58  ;;  %v2116_v1 = vpop.f32.mrf.mxu1  ;;  %v382_v47 = vperm.slane %v6342_v22, 4  ;;  %v5214_v58 = vor.u32 %v5982_v13, %v5213_v49  ;;  %v5093_v49 = vld [vmem:[#allocation4 + $0x1a0] sm:$0xf] }
 0x173   :  { %3163 = vmatmul.bf16.vlgmr.msra.gmra.mxu3 %v6377_v27  ;;  %v5321_v27 = vld [vmem:[#allocation4 + $0x368] sm:$0xf] }
 0x174   :  { %3211 = vmatpush.bf16.msrb.mxu3 %v5358_v6  ;;  %v5322_v51 = vor.u32 %v6009_v11, %v5321_v27  ;;  %v5937_v6 = vld [vmem:[#allocation4 + $0x130] sm:$0xf0]  ;;  %3198 = vmatpush.bf16.msra.mxu2 %v5250_v17  ;;  %v5928_v27 = vld [vmem:[#allocation4 + $0xe8] sm:$0xf0]  ;;  %v5971_v11 = vld [vmem:[#allocation4 + $0x244] sm:$0xf]  ;;  %v5178_v17 = vor.u32 %v5973_v55, %v5177_v12 }
 0x175   :  { %v5034_v8 = vor.u32 %v5937_v6, %v5033_v40  ;;  %v5174_v48 = vor.u32 %v5971_v11, %v5171_v50  ;;  %v2144_v40 = vpop.f32.mrf.mxu0  ;;  %v5976_v6 = vld [vmem:[#allocation4 + $0x268] sm:$0xf0]  ;;  %v5105_v50 = vld [vmem:[#allocation4 + $0x1b8] sm:$0xf]  ;;  %v5385_v55 = vld [vmem:[%s6796_s3 + $0x30] sm:$0xf] }
 0x176   :  { %3171 = vmatpush.bf16.msrb.mxu1 %v5046_v5  ;;  %3131 = vmatpush.bf16.msrb.mxu0 %v5210_v10  ;;  %v2102_v36 = vpop.f32.mrf.mxu3 }
 0x177   :  { %v2103_v60 = vadd.f32 %v2102_v36, %v382_v47  ;;  %v5141_v36 = vld [vmem:[#allocation4 + $0x200] sm:$0xf] }
 0x178   :  { %3212 = vmatpush.bf16.msrb.mxu3 %v5346_v25  ;;  %v5237_v25 = vld [vmem:[#allocation4 + $0x2c0] sm:$0xf] }
 0x179   :  { %v5238_v28 = vor.u32 %v5988_v39, %v5237_v25  ;;  %v2117_v5 = vadd.f32 %v2116_v1, %v2103_v60  ;;  %v5417_v60 = vld [vmem:[%s6796_s3 + $0x70] sm:$0xf] }
 0x17a   :  { %3172 = vmatpush.bf16.msrb.mxu1 %v5034_v8  ;;  %3132 = vmatpush.bf16.msrb.mxu0 %v5198_v23  ;;  %v2118_v2 = vpop.f32.mrf.mxu1 }
 0x17b   :  { %3199 = vmatpush.bf16.msra.mxu2 %v5238_v28 }
 0x17c   :  { %3213 = vmatpush.bf16.msrb.mxu3 %v5334_v38  ;;  %v2130_v38 = vpop.f32.mrf.mxu2 }
 0x17d   :  { %3121 = vmatmul.bf16.vlgmr.msra.gmra.mxu1 %v6389_v33  ;;  %v2131_v10 = vadd.f32 %v2130_v38, %v2117_v5  ;;  %v2146_v21 = vpop.f32.mrf.mxu0  ;;  %v5964_v38 = vld [vmem:[#allocation4 + $0x208] sm:$0xf0]  ;;  %v5419_v5 = vld [vmem:[%s6796_s3 + $0x78] sm:$0xf0] }
 0x17e   :  { %3173 = vmatpush.bf16.msrb.mxu1 %v5022_v29  ;;  %3133 = vmatpush.bf16.msrb.mxu0 %v5186_v53  ;;  %v2104_v22 = vpop.f32.mrf.mxu3 }
 0x17f   :  { %3200 = vmatpush.bf16.msra.mxu2 %v5226_v54  ;;  %v2105_v7 = vadd.f32 %v2104_v22, %v382_v47  ;;  %v2145_v18 = vadd.f32 %v2144_v40, %v2131_v10  ;;  %v5142_v54 = vor.u32 %v5964_v38, %v5141_v36  ;;  %v5955_v47 = vld [vmem:[#allocation4 + $0x1c0] sm:$0xf0]  ;;  %v5393_v40 = vld [vmem:[%s6796_s3 + $0x40] sm:$0xf]  ;;  %v6020_v36 = vld [vmem:[%s6796_s3 + $0x4] sm:$0xf0] }
 0x180   :  { %3214 = vmatpush.bf16.msrb.mxu3 %v5322_v51  ;;  %v4998_v51 = vor.u32 %v5928_v27, %v4997_v43  ;;  %v5958_v27 = vld [vmem:[#allocation4 + $0x1d8] sm:$0xf0]  ;;  %v5411_v10 = vld [vmem:[%s6796_s3 + $0x68] sm:$0xf0] }
 0x181   :  { %v2119_v15 = vadd.f32 %v2118_v2, %v2105_v7  ;;  %v6032_v2 = vld [vmem:[%s6796_s3 + $0x64] sm:$0xf0] }
 0x182   :  { %3174 = vmatpush.bf16.msrb.mxu1 %v5010_v24  ;;  %3134 = vmatpush.bf16.msrb.mxu0 %v5174_v48  ;;  %v5961_v24 = vld [vmem:[#allocation4 + $0x1f0] sm:$0xf0]  ;;  %v5106_v48 = vor.u32 %v5955_v47, %v5105_v50  ;;  %v5379_v50 = vld [vmem:[%s6796_s3 + $0x28] sm:$0xf0] }
 0x183   :  { %3201 = vmatpush.bf16.msra.mxu2 %v5214_v58  ;;  %v5130_v43 = vor.u32 %v5961_v24, %v5129_v41  ;;  %v5082_v58 = vor.u32 %v5949_v56, %v5081_v52  ;;  %v5483_v41 = vld [vmem:[%s6796_s3 + $0xf8] sm:$0xf0]  ;;  %v6042_v52 = vld [vmem:[%s6796_s3 + $0xb4] sm:$0xf0] }
 0x184   :  { %3215 = vmatpush.bf16.msrb.mxu3 %v5310_v62  ;;  %v2132_v45 = vpop.f32.mrf.mxu2  ;;  %v5189_v62 = vld [vmem:[#allocation4 + $0x260] sm:$0xf] }
 0x185   :  { %v5190_v9 = vor.u32 %v5976_v6, %v5189_v62  ;;  %v2133_v14 = vadd.f32 %v2132_v45, %v2119_v15  ;;  %v6033_v45 = vld [vmem:[%s6796_s3 + $0x74] sm:$0xf]  ;;  %v6028_v6 = vld [vmem:[%s6796_s3 + $0x44] sm:$0xf0]  ;;  %v6026_v15 = vld [vmem:[%s6796_s3 + $0x34] sm:$0xf0] }
 0x186   :  { %3175 = vmatpush.bf16.msrb.mxu1 %v4998_v51  ;;  %v5952_v51 = vld [vmem:[#allocation4 + $0x1a8] sm:$0xf0]  ;;  %v5422_v62 = vor.u32 %v6033_v45, %v5419_v5  ;;  %v5394_v7 = vor.u32 %v6028_v6, %v5393_v40  ;;  %v6019_v5 = vld [vmem:[%s6796_s3 + $0x4] sm:$0xf]  ;;  %v5363_v40 = vld [vmem:[%s6796_s3 + $0x8] sm:$0xf0] }
 0x187   :  { %3202 = vmatpush.bf16.msra.mxu2 %v5202_v16  ;;  %v2147_v23 = vadd.f32 %v2146_v21, %v2133_v14  ;;  %v5094_v13 = vor.u32 %v5952_v51, %v5093_v49  ;;  %v6030_v16 = vld [vmem:[%s6796_s3 + $0x54] sm:$0xf0]  ;;  %v5403_v14 = vld [vmem:[%s6796_s3 + $0x58] sm:$0xf0]  ;;  %v6024_v21 = vld [vmem:[%s6796_s3 + $0x24] sm:$0xf0] }
 0x188   :  { %3216 = vmatpush.bf16.msrb.mxu3 %v5298_v19  ;;  %v5475_v49 = vld [vmem:[%s6796_s3 + $0xe8] sm:$0xf0]  ;;  %v6043_v6 = vld [vmem:[%s6796_s3 + $0xc4] sm:$0xf] }
 0x18a   :  { %3176 = vmatpush.bf16.msrb.mxu1 %v4986_v4  ;;  %v5410_v4 = vor.u32 %v6032_v2, %v5409_v0  ;;  %v6045_v2 = vld [vmem:[%s6796_s3 + $0xd4] sm:$0xf] }
 0x18b   :  { %3203 = vmatpush.bf16.msra.mxu2 %v5190_v9  ;;  %v6031_v9 = vld [vmem:[%s6796_s3 + $0x64] sm:$0xf] }
 0x18c   :  { %3217 = vmatpush.bf16.msrb.mxu3 %v5286_v30  ;;  %v2186_v19 = vpop.f32.mrf.mxu2  ;;  %v5165_v30 = vld [vmem:[#allocation4 + $0x230] sm:$0xf]  ;;  %v5414_v12 = vor.u32 %v6031_v9, %v5411_v10  ;;  %v5433_v10 = vld [vmem:[%s6796_s3 + $0x90] sm:$0xf] }
 0x18d   :  { %3177 = vmatmul.bf16.vlgmr.msrb.gmra.mxu1 %v6381_v34  ;;  %v5166_v1 = vor.u32 %v5970_v44, %v5165_v30  ;;  %v5465_v30 = vld [vmem:[%s6796_s3 + $0xd0] sm:$0xf]  ;;  %v6046_v44 = vld [vmem:[%s6796_s3 + $0xd4] sm:$0xf0] }
 0x18f   :  { %3204 = vmatpush.bf16.msra.mxu2 %v5178_v17  ;;  %v5386_v17 = vor.u32 %v6026_v15, %v5385_v55 }
 0x190   :  { %3218 = vmatpush.bf16.msrb.mxu3 %v5274_v46  ;;  %v5117_v46 = vld [vmem:[#allocation4 + $0x1d0] sm:$0xf] }
 0x191   :  { %v5118_v11 = vor.u32 %v5958_v27, %v5117_v46  ;;  %v6044_v46 = vld [vmem:[%s6796_s3 + $0xc4] sm:$0xf0] }
 0x192   :  { %v2172_v3 = vpop.f32.mrf.mxu1 }
 0x194   :  { %v2188_v29 = vpop.f32.mrf.mxu2  ;;  %3571 = vmatpush.bf16.msra.mxu3 %v5422_v62  ;;  %v5366_v62 = vor.u32 %v6019_v5, %v5363_v40  ;;  %v5513_v5 = vld [vmem:[%s6796_s3 + $0x130] sm:$0xf]  ;;  %v6058_v40 = vld [vmem:[%s6796_s3 + $0x134] sm:$0xf0] }
 0x195   :  { %v3024_v55 = vpop.f32.mrf.mxu0 }
 0x196   :  { %v2158_v8 = vpop.f32.mrf.mxu3 }
 0x197   :  { %v2159_v20 = vadd.f32 %v2158_v8, %v2145_v18  ;;  %v6050_v8 = vld [vmem:[%s6796_s3 + $0xf4] sm:$0xf0]  ;;  %v6029_v18 = vld [vmem:[%s6796_s3 + $0x54] sm:$0xf] }
 0x198   :  { %3572 = vmatpush.bf16.msra.mxu3 %v5414_v12  ;;  %v6038_v12 = vld [vmem:[%s6796_s3 + $0x94] sm:$0xf0] }
 0x199   :  { %v2173_v25 = vadd.f32 %v2172_v3, %v2159_v20  ;;  %v5481_v3 = vld [vmem:[%s6796_s3 + $0xf0] sm:$0xf]  ;;  %v5377_v20 = vld [vmem:[%s6796_s3 + $0x20] sm:$0xf]  ;;  %v5434_v15 = vor.u32 %v6038_v12, %v5433_v10 }
 0x19a   :  { %v2174_v28 = vpop.f32.mrf.mxu1 }
 0x19b   :  { %v2187_v59 = vadd.f32 %v2186_v19, %v2173_v25  ;;  %v5482_v19 = vor.u32 %v6050_v8, %v5481_v3  ;;  %v5378_v25 = vor.u32 %v6024_v21, %v5377_v20  ;;  %v5451_v3 = vld [vmem:[%s6796_s3 + $0xb8] sm:$0xf0] }
 0x19d   :  { %v2195_v57 = vmax.f32 %v2187_v59, 0.0  ;;  %v6538_v0 = vpop.f32.mrf.mxu2 }
 0x19e   :  { %v2160_v39 = vpop.f32.mrf.mxu3 }
 0x19f   :  { %v2161_v26 = vadd.f32 %v2160_v39, %v2147_v23  ;;  %v5406_v23 = vor.u32 %v6029_v18, %v5403_v14  ;;  %v5473_v39 = vld [vmem:[%s6796_s3 + $0xe0] sm:$0xf]  ;;  %v6036_v14 = vld [vmem:[%s6796_s3 + $0x84] sm:$0xf0] }
 0x1a1   :  { %v2175_v34 = vadd.f32 %v2174_v28, %v2161_v26  ;;  %v6048_v26 = vld [vmem:[%s6796_s3 + $0xe4] sm:$0xf0]  ;;  %v6027_v28 = vld [vmem:[%s6796_s3 + $0x44] sm:$0xf]  ;;  %3573 = vmatpush.bf16.msra.mxu3 %v5406_v23 }
 0x1a2   :  { %v5474_v59 = vor.u32 %v6048_v26, %v5473_v39  ;;  %v6066_v39 = vld [vmem:[%s6796_s3 + $0x174] sm:$0xf0]  ;;  %v6065_v26 = vld [vmem:[%s6796_s3 + $0x174] sm:$0xf] }
 0x1a3   :  { %v2189_v37 = vadd.f32 %v2188_v29, %v2175_v34  ;;  %v5395_v34 = vld [vmem:[%s6796_s3 + $0x48] sm:$0xf0]  ;;  %v5369_v29 = vld [vmem:[%s6796_s3 + $0x10] sm:$0xf] }
 0x1a5   :  { %v2200_v31 = vmax.f32 %v2189_v37, 0.0  ;;  %v6022_v37 = vld [vmem:[%s6796_s3 + $0x14] sm:$0xf0]  ;;  %v3040_v20 = vpop.f32.mrf.mxu2 }
 0x1a7   :  { %v2205_v53 = vpack.c.bf16 %v2200_v31, %v2195_v57  ;;  %v5398_v57 = vor.u32 %v6027_v28, %v5395_v34  ;;  %v5370_v31 = vor.u32 %v6022_v37, %v5369_v29  ;;  %v6039_v29 = vld [vmem:[%s6796_s3 + $0xa4] sm:$0xf]  ;;  %v5443_v37 = vld [vmem:[%s6796_s3 + $0xa8] sm:$0xf0] }
 0x1a9   :  { %3079 = vmatmul.bf16.vlgmr.msra.gmra.mxu0 %v2205_v53  ;;  %3149 = vmatmul.bf16.vlgmr.msrb.gmra.mxu2 %v2205_v53 }
 0x1aa   :  { %3219 = vmatmul.bf16.vlgmr.msrb.gmra.mxu3 %v2205_v53  ;;  %3183 = vmatpush.bf16.msra.mxu0 %v5166_v1  ;;  %v5466_v1 = vor.u32 %v6046_v44, %v5465_v30  ;;  %v6025_v53 = vld [vmem:[%s6796_s3 + $0x34] sm:$0xf]  ;;  %v5446_v30 = vor.u32 %v6039_v29, %v5443_v37  ;;  %v5537_v44 = vld [vmem:[%s6796_s3 + $0x160] sm:$0xf] }
 0x1ab   :  { %3574 = vmatpush.bf16.msra.mxu3 %v5398_v57  ;;  %v5390_v35 = vor.u32 %v6025_v53, %v5387_v32  ;;  %v6064_v57 = vld [vmem:[%s6796_s3 + $0x164] sm:$0xf0]  ;;  %v5539_v32 = vld [vmem:[%s6796_s3 + $0x168] sm:$0xf0] }
 0x1ac   :  { %v5538_v53 = vor.u32 %v6064_v57, %v5537_v44  ;;  %v5499_v44 = vld [vmem:[%s6796_s3 + $0x118] sm:$0xf0] }
 0x1ae   :  { %3184 = vmatpush.bf16.msra.mxu0 %v5154_v42  ;;  %v5361_v42 = vld [vmem:[%s6796_s3] sm:$0xf] }
 0x1af   :  { %v5362_v38 = vor.u32 %v6020_v36, %v5361_v42  ;;  %3575 = vmatpush.bf16.msra.mxu3 %v5390_v35  ;;  %v3026_v35 = vpop.f32.mrf.mxu0  ;;  %v6037_v36 = vld [vmem:[%s6796_s3 + $0x94] sm:$0xf] }
 0x1b2   :  { %3185 = vmatpush.bf16.msra.mxu0 %v5142_v54  ;;  %v6049_v54 = vld [vmem:[%s6796_s3 + $0xf4] sm:$0xf] }
 0x1b3   :  { %v5486_v24 = vor.u32 %v6049_v54, %v5483_v41 }
 0x1b6   :  { %3186 = vmatpush.bf16.msra.mxu0 %v5130_v43  ;;  %v5457_v43 = vld [vmem:[%s6796_s3 + $0xc0] sm:$0xf] }
 0x1b7   :  { %v5458_v27 = vor.u32 %v6044_v46, %v5457_v43  ;;  %v6062_v43 = vld [vmem:[%s6796_s3 + $0x154] sm:$0xf0]  ;;  %v6061_v46 = vld [vmem:[%s6796_s3 + $0x154] sm:$0xf] }
 0x1b9   :  { %3135 = vmatmul.bf16.vlgmr.msrb.gmra.mxu0 %v6395_v61  ;;  %3205 = vmatmul.bf16.vlgmr.msra.gmra.mxu2 %v6395_v61  ;;  %v6034_v61 = vld [vmem:[%s6796_s3 + $0x74] sm:$0xf0] }
 0x1ba   :  { %3187 = vmatpush.bf16.msra.mxu0 %v5118_v11  ;;  %v5418_v63 = vor.u32 %v6034_v61, %v5417_v60  ;;  %v6023_v11 = vld [vmem:[%s6796_s3 + $0x24] sm:$0xf]  ;;  %v5371_v60 = vld [vmem:[%s6796_s3 + $0x18] sm:$0xf0] }
 0x1bb   :  { %v5382_v47 = vor.u32 %v6023_v11, %v5379_v50 }
 0x1bc   :  { %3529 = vmatpush.bf16.msra.mxu1 %v5418_v63 }
 0x1bd   :  { %3576 = vmatpush.bf16.msra.mxu3 %v5382_v47  ;;  %v6624_v41 = vpop.f32.mrf.mxu2  ;;  %v5531_v47 = vld [vmem:[%s6796_s3 + $0x158] sm:$0xf0] }
 0x1be   :  { %3188 = vmatpush.bf16.msra.mxu0 %v5106_v48  ;;  %v6047_v48 = vld [vmem:[%s6796_s3 + $0xe4] sm:$0xf] }
 0x1bf   :  { %v5478_v51 = vor.u32 %v6047_v48, %v5475_v49  ;;  %v5534_v49 = vor.u32 %v6061_v46, %v5531_v47 }
 0x1c0   :  { %3530 = vmatpush.bf16.msra.mxu1 %v5410_v4  ;;  %v5467_v4 = vld [vmem:[%s6796_s3 + $0xd8] sm:$0xf0] }
 0x1c2   :  { %3189 = vmatpush.bf16.msra.mxu0 %v5094_v13  ;;  %v5449_v13 = vld [vmem:[%s6796_s3 + $0xb0] sm:$0xf] }
 0x1c3   :  { %v5450_v56 = vor.u32 %v6042_v52, %v5449_v13  ;;  %v5427_v13 = vld [vmem:[%s6796_s3 + $0x88] sm:$0xf0] }
 0x1c5   :  { %v3096_v10 = vpop.f32.mrf.mxu2 }
 0x1c6   :  { %3190 = vmatpush.bf16.msra.mxu0 %v5082_v58  ;;  %v6021_v58 = vld [vmem:[%s6796_s3 + $0x14] sm:$0xf] }
 0x1c7   :  { %v5374_v63 = vor.u32 %v6021_v58, %v5371_v60  ;;  %v6060_v58 = vld [vmem:[%s6796_s3 + $0x144] sm:$0xf0]  ;;  %v6059_v60 = vld [vmem:[%s6796_s3 + $0x144] sm:$0xf] }
 0x1c9   :  { %3191 = vmatmul.bf16.vlgmr.msra.gmra.mxu0 %v6389_v33  ;;  %v5401_v33 = vld [vmem:[%s6796_s3 + $0x50] sm:$0xf]  ;;  %3577 = vmatpush.bf16.msra.mxu3 %v5374_v63 }
 0x1ca   :  { %v5402_v22 = vor.u32 %v6030_v16, %v5401_v33  ;;  %3543 = vmatpush.bf16.msrb.mxu0 %v5482_v19  ;;  %v6536_v61 = vpop.f32.mrf.mxu3  ;;  %v5470_v33 = vor.u32 %v6045_v2, %v5467_v4  ;;  %v5441_v16 = vld [vmem:[%s6796_s3 + $0xa0] sm:$0xf]  ;;  %v5523_v4 = vld [vmem:[%s6796_s3 + $0x148] sm:$0xf0] }
 0x1cb   :  { %v5425_v19 = vld [vmem:[%s6796_s3 + $0x80] sm:$0xf] }
 0x1cc   :  { %3531 = vmatpush.bf16.msra.mxu1 %v5402_v22  ;;  %v6040_v22 = vld [vmem:[%s6796_s3 + $0xa4] sm:$0xf0]  ;;  %v5426_v23 = vor.u32 %v6036_v14, %v5425_v19  ;;  %v6055_v19 = vld [vmem:[%s6796_s3 + $0x124] sm:$0xf] }
 0x1cd   :  { %v5442_v45 = vor.u32 %v6040_v22, %v5441_v16  ;;  %3578 = vmatpush.bf16.msra.mxu3 %v5366_v62  ;;  %v5526_v16 = vor.u32 %v6059_v60, %v5523_v4  ;;  %v6057_v62 = vld [vmem:[%s6796_s3 + $0x134] sm:$0xf] }
 0x1ce   :  { %3544 = vmatpush.bf16.msrb.mxu0 %v5474_v59  ;;  %v5547_v59 = vld [vmem:[%s6796_s3 + $0x178] sm:$0xf0] }
 0x1cf   :  { %v5550_v34 = vor.u32 %v6065_v26, %v5547_v59  ;;  %v5497_v26 = vld [vmem:[%s6796_s3 + $0x110] sm:$0xf]  ;;  %v6053_v59 = vld [vmem:[%s6796_s3 + $0x114] sm:$0xf] }
 0x1d0   :  { %3532 = vmatpush.bf16.msra.mxu1 %v5394_v7  ;;  %v5459_v7 = vld [vmem:[%s6796_s3 + $0xc8] sm:$0xf0] }
 0x1d1   :  { %v5462_v9 = vor.u32 %v6043_v6, %v5459_v7 }
 0x1d2   :  { %3545 = vmatpush.bf16.msrb.mxu0 %v5466_v1  ;;  %v6576_v8 = vpop.f32.mrf.mxu3  ;;  %v6613_v1 = vld [vmem:[#allocation6 + $0x1] ss:$8 sm:$0x7] }
 0x1d4   :  { %3533 = vmatpush.bf16.msra.mxu1 %v5386_v17  ;;  %v6041_v17 = vld [vmem:[%s6796_s3 + $0xb4] sm:$0xf] }
 0x1d5   :  { %v5454_v18 = vor.u32 %v6041_v17, %v5451_v3 }
 0x1d6   :  { %3546 = vmatpush.bf16.msrb.mxu0 %v5458_v27  ;;  %v2369_v27 = vperm.slane %v6613_v1, 0 }
 0x1d8   :  { %3534 = vmatpush.bf16.msra.mxu1 %v5378_v25  ;;  %v5545_v25 = vld [vmem:[%s6796_s3 + $0x170] sm:$0xf]  ;;  %v3025_v63 = vadd.f32 %v3024_v55, %v2369_v27  ;;  %v3027_v22 = vadd.f32 %v3026_v35, %v2369_v27  ;;  %v6052_v35 = vld [vmem:[%s6796_s3 + $0x104] sm:$0xf0] }
 0x1d9   :  { %v5546_v28 = vor.u32 %v6066_v39, %v5545_v25 }
 0x1da   :  { %3547 = vmatpush.bf16.msrb.mxu0 %v5450_v56  ;;  %v6636_v11 = vpop.f32.mrf.mxu3  ;;  %v5521_v56 = vld [vmem:[%s6796_s3 + $0x140] sm:$0xf]  ;;  %v3041_v6 = vadd.f32 %v3040_v20, %v3027_v22 }
 0x1db   :  { %3557 = vmatpush.bf16.msrb.mxu2 %v5546_v28  ;;  %v5522_v2 = vor.u32 %v6060_v58, %v5521_v56  ;;  %v6054_v28 = vld [vmem:[%s6796_s3 + $0x114] sm:$0xf0] }
 0x1dc   :  { %3535 = vmatpush.bf16.msra.mxu1 %v5370_v31  ;;  %v6063_v31 = vld [vmem:[%s6796_s3 + $0x164] sm:$0xf]  ;;  %v3055_v55 = vadd.f32 %v6576_v8, %v3041_v6 }
 0x1dd   :  { %v5542_v42 = vor.u32 %v6063_v31, %v5539_v32  ;;  %v5502_v31 = vor.u32 %v6053_v59, %v5499_v44  ;;  %v5489_v32 = vld [vmem:[%s6796_s3 + $0x100] sm:$0xf]  ;;  %v6069_v44 = vld [vmem:[%s6797_s4 + $0x10] sm:$0xff] }
 0x1de   :  { %3548 = vmatpush.bf16.msrb.mxu0 %v5442_v45  ;;  %v3039_v45 = vadd.f32 %v6538_v0, %v3025_v63  ;;  %v5515_v0 = vld [vmem:[%s6796_s3 + $0x138] sm:$0xf0]  ;;  %v6071_v59 = vld [vmem:[%s6797_s4 + $0x20] sm:$0xff] }
 0x1df   :  { %3558 = vmatpush.bf16.msrb.mxu2 %v5538_v53  ;;  %v5518_v12 = vor.u32 %v6057_v62, %v5515_v0 }
 0x1e0   :  { %3536 = vmatpush.bf16.msra.mxu1 %v5362_v38  ;;  %v5435_v38 = vld [vmem:[%s6796_s3 + $0x98] sm:$0xf0]  ;;  %v3053_v7 = vadd.f32 %v6536_v61, %v3039_v45  ;;  %v6056_v61 = vld [vmem:[%s6796_s3 + $0x124] sm:$0xf0] }
 0x1e1   :  { %v5438_v54 = vor.u32 %v6037_v36, %v5435_v38 }
 0x1e2   :  { %3549 = vmatpush.bf16.msrb.mxu0 %v5434_v15  ;;  %v3110_v15 = vpop.f32.mrf.mxu3 }
 0x1e4   :  { %3585 = vmatpush.bf16.msrb.mxu1 %v5486_v24  ;;  %v5529_v24 = vld [vmem:[%s6796_s3 + $0x150] sm:$0xf] }
 0x1e5   :  { %v5530_v50 = vor.u32 %v6062_v43, %v5529_v24  ;;  %v5491_v24 = vld [vmem:[%s6796_s3 + $0x108] sm:$0xf0] }
 0x1e6   :  { %3550 = vmatpush.bf16.msrb.mxu0 %v5426_v23 }
 0x1e7   :  { %3559 = vmatpush.bf16.msrb.mxu2 %v5530_v50 }
 0x1e8   :  { %3586 = vmatpush.bf16.msrb.mxu1 %v5478_v51  ;;  %v6035_v51 = vld [vmem:[%s6796_s3 + $0x84] sm:$0xf] }
 0x1e9   :  { %v5430_v52 = vor.u32 %v6035_v51, %v5427_v13 }
 0x1ea   :  { %v6584_v21 = vpop.f32.mrf.mxu1  ;;  %3599 = vmatpush.bf16.msra.mxu0 %v5550_v34  ;;  %v2370_v34 = vperm.slane %v6613_v1, 1 }
 0x1eb   :  { %3560 = vmatpush.bf16.msrb.mxu2 %v5522_v2  ;;  %v3067_v17 = vadd.f32 %v6584_v21, %v3053_v7  ;;  %v5507_v21 = vld [vmem:[%s6796_s3 + $0x128] sm:$0xf0]  ;;  %v2371_v2 = vperm.slane %v6613_v1, 2 }
 0x1ec   :  { %3587 = vmatpush.bf16.msrb.mxu1 %v5470_v33  ;;  %v5510_v25 = vor.u32 %v6055_v19, %v5507_v21  ;;  %v3095_v36 = vadd.f32 %v6624_v41, %v2370_v34  ;;  %v3097_v47 = vadd.f32 %v3096_v10, %v2370_v34  ;;  %v6074_v21 = vld [vmem:[%s6797_s4 + $0x38] sm:$0xff]  ;;  %v6077_v34 = vld [vmem:[%s6797_s4 + $0x50] sm:$0xff] }
 0x1ee   :  { %3600 = vmatpush.bf16.msra.mxu0 %v5542_v42  ;;  %v6051_v42 = vld [vmem:[%s6796_s3 + $0x104] sm:$0xf]  ;;  %v3109_v50 = vadd.f32 %v6636_v11, %v3095_v36  ;;  %v6089_v36 = vld [vmem:[%s6798_s5 + $0x30] sm:$0xff] }
 0x1ef   :  { %v5494_v27 = vor.u32 %v6051_v42, %v5491_v24  ;;  %v6090_v42 = vld [vmem:[%s6798_s5 + $0x38] sm:$0xff] }
 0x1f0   :  { %3588 = vmatpush.bf16.msrb.mxu1 %v5462_v9  ;;  %v5514_v9 = vor.u32 %v6058_v40, %v5513_v5 }
 0x1f2   :  { %v3068_v48 = vpop.f32.mrf.mxu1  ;;  %3601 = vmatpush.bf16.msra.mxu0 %v5534_v49  ;;  %3561 = vmatpush.bf16.msrb.mxu2 %v5514_v9  ;;  %v3111_v49 = vadd.f32 %v3110_v15, %v3097_v47 }
 0x1f3   :  { %v3069_v14 = vadd.f32 %v3068_v48, %v3055_v55 }
 0x1f4   :  { %3589 = vmatpush.bf16.msrb.mxu1 %v5454_v18  ;;  %v5505_v18 = vld [vmem:[%s6796_s3 + $0x120] sm:$0xf] }
 0x1f5   :  { %v5506_v20 = vor.u32 %v6056_v61, %v5505_v18 }
 0x1f6   :  { %3602 = vmatpush.bf16.msra.mxu0 %v5526_v16  ;;  %v3164_v38 = vpop.f32.mrf.mxu3 }
 0x1f7   :  { %3562 = vmatpush.bf16.msrb.mxu2 %v5506_v20  ;;  %v3165_v22 = vadd.f32 %v3164_v38, %v2371_v2  ;;  %v6081_v20 = vld [vmem:[%s6797_s4 + $0x70] sm:$0xff] }
 0x1f8   :  { %3590 = vmatpush.bf16.msrb.mxu1 %v5446_v30  ;;  %v5498_v30 = vor.u32 %v6054_v28, %v5497_v26  ;;  %v6072_v26 = vld [vmem:[%s6797_s4 + $0x28] sm:$0xff]  ;;  %v6078_v28 = vld [vmem:[%s6797_s4 + $0x58] sm:$0xff] }
 0x1fa   :  { %v3122_v3 = vpop.f32.mrf.mxu1  ;;  %3603 = vmatpush.bf16.msra.mxu0 %v5518_v12 }
 0x1fb   :  { %3563 = vmatpush.bf16.msrb.mxu2 %v5498_v30  ;;  %v3123_v48 = vadd.f32 %v3122_v3, %v3109_v50 }
 0x1fc   :  { %3591 = vmatpush.bf16.msrb.mxu1 %v5438_v54  ;;  %v5490_v54 = vor.u32 %v6052_v35, %v5489_v32  ;;  %v6067_v32 = vld [vmem:[%s6797_s4] sm:$0xff] }
 0x1fe   :  { %3604 = vmatpush.bf16.msra.mxu0 %v5510_v25  ;;  %v3166_v60 = vpop.f32.mrf.mxu3  ;;  %v6073_v25 = vld [vmem:[%s6797_s4 + $0x30] sm:$0xff] }
 0x1ff   :  { %3564 = vmatpush.bf16.msrb.mxu2 %v5490_v54  ;;  %v3167_v9 = vadd.f32 %v3166_v60, %v2371_v2 }
 0x200   :  { %3592 = vmatpush.bf16.msrb.mxu1 %v5430_v52 }
 0x202   :  { %3605 = vmatpush.bf16.msra.mxu0 %v5502_v31  ;;  %v3124_v43 = vpop.f32.mrf.mxu1  ;;  %v6068_v31 = vld [vmem:[%s6797_s4 + $0x8] sm:$0xff] }
 0x203   :  { %v3125_v13 = vadd.f32 %v3124_v43, %v3111_v49  ;;  %3748 = vmatpush.bf16.msra.mxu2 %v6074_v21  ;;  %v3283_v43 = vld [vmem:[#allocation6 + $0x2] ss:$8 sm:$0x3] }
 0x204   :  { %v3285_v49 = vperm.slane %v3283_v43, 0 }
 0x206   :  { %3606 = vmatpush.bf16.msra.mxu0 %v5494_v27 }
 0x207   :  { %3749 = vmatpush.bf16.msra.mxu2 %v6073_v25 }
 0x20a   :  { %v3178_v63 = vpop.f32.mrf.mxu1 }
 0x20b   :  { %v3179_v40 = vadd.f32 %v3178_v63, %v3165_v22  ;;  %3750 = vmatpush.bf16.msra.mxu2 %v6072_v26 }
 0x20f   :  { %3751 = vmatpush.bf16.msra.mxu2 %v6071_v59 }
 0x212   :  { %v3180_v7 = vpop.f32.mrf.mxu1 }
 0x213   :  { %v3181_v0 = vadd.f32 %v3180_v7, %v3167_v9  ;;  %v6088_v9 = vld [vmem:[%s6798_s5 + $0x28] sm:$0xff] }
 0x226   :  { %v3080_v33 = vpop.f32.mrf.mxu0 }
 0x227   :  { %v3081_v8 = vadd.f32 %v3080_v33, %v3067_v17 }
 0x229   :  { %v3225_v29 = vmax.f32 %v3081_v8, 0.0  ;;  %v6082_v8 = vld [vmem:[%s6797_s4 + $0x78] sm:$0xff] }
 0x22a   :  { %3762 = vmatpush.bf16.msrb.mxu3 %v6082_v8 }
 0x22c   :  { %v3150_v57 = vpop.f32.mrf.mxu2 }
 0x22d   :  { %v3220_v62 = vpop.f32.mrf.mxu3 }
 0x22e   :  { %v3082_v23 = vpop.f32.mrf.mxu0  ;;  %3763 = vmatpush.bf16.msrb.mxu3 %v6081_v20 }
 0x22f   :  { %v3083_v39 = vadd.f32 %v3082_v23, %v3069_v14  ;;  %v6080_v23 = vld [vmem:[%s6797_s4 + $0x68] sm:$0xff] }
 0x231   :  { %v3228_v37 = vmax.f32 %v3083_v39, 0.0  ;;  %v6079_v39 = vld [vmem:[%s6797_s4 + $0x60] sm:$0xff] }
 0x232   :  { %3764 = vmatpush.bf16.msrb.mxu3 %v6080_v23 }
 0x233   :  { %v3231_v53 = vpack.c.bf16 %v3228_v37, %v3225_v29  ;;  %v6070_v29 = vld [vmem:[%s6797_s4 + $0x18] sm:$0xff]  ;;  %v6076_v37 = vld [vmem:[%s6797_s4 + $0x48] sm:$0xff] }
 0x234   :  { %v3152_v41 = vpop.f32.mrf.mxu2  ;;  %3752 = vmatpush.bf16.msra.mxu2 %v6070_v29 }
 0x235   :  { %3537 = vmatmul.bf16.vlgmr.msra.gmra.mxu1 %v3231_v53  ;;  %3579 = vmatmul.bf16.vlgmr.msra.gmra.mxu3 %v3231_v53  ;;  %v3222_v3 = vpop.f32.mrf.mxu3 }
 0x236   :  { %v3136_v46 = vpop.f32.mrf.mxu0  ;;  %3765 = vmatpush.bf16.msrb.mxu3 %v6079_v39  ;;  %3844 = vmatpush.bf16.msra.mxu1 %v6090_v42  ;;  %v3795_v39 = vld [vmem:[#allocation6 + $0x4] ss:$0 sm:$0xff] }
 0x237   :  { %v3137_v51 = vadd.f32 %v3136_v46, %v3123_v48  ;;  %v3286_v46 = vperm.slane %v3283_v43, 1 }
 0x238   :  { %3753 = vmatpush.bf16.msra.mxu2 %v6069_v44 }
 0x239   :  { %v3151_v56 = vadd.f32 %v3150_v57, %v3137_v51  ;;  %v6075_v57 = vld [vmem:[%s6797_s4 + $0x40] sm:$0xff] }
 0x23a   :  { %3766 = vmatpush.bf16.msrb.mxu3 %v6078_v28  ;;  %3845 = vmatpush.bf16.msra.mxu1 %v6089_v36 }
 0x23b   :  { %v3226_v33 = vmax.f32 %v3151_v56, 0.0 }
 0x23c   :  { %v3206_v45 = vpop.f32.mrf.mxu2  ;;  %3754 = vmatpush.bf16.msra.mxu2 %v6068_v31 }
 0x23e   :  { %v3138_v52 = vpop.f32.mrf.mxu0  ;;  %3767 = vmatpush.bf16.msrb.mxu3 %v6077_v34  ;;  %3846 = vmatpush.bf16.msra.mxu1 %v6088_v9 }
 0x23f   :  { %v3139_v58 = vadd.f32 %v3138_v52, %v3125_v13 }
 0x240   :  { %3755 = vmatpush.bf16.msra.mxu2 %v6067_v32 }
 0x241   :  { %v3153_v4 = vadd.f32 %v3152_v41, %v3139_v58 }
 0x242   :  { %3768 = vmatpush.bf16.msrb.mxu3 %v6076_v37 }
 0x243   :  { %v3229_v16 = vmax.f32 %v3153_v4, 0.0 }
 0x244   :  { %v3208_v15 = vpop.f32.mrf.mxu2 }
 0x245   :  { %v3232_v11 = vpack.c.bf16 %v3229_v16, %v3226_v33 }
 0x246   :  { %v3192_v5 = vpop.f32.mrf.mxu0  ;;  %3769 = vmatpush.bf16.msrb.mxu3 %v6075_v57 }
 0x247   :  { %3551 = vmatmul.bf16.vlgmr.msrb.gmra.mxu0 %v3232_v11  ;;  %3593 = vmatmul.bf16.vlgmr.msrb.gmra.mxu1 %v3232_v11  ;;  %v3193_v6 = vadd.f32 %v3192_v5, %v3179_v40 }
 0x249   :  { %v3207_v10 = vadd.f32 %v3206_v45, %v3193_v6 }
 0x24b   :  { %v3221_v1 = vadd.f32 %v3220_v62, %v3207_v10  ;;  %v6086_v10 = vld [vmem:[%s6798_s5 + $0x18] sm:$0xff] }
 0x24d   :  { %v3227_v61 = vmax.f32 %v3221_v1, 0.0 }
 0x24e   :  { %v3194_v12 = vpop.f32.mrf.mxu0 }
 0x24f   :  { %v3195_v55 = vadd.f32 %v3194_v12, %v3181_v0  ;;  %v6087_v0 = vld [vmem:[%s6798_s5 + $0x20] sm:$0xff]  ;;  %v6085_v12 = vld [vmem:[%s6798_s5 + $0x10] sm:$0xff] }
 0x250   :  { %3847 = vmatpush.bf16.msra.mxu1 %v6087_v0 }
 0x251   :  { %v3209_v17 = vadd.f32 %v3208_v15, %v3195_v55  ;;  %v6084_v55 = vld [vmem:[%s6798_s5 + $0x8] sm:$0xff]  ;;  %v6083_v15 = vld [vmem:[%s6798_s5] sm:$0xff] }
 0x253   :  { %v3223_v18 = vadd.f32 %v3222_v3, %v3209_v17  ;;  %v3651_v3 = vld [vmem:[#allocation6 + $0x3] ss:$0 sm:$0xff] }
 0x254   :  { %3848 = vmatpush.bf16.msra.mxu1 %v6086_v10 }
 0x255   :  { %v3230_v19 = vmax.f32 %v3223_v18, 0.0 }
 0x257   :  { %v3233_v14 = vpack.c.bf16 %v3230_v19, %v3227_v61 }
 0x258   :  { %3849 = vmatpush.bf16.msra.mxu1 %v6085_v12 }
 0x259   :  { %3565 = vmatmul.bf16.vlgmr.msrb.gmra.mxu2 %v3233_v14  ;;  %3607 = vmatmul.bf16.vlgmr.msra.gmra.mxu0 %v3233_v14 }
 0x25c   :  { %3850 = vmatpush.bf16.msra.mxu1 %v6084_v55 }
 0x260   :  { %3851 = vmatpush.bf16.msra.mxu1 %v6083_v15 }
 0x2b2   :  { %v3538_v30 = vpop.f32.mrf.mxu1 }
 0x2b3   :  { %v3539_v60 = vadd.f32 %v3538_v30, %v3285_v49 }
 0x2b8   :  { %v3580_v38 = vpop.f32.mrf.mxu3 }
 0x2b9   :  { %v3581_v47 = vadd.f32 %v3580_v38, %v3286_v46 }
 0x2ba   :  { %v3540_v35 = vpop.f32.mrf.mxu1 }
 0x2bb   :  { %v3541_v2 = vadd.f32 %v3540_v35, %v3285_v49 }
 0x2c0   :  { %v3582_v50 = vpop.f32.mrf.mxu3 }
 0x2c1   :  { %v3583_v51 = vadd.f32 %v3582_v50, %v3286_v46 }
 0x2c4   :  { %v3552_v53 = vpop.f32.mrf.mxu0  ;;  %v3594_v24 = vpop.f32.mrf.mxu1 }
 0x2c5   :  { %v3595_v41 = vadd.f32 %v3594_v24, %v3581_v47  ;;  %v3553_v4 = vadd.f32 %v3552_v53, %v3539_v60 }
 0x2cc   :  { %v3554_v54 = vpop.f32.mrf.mxu0  ;;  %v3596_v48 = vpop.f32.mrf.mxu1 }
 0x2cd   :  { %v3597_v52 = vadd.f32 %v3596_v48, %v3583_v51  ;;  %v3555_v22 = vadd.f32 %v3554_v54, %v3541_v2 }
 0x2d6   :  { %v3608_v27 = vpop.f32.mrf.mxu0 }
 0x2d7   :  { %v3609_v56 = vadd.f32 %v3608_v27, %v3595_v41 }
 0x2d9   :  { %v3614_v33 = vmax.f32 %v3609_v56, 0.0 }
 0x2dc   :  { %v3566_v13 = vpop.f32.mrf.mxu2 }
 0x2dd   :  { %v3567_v11 = vadd.f32 %v3566_v13, %v3553_v4 }
 0x2de   :  { %v3610_v58 = vpop.f32.mrf.mxu0 }
 0x2df   :  { %v3611_v63 = vadd.f32 %v3610_v58, %v3597_v52  ;;  %v3613_v62 = vmax.f32 %v3567_v11, 0.0 }
 0x2e1   :  { %v3616_v16 = vmax.f32 %v3611_v63, 0.0 }
 0x2e3   :  { %v3618_v45 = vpack.c.bf16 %v3616_v16, %v3614_v33 }
 0x2e4   :  { %v3568_v5 = vpop.f32.mrf.mxu2 }
 0x2e5   :  { %v3569_v40 = vadd.f32 %v3568_v5, %v3555_v22  ;;  %3770 = vmatmul.bf16.vlgmr.msrb.gmra.mxu3 %v3618_v45 }
 0x2e7   :  { %v3615_v6 = vmax.f32 %v3569_v40, 0.0 }
 0x2e9   :  { %v3617_v7 = vpack.c.bf16 %v3615_v6, %v3613_v62 }
 0x2eb   :  { %3756 = vmatmul.bf16.vlgmr.msra.gmra.mxu2 %v3617_v7 }
 0x368   :  { %v3771_v1 = vpop.f32.mrf.mxu3 }
 0x36e   :  { %v3757_v17 = vpop.f32.mrf.mxu2 }
 0x36f   :  { %v3758_v18 = vadd.f32 %v3757_v17, %v3651_v3 }
 0x370   :  { %v3773_v8 = vpop.f32.mrf.mxu3 }
 0x371   :  { %v3772_v19 = vadd.f32 %v3771_v1, %v3758_v18 }
 0x373   :  { %v3776_v21 = vmax.f32 %v3772_v19, 0.0 }
 0x376   :  { %v3759_v61 = vpop.f32.mrf.mxu2 }
 0x377   :  { %v3760_v14 = vadd.f32 %v3759_v61, %v3651_v3 }
 0x379   :  { %v3774_v20 = vadd.f32 %v3773_v8, %v3760_v14 }
 0x37b   :  { %v3777_v23 = vmax.f32 %v3774_v20, 0.0 }
 0x37d   :  { %v3778_v25 = vpack.c.bf16 %v3777_v23, %v3776_v21 }
 0x37f   :  { %3852 = vmatmul.bf16.vlgmr.msra.gmra.mxu1 %v3778_v25 }
 0x3fc   :  { %v3853_v26 = vpop.f32.mrf.mxu1 }
 0x3fd   :  { %v3854_v28 = vadd.f32 %v3853_v26, %v3795_v39 }
 0x3ff   :  { %3858 = vst [vmem:[%s6800_s7] sm:$0xff] %v3854_v28 }
 0x404   :  { %v3855_v59 = vpop.f32.mrf.mxu1 }
 0x405   :  { %v3856_v34 = vadd.f32 %v3855_v59, %v3795_v39 }
 0x407   :  { %3859 = vst [vmem:[%s6800_s7 + $0x8] sm:$0xff] %v3856_v34 }
 0x408   :  { %3864 = vsyncpa [#allocation3], 1 }
 0x409   :  { %3865 = vsyncpa [#allocation5], 1 }

</bundles_post_ra>
